<compile_context>
chip_gen: v7x
topology: tpu7x:2x2x1
jax: 0.10.0
libtpu: 0.0.40
codegen_flags: <defaults>
</compile_context>

<pallas_src>
import jax
import jax.numpy as jnp
from jax import lax
from jax.experimental import pallas as pl
from jax.experimental.pallas import tpu as pltpu

# ---- small synthetic config (stand-in for the HF RoBERTa config) -------------
B, S = 2, 8                 # batch, sequence length
H = 256                     # hidden size
NUM_HEADS, D_HEAD = 2, 128  # H = NUM_HEADS * D_HEAD
INTERMEDIATE = 512          # FFN inner dim
NUM_LAYERS = 2              # encoder layers
VOCAB = 128
MAX_POS = 16
NUM_LABELS = 7
PAD_IDX = 1                 # RoBERTa padding_idx
LN_EPS = 1e-5

T = B * S                   # 16 token rows (sublane-dense: 16 % 8 == 0)
LBL_PAD = 128               # lane-pad num_labels 7 -> 128 for an unmasked store


# ---------------------------- fused Pallas kernel -------------------------------

def _layernorm(v, g, b):
    """LayerNorm over last dim, f32 math. v: [T, H], g/b: [1, H] (f32)."""
    mu = jnp.mean(v, axis=-1, keepdims=True)
    var = jnp.mean((v - mu) ** 2, axis=-1, keepdims=True)
    return (v - mu) * lax.rsqrt(var + LN_EPS) * g + b


def fused_kernel(x_ref, bias_ref, embg_ref, embb_ref,
                 wqkv_ref, bqkv_ref, wo_ref, bo_ref, ln1g_ref, ln1b_ref,
                 w1_ref, b1_ref, w2_ref, b2_ref, ln2g_ref, ln2b_ref,
                 cdw_ref, cdb_ref, cow_ref, cob_ref,
                 logits_ref):
    """No grid: embedding-LN + NUM_LAYERS encoder layers (static unroll) + classifier."""
    x = _layernorm(x_ref[...], embg_ref[...], embb_ref[...])      # [T, H] f32
    bias = bias_ref[...]                                          # [T, T] f32 (hoisted)
    scale = jnp.float32(1.0 / (D_HEAD ** 0.5))

    for l in range(NUM_LAYERS):                                   # static unroll (L=2)
        x_bf = x.astype(jnp.bfloat16)

        # ---- fused QKV projection: one [T,H] x [H,3H] MXU pass --------------------
        qkv = (jnp.dot(x_bf, wqkv_ref[l], preferred_element_type=jnp.float32)
               + bqkv_ref[l])                                     # [T, 3H] f32
        qkv_bf = qkv.astype(jnp.bfloat16)                         # cast once

        # ---- multi-head self attention (de-batched, block-diag bias) --------------
        ctx = []
        for h in range(NUM_HEADS):                                # 128-aligned lane slices
            lo = h * D_HEAD
            qh = qkv_bf[:, lo:lo + D_HEAD]                        # [T, D_HEAD] bf16
            kh = qkv_bf[:, H + lo:H + lo + D_HEAD]
            vh = qkv_bf[:, 2 * H + lo:2 * H + lo + D_HEAD]
            # q @ k^T via dot_general (contract last dims, no materialized transpose)
            s = lax.dot_general(qh, kh, (((1,), (1,)), ((), ())),
                                preferred_element_type=jnp.float32) * scale + bias
            s = s - jnp.max(s, axis=-1, keepdims=True)
            p = jnp.exp(s)
            p = p * pl.reciprocal(jnp.sum(p, axis=-1, keepdims=True), approx=True)
            ctx.append(jnp.dot(p.astype(jnp.bfloat16), vh,
                               preferred_element_type=jnp.float32))  # [T, D_HEAD] f32

        # lane-aligned concat -> one K=H output projection (single MXU pass)
        ctx_bf = jnp.concatenate(ctx, axis=-1).astype(jnp.bfloat16)  # [T, H]
        attn = (jnp.dot(ctx_bf, wo_ref[l], preferred_element_type=jnp.float32)
                + bo_ref[l])
        h1 = _layernorm(x + attn, ln1g_ref[l], ln1b_ref[l])

        # ---- feed-forward ----------------------------------------------------------
        inter = jax.nn.gelu(
            jnp.dot(h1.astype(jnp.bfloat16), w1_ref[l],
                    preferred_element_type=jnp.float32) + b1_ref[l],
            approximate=True)
        ffn = (jnp.dot(inter.astype(jnp.bfloat16), w2_ref[l],
                       preferred_element_type=jnp.float32) + b2_ref[l])
        x = _layernorm(h1 + ffn, ln2g_ref[l], ln2b_ref[l])

    # ---- classification head on all T rows (lane/sublane-dense store) --------------
    hd = jnp.tanh(jnp.dot(x.astype(jnp.bfloat16), cdw_ref[...],
                          preferred_element_type=jnp.float32) + cdb_ref[...])
    logits_ref[...] = (jnp.dot(hd.astype(jnp.bfloat16), cow_ref[...],
                               preferred_element_type=jnp.float32) + cob_ref[...])


# ---------------------------- wrapper -------------------------------------------

def fused_forward(params, x_emb, attn_bias):
    p = params
    args = (x_emb, attn_bias, p['emb_ln_g'], p['emb_ln_b'],
            p['wqkv'], p['bqkv'], p['wo'], p['bo'], p['ln1_g'], p['ln1_b'],
            p['w1'], p['b1'], p['w2'], p['b2'], p['ln2_g'], p['ln2_b'],
            p['cls_dense_w'], p['cls_dense_b'], p['cls_out_w'], p['cls_out_b'])
    vmem = pl.BlockSpec(memory_space=pltpu.MemorySpace.VMEM)   # whole array in VMEM
    return pl.pallas_call(
        fused_kernel,
        out_shape=jax.ShapeDtypeStruct((T, LBL_PAD), jnp.float32),
        in_specs=[vmem] * len(args),
        out_specs=vmem,
    )(*args)


# ---------------------------- model glue (plain JAX) -----------------------------

def init_params(key):
    keys = iter(jax.random.split(key, 12))

    def nrm(shape, dtype=jnp.bfloat16):
        return (jax.random.normal(next(keys), shape, jnp.float32) * 0.02).astype(dtype)

    zeros = lambda s: jnp.zeros(s, jnp.float32)
    ones = lambda s: jnp.ones(s, jnp.float32)
    L = NUM_LAYERS

    out_w = jax.random.normal(next(keys), (H, NUM_LABELS), jnp.float32) * 0.02
    out_w = jnp.pad(out_w, ((0, 0), (0, LBL_PAD - NUM_LABELS))).astype(jnp.bfloat16)

    return {
        # embeddings stay f32 (host-side gather + sum)
        'word_emb': nrm((VOCAB, H), jnp.float32),
        'pos_emb': nrm((MAX_POS, H), jnp.float32),
        'type_emb': nrm((1, H), jnp.float32),
        'emb_ln_g': ones((1, H)), 'emb_ln_b': zeros((1, H)),
        # stacked per-layer weights (bf16 matmul weights, f32 biases / LN params)
        'wqkv': nrm((L, H, 3 * H)), 'bqkv': zeros((L, 1, 3 * H)),   # fused Q/K/V
        'wo': nrm((L, H, H)), 'bo': zeros((L, 1, H)),
        'ln1_g': ones((L, 1, H)), 'ln1_b': zeros((L, 1, H)),
        'w1': nrm((L, H, INTERMEDIATE)), 'b1': zeros((L, 1, INTERMEDIATE)),
        'w2': nrm((L, INTERMEDIATE, H)), 'b2': zeros((L, 1, H)),
        'ln2_g': ones((L, 1, H)), 'ln2_b': zeros((L, 1, H)),
        # classification head (out_proj lane-padded to 128 labels)
        'cls_dense_w': nrm((H, H)), 'cls_dense_b': zeros((1, H)),
        'cls_out_w': out_w, 'cls_out_b': zeros((1, LBL_PAD)),
    }


@jax.jit
def forward(params, input_ids, attention_mask):
    """Equivalent of SentimentAnalysisModel.forward(...).logits (labels=None, eval)."""
    # RoBERTa position ids: cumsum over non-pad tokens, offset by padding_idx.
    not_pad = (input_ids != PAD_IDX).astype(jnp.int32)
    position_ids = jnp.cumsum(not_pad, axis=1) * not_pad + PAD_IDX
    we = jnp.take(params['word_emb'], input_ids, axis=0)       # [B, S, H]
    pe = jnp.take(params['pos_emb'], position_ids, axis=0)     # [B, S, H]
    te = params['type_emb'][0][None, None, :]                  # token_type_ids == 0
    x_emb = (we + pe + te).reshape(T, H)                       # f32 [T, H]

    # De-batched attention bias [T, T]: -1e9 where query/key are in different batch
    # rows or the key position is padded; 0 otherwise.
    batch_id = jnp.arange(T, dtype=jnp.int32) // S
    same_batch = batch_id[:, None] == batch_id[None, :]
    key_valid = attention_mask.reshape(T) > 0
    attn_bias = jnp.where(same_batch & key_valid[None, :],
                          0.0, -1e9).astype(jnp.float32)

    logits_pad = fused_forward(params, x_emb, attn_bias)       # [T, LBL_PAD]
    # <s> (CLS) token of each sequence, real label columns only.
    return logits_pad.reshape(B, S, LBL_PAD)[:, 0, :NUM_LABELS]


# ---------------------------- main ------------------------------------------------

if __name__ == "__main__":
    key = jax.random.PRNGKey(0)
    pkey, ikey = jax.random.split(key)
    params = init_params(pkey)

    input_ids = jax.random.randint(ikey, (B, S), 0, VOCAB, dtype=jnp.int32)
    attention_mask = jnp.ones((B, S), jnp.float32).at[1, 6:].set(0.0)
    # padded positions carry the pad token id (like a real tokenizer would emit)
    input_ids = jnp.where(attention_mask > 0, input_ids, PAD_IDX)

    logits = forward(params, input_ids, attention_mask)
    logits = jax.block_until_ready(logits)

    assert logits.shape == (B, NUM_LABELS)
    assert bool(jnp.all(jnp.isfinite(logits)))
    print("KERNEL_OK")
</pallas_src>

<mosaic_0001>
module attributes {stable_mosaic.version = 11 : i64} {
  func.func @fused_kernel(%arg0: memref<16x256xf32, #tpu.memory_space<vmem>>, %arg1: memref<16x16xf32, #tpu.memory_space<vmem>>, %arg2: memref<1x256xf32, #tpu.memory_space<vmem>>, %arg3: memref<1x256xf32, #tpu.memory_space<vmem>>, %arg4: memref<2x256x768xbf16, #tpu.memory_space<vmem>>, %arg5: memref<2x1x768xf32, #tpu.memory_space<vmem>>, %arg6: memref<2x256x256xbf16, #tpu.memory_space<vmem>>, %arg7: memref<2x1x256xf32, #tpu.memory_space<vmem>>, %arg8: memref<2x1x256xf32, #tpu.memory_space<vmem>>, %arg9: memref<2x1x256xf32, #tpu.memory_space<vmem>>, %arg10: memref<2x256x512xbf16, #tpu.memory_space<vmem>>, %arg11: memref<2x1x512xf32, #tpu.memory_space<vmem>>, %arg12: memref<2x512x256xbf16, #tpu.memory_space<vmem>>, %arg13: memref<2x1x256xf32, #tpu.memory_space<vmem>>, %arg14: memref<2x1x256xf32, #tpu.memory_space<vmem>>, %arg15: memref<2x1x256xf32, #tpu.memory_space<vmem>>, %arg16: memref<256x256xbf16, #tpu.memory_space<vmem>>, %arg17: memref<1x256xf32, #tpu.memory_space<vmem>>, %arg18: memref<256x128xbf16, #tpu.memory_space<vmem>>, %arg19: memref<1x128xf32, #tpu.memory_space<vmem>>, %arg20: memref<16x128xf32, #tpu.memory_space<vmem>>) attributes {dimension_semantics = [], scalar_prefetch = 0 : i64, scratch_operands = 0 : i64, tpu.core_type = #tpu.core_type<tc>} {
    %c0 = arith.constant 0 : index
    %c0_0 = arith.constant 0 : index
    %0 = vector.load %arg0[%c0, %c0_0] : memref<16x256xf32, #tpu.memory_space<vmem>>, vector<16x256xf32>
    %c0_1 = arith.constant 0 : index
    %c0_2 = arith.constant 0 : index
    %1 = vector.load %arg2[%c0_1, %c0_2] : memref<1x256xf32, #tpu.memory_space<vmem>>, vector<1x256xf32>
    %c0_3 = arith.constant 0 : index
    %c0_4 = arith.constant 0 : index
    %2 = vector.load %arg3[%c0_3, %c0_4] : memref<1x256xf32, #tpu.memory_space<vmem>>, vector<1x256xf32>
    %cst = arith.constant dense<0.000000e+00> : vector<16xf32>
    %3 = vector.multi_reduction <add>, %0, %cst [1] : vector<16x256xf32> to vector<16xf32>
    %4 = vector.shape_cast %3 : vector<16xf32> to vector<16x1xf32>
    %cst_5 = arith.constant 2.560000e+02 : f32
    %5 = vector.broadcast %cst_5 : f32 to vector<16x1xf32>
    %6 = arith.divf %4, %5 : vector<16x1xf32>
    %7 = vector.broadcast %6 : vector<16x1xf32> to vector<16x256xf32>
    %8 = arith.subf %0, %7 : vector<16x256xf32>
    %9 = arith.mulf %8, %8 : vector<16x256xf32>
    %cst_6 = arith.constant dense<0.000000e+00> : vector<16xf32>
    %10 = vector.multi_reduction <add>, %9, %cst_6 [1] : vector<16x256xf32> to vector<16xf32>
    %11 = vector.shape_cast %10 : vector<16xf32> to vector<16x1xf32>
    %cst_7 = arith.constant 2.560000e+02 : f32
    %12 = vector.broadcast %cst_7 : f32 to vector<16x1xf32>
    %13 = arith.divf %11, %12 : vector<16x1xf32>
    %14 = vector.broadcast %6 : vector<16x1xf32> to vector<16x256xf32>
    %15 = arith.subf %0, %14 : vector<16x256xf32>
    %cst_8 = arith.constant 9.99999974E-6 : f32
    %16 = vector.broadcast %cst_8 : f32 to vector<16x1xf32>
    %17 = arith.addf %13, %16 : vector<16x1xf32>
    %18 = math.rsqrt %17 : vector<16x1xf32>
    %19 = vector.broadcast %18 : vector<16x1xf32> to vector<16x256xf32>
    %20 = arith.mulf %15, %19 : vector<16x256xf32>
    %21 = vector.broadcast %1 : vector<1x256xf32> to vector<16x256xf32>
    %22 = arith.mulf %20, %21 : vector<16x256xf32>
    %23 = vector.broadcast %2 : vector<1x256xf32> to vector<16x256xf32>
    %24 = arith.addf %22, %23 : vector<16x256xf32>
    %c0_9 = arith.constant 0 : index
    %c0_10 = arith.constant 0 : index
    %25 = vector.load %arg1[%c0_9, %c0_10] : memref<16x16xf32, #tpu.memory_space<vmem>>, vector<16x16xf32>
    %26 = arith.truncf %24 : vector<16x256xf32> to vector<16x256xbf16>
    %c0_11 = arith.constant 0 : index
    %c0_12 = arith.constant 0 : index
    %c0_13 = arith.constant 0 : index
    %27 = vector.load %arg4[%c0_11, %c0_12, %c0_13] : memref<2x256x768xbf16, #tpu.memory_space<vmem>>, vector<1x256x768xbf16>
    %28 = vector.shape_cast %27 : vector<1x256x768xbf16> to vector<256x768xbf16>
    %cst_14 = arith.constant dense<0.000000e+00> : vector<16x768xf32>
    %29 = tpu.matmul %26, %28, %cst_14 {dimension_numbers = #tpu.dot_dimension_numbers<[1], [0], [0], [1], [0, 0, 1, 1], [], []>} : vector<16x256xbf16>, vector<256x768xbf16>, vector<16x768xf32> -> vector<16x768xf32>
    %c0_15 = arith.constant 0 : index
    %c0_16 = arith.constant 0 : index
    %c0_17 = arith.constant 0 : index
    %30 = vector.load %arg5[%c0_15, %c0_16, %c0_17] : memref<2x1x768xf32, #tpu.memory_space<vmem>>, vector<1x1x768xf32>
    %31 = vector.shape_cast %30 : vector<1x1x768xf32> to vector<1x768xf32>
    %32 = vector.broadcast %31 : vector<1x768xf32> to vector<16x768xf32>
    %33 = arith.addf %29, %32 : vector<16x768xf32>
    %34 = arith.truncf %33 : vector<16x768xf32> to vector<16x768xbf16>
    %35 = vector.extract_strided_slice %34 {offsets = [0, 0], sizes = [16, 128], strides = [1, 1]} : vector<16x768xbf16> to vector<16x128xbf16>
    %36 = vector.extract_strided_slice %34 {offsets = [0, 256], sizes = [16, 128], strides = [1, 1]} : vector<16x768xbf16> to vector<16x128xbf16>
    %37 = vector.extract_strided_slice %34 {offsets = [0, 512], sizes = [16, 128], strides = [1, 1]} : vector<16x768xbf16> to vector<16x128xbf16>
    %cst_18 = arith.constant dense<0.000000e+00> : vector<16x16xf32>
    %38 = tpu.matmul %35, %36, %cst_18 {dimension_numbers = #tpu.dot_dimension_numbers<[1], [1], [0], [0], [0, 0, 1, 0], [], []>} : vector<16x128xbf16>, vector<16x128xbf16>, vector<16x16xf32> -> vector<16x16xf32>
    %cst_19 = arith.constant 0.0883883461 : f32
    %39 = vector.broadcast %cst_19 : f32 to vector<16x16xf32>
    %40 = arith.mulf %38, %39 : vector<16x16xf32>
    %41 = arith.addf %40, %25 : vector<16x16xf32>
    %cst_20 = arith.constant dense<0xFF800000> : vector<16xf32>
    %42 = vector.multi_reduction <maximumf>, %41, %cst_20 [1] : vector<16x16xf32> to vector<16xf32>
    %43 = vector.shape_cast %42 : vector<16xf32> to vector<16x1xf32>
    %44 = vector.broadcast %43 : vector<16x1xf32> to vector<16x16xf32>
    %45 = arith.subf %41, %44 : vector<16x16xf32>
    %46 = math.exp %45 : vector<16x16xf32>
    %cst_21 = arith.constant dense<0.000000e+00> : vector<16xf32>
    %47 = vector.multi_reduction <add>, %46, %cst_21 [1] : vector<16x16xf32> to vector<16xf32>
    %48 = vector.shape_cast %47 : vector<16xf32> to vector<16x1xf32>
    %49 = tpu.reciprocal %48 {approx = true} : vector<16x1xf32> -> vector<16x1xf32>
    %50 = vector.broadcast %49 : vector<16x1xf32> to vector<16x16xf32>
    %51 = arith.mulf %46, %50 : vector<16x16xf32>
    %52 = arith.truncf %51 : vector<16x16xf32> to vector<16x16xbf16>
    %cst_22 = arith.constant dense<0.000000e+00> : vector<16x128xf32>
    %53 = tpu.matmul %52, %37, %cst_22 {dimension_numbers = #tpu.dot_dimension_numbers<[1], [0], [0], [1], [0, 0, 1, 1], [], []>} : vector<16x16xbf16>, vector<16x128xbf16>, vector<16x128xf32> -> vector<16x128xf32>
    %54 = vector.extract_strided_slice %34 {offsets = [0, 128], sizes = [16, 128], strides = [1, 1]} : vector<16x768xbf16> to vector<16x128xbf16>
    %55 = vector.extract_strided_slice %34 {offsets = [0, 384], sizes = [16, 128], strides = [1, 1]} : vector<16x768xbf16> to vector<16x128xbf16>
    %56 = vector.extract_strided_slice %34 {offsets = [0, 640], sizes = [16, 128], strides = [1, 1]} : vector<16x768xbf16> to vector<16x128xbf16>
    %cst_23 = arith.constant dense<0.000000e+00> : vector<16x16xf32>
    %57 = tpu.matmul %54, %55, %cst_23 {dimension_numbers = #tpu.dot_dimension_numbers<[1], [1], [0], [0], [0, 0, 1, 0], [], []>} : vector<16x128xbf16>, vector<16x128xbf16>, vector<16x16xf32> -> vector<16x16xf32>
    %cst_24 = arith.constant 0.0883883461 : f32
    %58 = vector.broadcast %cst_24 : f32 to vector<16x16xf32>
    %59 = arith.mulf %57, %58 : vector<16x16xf32>
    %60 = arith.addf %59, %25 : vector<16x16xf32>
    %cst_25 = arith.constant dense<0xFF800000> : vector<16xf32>
    %61 = vector.multi_reduction <maximumf>, %60, %cst_25 [1] : vector<16x16xf32> to vector<16xf32>
    %62 = vector.shape_cast %61 : vector<16xf32> to vector<16x1xf32>
    %63 = vector.broadcast %62 : vector<16x1xf32> to vector<16x16xf32>
    %64 = arith.subf %60, %63 : vector<16x16xf32>
    %65 = math.exp %64 : vector<16x16xf32>
    %cst_26 = arith.constant dense<0.000000e+00> : vector<16xf32>
    %66 = vector.multi_reduction <add>, %65, %cst_26 [1] : vector<16x16xf32> to vector<16xf32>
    %67 = vector.shape_cast %66 : vector<16xf32> to vector<16x1xf32>
    %68 = tpu.reciprocal %67 {approx = true} : vector<16x1xf32> -> vector<16x1xf32>
    %69 = vector.broadcast %68 : vector<16x1xf32> to vector<16x16xf32>
    %70 = arith.mulf %65, %69 : vector<16x16xf32>
    %71 = arith.truncf %70 : vector<16x16xf32> to vector<16x16xbf16>
    %cst_27 = arith.constant dense<0.000000e+00> : vector<16x128xf32>
    %72 = tpu.matmul %71, %56, %cst_27 {dimension_numbers = #tpu.dot_dimension_numbers<[1], [0], [0], [1], [0, 0, 1, 1], [], []>} : vector<16x16xbf16>, vector<16x128xbf16>, vector<16x128xf32> -> vector<16x128xf32>
    %73 = tpu.concatenate %53, %72 in 1 : vector<16x128xf32>, vector<16x128xf32> -> vector<16x256xf32>
    %74 = arith.truncf %73 : vector<16x256xf32> to vector<16x256xbf16>
    %c0_28 = arith.constant 0 : index
    %c0_29 = arith.constant 0 : index
    %c0_30 = arith.constant 0 : index
    %75 = vector.load %arg6[%c0_28, %c0_29, %c0_30] : memref<2x256x256xbf16, #tpu.memory_space<vmem>>, vector<1x256x256xbf16>
    %76 = vector.shape_cast %75 : vector<1x256x256xbf16> to vector<256x256xbf16>
    %cst_31 = arith.constant dense<0.000000e+00> : vector<16x256xf32>
    %77 = tpu.matmul %74, %76, %cst_31 {dimension_numbers = #tpu.dot_dimension_numbers<[1], [0], [0], [1], [0, 0, 1, 1], [], []>} : vector<16x256xbf16>, vector<256x256xbf16>, vector<16x256xf32> -> vector<16x256xf32>
    %c0_32 = arith.constant 0 : index
    %c0_33 = arith.constant 0 : index
    %c0_34 = arith.constant 0 : index
    %78 = vector.load %arg7[%c0_32, %c0_33, %c0_34] : memref<2x1x256xf32, #tpu.memory_space<vmem>>, vector<1x1x256xf32>
    %79 = vector.shape_cast %78 : vector<1x1x256xf32> to vector<1x256xf32>
    %80 = vector.broadcast %79 : vector<1x256xf32> to vector<16x256xf32>
    %81 = arith.addf %77, %80 : vector<16x256xf32>
    %82 = arith.addf %24, %81 : vector<16x256xf32>
    %c0_35 = arith.constant 0 : index
    %c0_36 = arith.constant 0 : index
    %c0_37 = arith.constant 0 : index
    %83 = vector.load %arg8[%c0_35, %c0_36, %c0_37] : memref<2x1x256xf32, #tpu.memory_space<vmem>>, vector<1x1x256xf32>
    %84 = vector.shape_cast %83 : vector<1x1x256xf32> to vector<1x256xf32>
    %c0_38 = arith.constant 0 : index
    %c0_39 = arith.constant 0 : index
    %c0_40 = arith.constant 0 : index
    %85 = vector.load %arg9[%c0_38, %c0_39, %c0_40] : memref<2x1x256xf32, #tpu.memory_space<vmem>>, vector<1x1x256xf32>
    %86 = vector.shape_cast %85 : vector<1x1x256xf32> to vector<1x256xf32>
    %cst_41 = arith.constant dense<0.000000e+00> : vector<16xf32>
    %87 = vector.multi_reduction <add>, %82, %cst_41 [1] : vector<16x256xf32> to vector<16xf32>
    %88 = vector.shape_cast %87 : vector<16xf32> to vector<16x1xf32>
    %cst_42 = arith.constant 2.560000e+02 : f32
    %89 = vector.broadcast %cst_42 : f32 to vector<16x1xf32>
    %90 = arith.divf %88, %89 : vector<16x1xf32>
    %91 = vector.broadcast %90 : vector<16x1xf32> to vector<16x256xf32>
    %92 = arith.subf %82, %91 : vector<16x256xf32>
    %93 = arith.mulf %92, %92 : vector<16x256xf32>
    %cst_43 = arith.constant dense<0.000000e+00> : vector<16xf32>
    %94 = vector.multi_reduction <add>, %93, %cst_43 [1] : vector<16x256xf32> to vector<16xf32>
    %95 = vector.shape_cast %94 : vector<16xf32> to vector<16x1xf32>
    %cst_44 = arith.constant 2.560000e+02 : f32
    %96 = vector.broadcast %cst_44 : f32 to vector<16x1xf32>
    %97 = arith.divf %95, %96 : vector<16x1xf32>
    %98 = vector.broadcast %90 : vector<16x1xf32> to vector<16x256xf32>
    %99 = arith.subf %82, %98 : vector<16x256xf32>
    %cst_45 = arith.constant 9.99999974E-6 : f32
    %100 = vector.broadcast %cst_45 : f32 to vector<16x1xf32>
    %101 = arith.addf %97, %100 : vector<16x1xf32>
    %102 = math.rsqrt %101 : vector<16x1xf32>
    %103 = vector.broadcast %102 : vector<16x1xf32> to vector<16x256xf32>
    %104 = arith.mulf %99, %103 : vector<16x256xf32>
    %105 = vector.broadcast %84 : vector<1x256xf32> to vector<16x256xf32>
    %106 = arith.mulf %104, %105 : vector<16x256xf32>
    %107 = vector.broadcast %86 : vector<1x256xf32> to vector<16x256xf32>
    %108 = arith.addf %106, %107 : vector<16x256xf32>
    %109 = arith.truncf %108 : vector<16x256xf32> to vector<16x256xbf16>
    %c0_46 = arith.constant 0 : index
    %c0_47 = arith.constant 0 : index
    %c0_48 = arith.constant 0 : index
    %110 = vector.load %arg10[%c0_46, %c0_47, %c0_48] : memref<2x256x512xbf16, #tpu.memory_space<vmem>>, vector<1x256x512xbf16>
    %111 = vector.shape_cast %110 : vector<1x256x512xbf16> to vector<256x512xbf16>
    %cst_49 = arith.constant dense<0.000000e+00> : vector<16x512xf32>
    %112 = tpu.matmul %109, %111, %cst_49 {dimension_numbers = #tpu.dot_dimension_numbers<[1], [0], [0], [1], [0, 0, 1, 1], [], []>} : vector<16x256xbf16>, vector<256x512xbf16>, vector<16x512xf32> -> vector<16x512xf32>
    %c0_50 = arith.constant 0 : index
    %c0_51 = arith.constant 0 : index
    %c0_52 = arith.constant 0 : index
    %113 = vector.load %arg11[%c0_50, %c0_51, %c0_52] : memref<2x1x512xf32, #tpu.memory_space<vmem>>, vector<1x1x512xf32>
    %114 = vector.shape_cast %113 : vector<1x1x512xf32> to vector<1x512xf32>
    %115 = vector.broadcast %114 : vector<1x512xf32> to vector<16x512xf32>
    %116 = arith.addf %112, %115 : vector<16x512xf32>
    %117 = arith.mulf %116, %116 : vector<16x512xf32>
    %118 = arith.mulf %116, %117 : vector<16x512xf32>
    %cst_53 = arith.constant 4.471500e-02 : f32
    %119 = vector.broadcast %cst_53 : f32 to vector<16x512xf32>
    %120 = arith.mulf %119, %118 : vector<16x512xf32>
    %121 = arith.addf %116, %120 : vector<16x512xf32>
    %cst_54 = arith.constant 0.797884583 : f32
    %122 = vector.broadcast %cst_54 : f32 to vector<16x512xf32>
    %123 = arith.mulf %122, %121 : vector<16x512xf32>
    %124 = math.tanh %123 : vector<16x512xf32>
    %cst_55 = arith.constant 1.000000e+00 : f32
    %125 = vector.broadcast %cst_55 : f32 to vector<16x512xf32>
    %126 = arith.addf %125, %124 : vector<16x512xf32>
    %cst_56 = arith.constant 5.000000e-01 : f32
    %127 = vector.broadcast %cst_56 : f32 to vector<16x512xf32>
    %128 = arith.mulf %127, %126 : vector<16x512xf32>
    %129 = arith.mulf %116, %128 : vector<16x512xf32>
    %130 = arith.truncf %129 : vector<16x512xf32> to vector<16x512xbf16>
    %c0_57 = arith.constant 0 : index
    %c0_58 = arith.constant 0 : index
    %c0_59 = arith.constant 0 : index
    %131 = vector.load %arg12[%c0_57, %c0_58, %c0_59] : memref<2x512x256xbf16, #tpu.memory_space<vmem>>, vector<1x512x256xbf16>
    %132 = vector.shape_cast %131 : vector<1x512x256xbf16> to vector<512x256xbf16>
    %cst_60 = arith.constant dense<0.000000e+00> : vector<16x256xf32>
    %133 = tpu.matmul %130, %132, %cst_60 {dimension_numbers = #tpu.dot_dimension_numbers<[1], [0], [0], [1], [0, 0, 1, 1], [], []>} : vector<16x512xbf16>, vector<512x256xbf16>, vector<16x256xf32> -> vector<16x256xf32>
    %c0_61 = arith.constant 0 : index
    %c0_62 = arith.constant 0 : index
    %c0_63 = arith.constant 0 : index
    %134 = vector.load %arg13[%c0_61, %c0_62, %c0_63] : memref<2x1x256xf32, #tpu.memory_space<vmem>>, vector<1x1x256xf32>
    %135 = vector.shape_cast %134 : vector<1x1x256xf32> to vector<1x256xf32>
    %136 = vector.broadcast %135 : vector<1x256xf32> to vector<16x256xf32>
    %137 = arith.addf %133, %136 : vector<16x256xf32>
    %138 = arith.addf %108, %137 : vector<16x256xf32>
    %c0_64 = arith.constant 0 : index
    %c0_65 = arith.constant 0 : index
    %c0_66 = arith.constant 0 : index
    %139 = vector.load %arg14[%c0_64, %c0_65, %c0_66] : memref<2x1x256xf32, #tpu.memory_space<vmem>>, vector<1x1x256xf32>
    %140 = vector.shape_cast %139 : vector<1x1x256xf32> to vector<1x256xf32>
    %c0_67 = arith.constant 0 : index
    %c0_68 = arith.constant 0 : index
    %c0_69 = arith.constant 0 : index
    %141 = vector.load %arg15[%c0_67, %c0_68, %c0_69] : memref<2x1x256xf32, #tpu.memory_space<vmem>>, vector<1x1x256xf32>
    %142 = vector.shape_cast %141 : vector<1x1x256xf32> to vector<1x256xf32>
    %cst_70 = arith.constant dense<0.000000e+00> : vector<16xf32>
    %143 = vector.multi_reduction <add>, %138, %cst_70 [1] : vector<16x256xf32> to vector<16xf32>
    %144 = vector.shape_cast %143 : vector<16xf32> to vector<16x1xf32>
    %cst_71 = arith.constant 2.560000e+02 : f32
    %145 = vector.broadcast %cst_71 : f32 to vector<16x1xf32>
    %146 = arith.divf %144, %145 : vector<16x1xf32>
    %147 = vector.broadcast %146 : vector<16x1xf32> to vector<16x256xf32>
    %148 = arith.subf %138, %147 : vector<16x256xf32>
    %149 = arith.mulf %148, %148 : vector<16x256xf32>
    %cst_72 = arith.constant dense<0.000000e+00> : vector<16xf32>
    %150 = vector.multi_reduction <add>, %149, %cst_72 [1] : vector<16x256xf32> to vector<16xf32>
    %151 = vector.shape_cast %150 : vector<16xf32> to vector<16x1xf32>
    %cst_73 = arith.constant 2.560000e+02 : f32
    %152 = vector.broadcast %cst_73 : f32 to vector<16x1xf32>
    %153 = arith.divf %151, %152 : vector<16x1xf32>
    %154 = vector.broadcast %146 : vector<16x1xf32> to vector<16x256xf32>
    %155 = arith.subf %138, %154 : vector<16x256xf32>
    %cst_74 = arith.constant 9.99999974E-6 : f32
    %156 = vector.broadcast %cst_74 : f32 to vector<16x1xf32>
    %157 = arith.addf %153, %156 : vector<16x1xf32>
    %158 = math.rsqrt %157 : vector<16x1xf32>
    %159 = vector.broadcast %158 : vector<16x1xf32> to vector<16x256xf32>
    %160 = arith.mulf %155, %159 : vector<16x256xf32>
    %161 = vector.broadcast %140 : vector<1x256xf32> to vector<16x256xf32>
    %162 = arith.mulf %160, %161 : vector<16x256xf32>
    %163 = vector.broadcast %142 : vector<1x256xf32> to vector<16x256xf32>
    %164 = arith.addf %162, %163 : vector<16x256xf32>
    %165 = arith.truncf %164 : vector<16x256xf32> to vector<16x256xbf16>
    %c1 = arith.constant 1 : index
    %c0_75 = arith.constant 0 : index
    %c0_76 = arith.constant 0 : index
    %166 = vector.load %arg4[%c1, %c0_75, %c0_76] : memref<2x256x768xbf16, #tpu.memory_space<vmem>>, vector<1x256x768xbf16>
    %167 = vector.shape_cast %166 : vector<1x256x768xbf16> to vector<256x768xbf16>
    %cst_77 = arith.constant dense<0.000000e+00> : vector<16x768xf32>
    %168 = tpu.matmul %165, %167, %cst_77 {dimension_numbers = #tpu.dot_dimension_numbers<[1], [0], [0], [1], [0, 0, 1, 1], [], []>} : vector<16x256xbf16>, vector<256x768xbf16>, vector<16x768xf32> -> vector<16x768xf32>
    %c1_78 = arith.constant 1 : index
    %c0_79 = arith.constant 0 : index
    %c0_80 = arith.constant 0 : index
    %169 = vector.load %arg5[%c1_78, %c0_79, %c0_80] : memref<2x1x768xf32, #tpu.memory_space<vmem>>, vector<1x1x768xf32>
    %170 = vector.shape_cast %169 : vector<1x1x768xf32> to vector<1x768xf32>
    %171 = vector.broadcast %170 : vector<1x768xf32> to vector<16x768xf32>
    %172 = arith.addf %168, %171 : vector<16x768xf32>
    %173 = arith.truncf %172 : vector<16x768xf32> to vector<16x768xbf16>
    %174 = vector.extract_strided_slice %173 {offsets = [0, 0], sizes = [16, 128], strides = [1, 1]} : vector<16x768xbf16> to vector<16x128xbf16>
    %175 = vector.extract_strided_slice %173 {offsets = [0, 256], sizes = [16, 128], strides = [1, 1]} : vector<16x768xbf16> to vector<16x128xbf16>
    %176 = vector.extract_strided_slice %173 {offsets = [0, 512], sizes = [16, 128], strides = [1, 1]} : vector<16x768xbf16> to vector<16x128xbf16>
    %cst_81 = arith.constant dense<0.000000e+00> : vector<16x16xf32>
    %177 = tpu.matmul %174, %175, %cst_81 {dimension_numbers = #tpu.dot_dimension_numbers<[1], [1], [0], [0], [0, 0, 1, 0], [], []>} : vector<16x128xbf16>, vector<16x128xbf16>, vector<16x16xf32> -> vector<16x16xf32>
    %cst_82 = arith.constant 0.0883883461 : f32
    %178 = vector.broadcast %cst_82 : f32 to vector<16x16xf32>
    %179 = arith.mulf %177, %178 : vector<16x16xf32>
    %180 = arith.addf %179, %25 : vector<16x16xf32>
    %cst_83 = arith.constant dense<0xFF800000> : vector<16xf32>
    %181 = vector.multi_reduction <maximumf>, %180, %cst_83 [1] : vector<16x16xf32> to vector<16xf32>
    %182 = vector.shape_cast %181 : vector<16xf32> to vector<16x1xf32>
    %183 = vector.broadcast %182 : vector<16x1xf32> to vector<16x16xf32>
    %184 = arith.subf %180, %183 : vector<16x16xf32>
    %185 = math.exp %184 : vector<16x16xf32>
    %cst_84 = arith.constant dense<0.000000e+00> : vector<16xf32>
    %186 = vector.multi_reduction <add>, %185, %cst_84 [1] : vector<16x16xf32> to vector<16xf32>
    %187 = vector.shape_cast %186 : vector<16xf32> to vector<16x1xf32>
    %188 = tpu.reciprocal %187 {approx = true} : vector<16x1xf32> -> vector<16x1xf32>
    %189 = vector.broadcast %188 : vector<16x1xf32> to vector<16x16xf32>
    %190 = arith.mulf %185, %189 : vector<16x16xf32>
    %191 = arith.truncf %190 : vector<16x16xf32> to vector<16x16xbf16>
    %cst_85 = arith.constant dense<0.000000e+00> : vector<16x128xf32>
    %192 = tpu.matmul %191, %176, %cst_85 {dimension_numbers = #tpu.dot_dimension_numbers<[1], [0], [0], [1], [0, 0, 1, 1], [], []>} : vector<16x16xbf16>, vector<16x128xbf16>, vector<16x128xf32> -> vector<16x128xf32>
    %193 = vector.extract_strided_slice %173 {offsets = [0, 128], sizes = [16, 128], strides = [1, 1]} : vector<16x768xbf16> to vector<16x128xbf16>
    %194 = vector.extract_strided_slice %173 {offsets = [0, 384], sizes = [16, 128], strides = [1, 1]} : vector<16x768xbf16> to vector<16x128xbf16>
    %195 = vector.extract_strided_slice %173 {offsets = [0, 640], sizes = [16, 128], strides = [1, 1]} : vector<16x768xbf16> to vector<16x128xbf16>
    %cst_86 = arith.constant dense<0.000000e+00> : vector<16x16xf32>
    %196 = tpu.matmul %193, %194, %cst_86 {dimension_numbers = #tpu.dot_dimension_numbers<[1], [1], [0], [0], [0, 0, 1, 0], [], []>} : vector<16x128xbf16>, vector<16x128xbf16>, vector<16x16xf32> -> vector<16x16xf32>
    %cst_87 = arith.constant 0.0883883461 : f32
    %197 = vector.broadcast %cst_87 : f32 to vector<16x16xf32>
    %198 = arith.mulf %196, %197 : vector<16x16xf32>
    %199 = arith.addf %198, %25 : vector<16x16xf32>
    %cst_88 = arith.constant dense<0xFF800000> : vector<16xf32>
    %200 = vector.multi_reduction <maximumf>, %199, %cst_88 [1] : vector<16x16xf32> to vector<16xf32>
    %201 = vector.shape_cast %200 : vector<16xf32> to vector<16x1xf32>
    %202 = vector.broadcast %201 : vector<16x1xf32> to vector<16x16xf32>
    %203 = arith.subf %199, %202 : vector<16x16xf32>
    %204 = math.exp %203 : vector<16x16xf32>
    %cst_89 = arith.constant dense<0.000000e+00> : vector<16xf32>
    %205 = vector.multi_reduction <add>, %204, %cst_89 [1] : vector<16x16xf32> to vector<16xf32>
    %206 = vector.shape_cast %205 : vector<16xf32> to vector<16x1xf32>
    %207 = tpu.reciprocal %206 {approx = true} : vector<16x1xf32> -> vector<16x1xf32>
    %208 = vector.broadcast %207 : vector<16x1xf32> to vector<16x16xf32>
    %209 = arith.mulf %204, %208 : vector<16x16xf32>
    %210 = arith.truncf %209 : vector<16x16xf32> to vector<16x16xbf16>
    %cst_90 = arith.constant dense<0.000000e+00> : vector<16x128xf32>
    %211 = tpu.matmul %210, %195, %cst_90 {dimension_numbers = #tpu.dot_dimension_numbers<[1], [0], [0], [1], [0, 0, 1, 1], [], []>} : vector<16x16xbf16>, vector<16x128xbf16>, vector<16x128xf32> -> vector<16x128xf32>
    %212 = tpu.concatenate %192, %211 in 1 : vector<16x128xf32>, vector<16x128xf32> -> vector<16x256xf32>
    %213 = arith.truncf %212 : vector<16x256xf32> to vector<16x256xbf16>
    %c1_91 = arith.constant 1 : index
    %c0_92 = arith.constant 0 : index
    %c0_93 = arith.constant 0 : index
    %214 = vector.load %arg6[%c1_91, %c0_92, %c0_93] : memref<2x256x256xbf16, #tpu.memory_space<vmem>>, vector<1x256x256xbf16>
    %215 = vector.shape_cast %214 : vector<1x256x256xbf16> to vector<256x256xbf16>
    %cst_94 = arith.constant dense<0.000000e+00> : vector<16x256xf32>
    %216 = tpu.matmul %213, %215, %cst_94 {dimension_numbers = #tpu.dot_dimension_numbers<[1], [0], [0], [1], [0, 0, 1, 1], [], []>} : vector<16x256xbf16>, vector<256x256xbf16>, vector<16x256xf32> -> vector<16x256xf32>
    %c1_95 = arith.constant 1 : index
    %c0_96 = arith.constant 0 : index
    %c0_97 = arith.constant 0 : index
    %217 = vector.load %arg7[%c1_95, %c0_96, %c0_97] : memref<2x1x256xf32, #tpu.memory_space<vmem>>, vector<1x1x256xf32>
    %218 = vector.shape_cast %217 : vector<1x1x256xf32> to vector<1x256xf32>
    %219 = vector.broadcast %218 : vector<1x256xf32> to vector<16x256xf32>
    %220 = arith.addf %216, %219 : vector<16x256xf32>
    %221 = arith.addf %164, %220 : vector<16x256xf32>
    %c1_98 = arith.constant 1 : index
    %c0_99 = arith.constant 0 : index
    %c0_100 = arith.constant 0 : index
    %222 = vector.load %arg8[%c1_98, %c0_99, %c0_100] : memref<2x1x256xf32, #tpu.memory_space<vmem>>, vector<1x1x256xf32>
    %223 = vector.shape_cast %222 : vector<1x1x256xf32> to vector<1x256xf32>
    %c1_101 = arith.constant 1 : index
    %c0_102 = arith.constant 0 : index
    %c0_103 = arith.constant 0 : index
    %224 = vector.load %arg9[%c1_101, %c0_102, %c0_103] : memref<2x1x256xf32, #tpu.memory_space<vmem>>, vector<1x1x256xf32>
    %225 = vector.shape_cast %224 : vector<1x1x256xf32> to vector<1x256xf32>
    %cst_104 = arith.constant dense<0.000000e+00> : vector<16xf32>
    %226 = vector.multi_reduction <add>, %221, %cst_104 [1] : vector<16x256xf32> to vector<16xf32>
    %227 = vector.shape_cast %226 : vector<16xf32> to vector<16x1xf32>
    %cst_105 = arith.constant 2.560000e+02 : f32
    %228 = vector.broadcast %cst_105 : f32 to vector<16x1xf32>
    %229 = arith.divf %227, %228 : vector<16x1xf32>
    %230 = vector.broadcast %229 : vector<16x1xf32> to vector<16x256xf32>
    %231 = arith.subf %221, %230 : vector<16x256xf32>
    %232 = arith.mulf %231, %231 : vector<16x256xf32>
    %cst_106 = arith.constant dense<0.000000e+00> : vector<16xf32>
    %233 = vector.multi_reduction <add>, %232, %cst_106 [1] : vector<16x256xf32> to vector<16xf32>
    %234 = vector.shape_cast %233 : vector<16xf32> to vector<16x1xf32>
    %cst_107 = arith.constant 2.560000e+02 : f32
    %235 = vector.broadcast %cst_107 : f32 to vector<16x1xf32>
    %236 = arith.divf %234, %235 : vector<16x1xf32>
    %237 = vector.broadcast %229 : vector<16x1xf32> to vector<16x256xf32>
    %238 = arith.subf %221, %237 : vector<16x256xf32>
    %cst_108 = arith.constant 9.99999974E-6 : f32
    %239 = vector.broadcast %cst_108 : f32 to vector<16x1xf32>
    %240 = arith.addf %236, %239 : vector<16x1xf32>
    %241 = math.rsqrt %240 : vector<16x1xf32>
    %242 = vector.broadcast %241 : vector<16x1xf32> to vector<16x256xf32>
    %243 = arith.mulf %238, %242 : vector<16x256xf32>
    %244 = vector.broadcast %223 : vector<1x256xf32> to vector<16x256xf32>
    %245 = arith.mulf %243, %244 : vector<16x256xf32>
    %246 = vector.broadcast %225 : vector<1x256xf32> to vector<16x256xf32>
    %247 = arith.addf %245, %246 : vector<16x256xf32>
    %248 = arith.truncf %247 : vector<16x256xf32> to vector<16x256xbf16>
    %c1_109 = arith.constant 1 : index
    %c0_110 = arith.constant 0 : index
    %c0_111 = arith.constant 0 : index
    %249 = vector.load %arg10[%c1_109, %c0_110, %c0_111] : memref<2x256x512xbf16, #tpu.memory_space<vmem>>, vector<1x256x512xbf16>
    %250 = vector.shape_cast %249 : vector<1x256x512xbf16> to vector<256x512xbf16>
    %cst_112 = arith.constant dense<0.000000e+00> : vector<16x512xf32>
    %251 = tpu.matmul %248, %250, %cst_112 {dimension_numbers = #tpu.dot_dimension_numbers<[1], [0], [0], [1], [0, 0, 1, 1], [], []>} : vector<16x256xbf16>, vector<256x512xbf16>, vector<16x512xf32> -> vector<16x512xf32>
    %c1_113 = arith.constant 1 : index
    %c0_114 = arith.constant 0 : index
    %c0_115 = arith.constant 0 : index
    %252 = vector.load %arg11[%c1_113, %c0_114, %c0_115] : memref<2x1x512xf32, #tpu.memory_space<vmem>>, vector<1x1x512xf32>
    %253 = vector.shape_cast %252 : vector<1x1x512xf32> to vector<1x512xf32>
    %254 = vector.broadcast %253 : vector<1x512xf32> to vector<16x512xf32>
    %255 = arith.addf %251, %254 : vector<16x512xf32>
    %256 = arith.mulf %255, %255 : vector<16x512xf32>
    %257 = arith.mulf %255, %256 : vector<16x512xf32>
    %cst_116 = arith.constant 4.471500e-02 : f32
    %258 = vector.broadcast %cst_116 : f32 to vector<16x512xf32>
    %259 = arith.mulf %258, %257 : vector<16x512xf32>
    %260 = arith.addf %255, %259 : vector<16x512xf32>
    %cst_117 = arith.constant 0.797884583 : f32
    %261 = vector.broadcast %cst_117 : f32 to vector<16x512xf32>
    %262 = arith.mulf %261, %260 : vector<16x512xf32>
    %263 = math.tanh %262 : vector<16x512xf32>
    %cst_118 = arith.constant 1.000000e+00 : f32
    %264 = vector.broadcast %cst_118 : f32 to vector<16x512xf32>
    %265 = arith.addf %264, %263 : vector<16x512xf32>
    %cst_119 = arith.constant 5.000000e-01 : f32
    %266 = vector.broadcast %cst_119 : f32 to vector<16x512xf32>
    %267 = arith.mulf %266, %265 : vector<16x512xf32>
    %268 = arith.mulf %255, %267 : vector<16x512xf32>
    %269 = arith.truncf %268 : vector<16x512xf32> to vector<16x512xbf16>
    %c1_120 = arith.constant 1 : index
    %c0_121 = arith.constant 0 : index
    %c0_122 = arith.constant 0 : index
    %270 = vector.load %arg12[%c1_120, %c0_121, %c0_122] : memref<2x512x256xbf16, #tpu.memory_space<vmem>>, vector<1x512x256xbf16>
    %271 = vector.shape_cast %270 : vector<1x512x256xbf16> to vector<512x256xbf16>
    %cst_123 = arith.constant dense<0.000000e+00> : vector<16x256xf32>
    %272 = tpu.matmul %269, %271, %cst_123 {dimension_numbers = #tpu.dot_dimension_numbers<[1], [0], [0], [1], [0, 0, 1, 1], [], []>} : vector<16x512xbf16>, vector<512x256xbf16>, vector<16x256xf32> -> vector<16x256xf32>
    %c1_124 = arith.constant 1 : index
    %c0_125 = arith.constant 0 : index
    %c0_126 = arith.constant 0 : index
    %273 = vector.load %arg13[%c1_124, %c0_125, %c0_126] : memref<2x1x256xf32, #tpu.memory_space<vmem>>, vector<1x1x256xf32>
    %274 = vector.shape_cast %273 : vector<1x1x256xf32> to vector<1x256xf32>
    %275 = vector.broadcast %274 : vector<1x256xf32> to vector<16x256xf32>
    %276 = arith.addf %272, %275 : vector<16x256xf32>
    %277 = arith.addf %247, %276 : vector<16x256xf32>
    %c1_127 = arith.constant 1 : index
    %c0_128 = arith.constant 0 : index
    %c0_129 = arith.constant 0 : index
    %278 = vector.load %arg14[%c1_127, %c0_128, %c0_129] : memref<2x1x256xf32, #tpu.memory_space<vmem>>, vector<1x1x256xf32>
    %279 = vector.shape_cast %278 : vector<1x1x256xf32> to vector<1x256xf32>
    %c1_130 = arith.constant 1 : index
    %c0_131 = arith.constant 0 : index
    %c0_132 = arith.constant 0 : index
    %280 = vector.load %arg15[%c1_130, %c0_131, %c0_132] : memref<2x1x256xf32, #tpu.memory_space<vmem>>, vector<1x1x256xf32>
    %281 = vector.shape_cast %280 : vector<1x1x256xf32> to vector<1x256xf32>
    %cst_133 = arith.constant dense<0.000000e+00> : vector<16xf32>
    %282 = vector.multi_reduction <add>, %277, %cst_133 [1] : vector<16x256xf32> to vector<16xf32>
    %283 = vector.shape_cast %282 : vector<16xf32> to vector<16x1xf32>
    %cst_134 = arith.constant 2.560000e+02 : f32
    %284 = vector.broadcast %cst_134 : f32 to vector<16x1xf32>
    %285 = arith.divf %283, %284 : vector<16x1xf32>
    %286 = vector.broadcast %285 : vector<16x1xf32> to vector<16x256xf32>
    %287 = arith.subf %277, %286 : vector<16x256xf32>
    %288 = arith.mulf %287, %287 : vector<16x256xf32>
    %cst_135 = arith.constant dense<0.000000e+00> : vector<16xf32>
    %289 = vector.multi_reduction <add>, %288, %cst_135 [1] : vector<16x256xf32> to vector<16xf32>
    %290 = vector.shape_cast %289 : vector<16xf32> to vector<16x1xf32>
    %cst_136 = arith.constant 2.560000e+02 : f32
    %291 = vector.broadcast %cst_136 : f32 to vector<16x1xf32>
    %292 = arith.divf %290, %291 : vector<16x1xf32>
    %293 = vector.broadcast %285 : vector<16x1xf32> to vector<16x256xf32>
    %294 = arith.subf %277, %293 : vector<16x256xf32>
    %cst_137 = arith.constant 9.99999974E-6 : f32
    %295 = vector.broadcast %cst_137 : f32 to vector<16x1xf32>
    %296 = arith.addf %292, %295 : vector<16x1xf32>
    %297 = math.rsqrt %296 : vector<16x1xf32>
    %298 = vector.broadcast %297 : vector<16x1xf32> to vector<16x256xf32>
    %299 = arith.mulf %294, %298 : vector<16x256xf32>
    %300 = vector.broadcast %279 : vector<1x256xf32> to vector<16x256xf32>
    %301 = arith.mulf %299, %300 : vector<16x256xf32>
    %302 = vector.broadcast %281 : vector<1x256xf32> to vector<16x256xf32>
    %303 = arith.addf %301, %302 : vector<16x256xf32>
    %304 = arith.truncf %303 : vector<16x256xf32> to vector<16x256xbf16>
    %c0_138 = arith.constant 0 : index
    %c0_139 = arith.constant 0 : index
    %305 = vector.load %arg16[%c0_138, %c0_139] : memref<256x256xbf16, #tpu.memory_space<vmem>>, vector<256x256xbf16>
    %cst_140 = arith.constant dense<0.000000e+00> : vector<16x256xf32>
    %306 = tpu.matmul %304, %305, %cst_140 {dimension_numbers = #tpu.dot_dimension_numbers<[1], [0], [0], [1], [0, 0, 1, 1], [], []>} : vector<16x256xbf16>, vector<256x256xbf16>, vector<16x256xf32> -> vector<16x256xf32>
    %c0_141 = arith.constant 0 : index
    %c0_142 = arith.constant 0 : index
    %307 = vector.load %arg17[%c0_141, %c0_142] : memref<1x256xf32, #tpu.memory_space<vmem>>, vector<1x256xf32>
    %308 = vector.broadcast %307 : vector<1x256xf32> to vector<16x256xf32>
    %309 = arith.addf %306, %308 : vector<16x256xf32>
    %310 = math.tanh %309 : vector<16x256xf32>
    %311 = arith.truncf %310 : vector<16x256xf32> to vector<16x256xbf16>
    %c0_143 = arith.constant 0 : index
    %c0_144 = arith.constant 0 : index
    %312 = vector.load %arg18[%c0_143, %c0_144] : memref<256x128xbf16, #tpu.memory_space<vmem>>, vector<256x128xbf16>
    %cst_145 = arith.constant dense<0.000000e+00> : vector<16x128xf32>
    %313 = tpu.matmul %311, %312, %cst_145 {dimension_numbers = #tpu.dot_dimension_numbers<[1], [0], [0], [1], [0, 0, 1, 1], [], []>} : vector<16x256xbf16>, vector<256x128xbf16>, vector<16x128xf32> -> vector<16x128xf32>
    %c0_146 = arith.constant 0 : index
    %c0_147 = arith.constant 0 : index
    %314 = vector.load %arg19[%c0_146, %c0_147] : memref<1x128xf32, #tpu.memory_space<vmem>>, vector<1x128xf32>
    %315 = vector.broadcast %314 : vector<1x128xf32> to vector<16x128xf32>
    %316 = arith.addf %313, %315 : vector<16x128xf32>
    %c0_148 = arith.constant 0 : index
    %c0_149 = arith.constant 0 : index
    %317 = vector.load %arg20[%c0_148, %c0_149] : memref<16x128xf32, #tpu.memory_space<vmem>>, vector<16x128xf32>
    tpu.vector_store %arg20[%c0_148, %c0_149], %316 {strides = array<i32>} : memref<16x128xf32, #tpu.memory_space<vmem>>, vector<16x128xf32>,
    return
  }
}

</mosaic_0001>

<bundles_post_ra>
// kernel: forward.1
= control target key start
LH: loop header
LB: loop body
LE: loop exit
PB: predicated region body
PF: predicated region fallthrough
CT: control target
= control target key end

     0   :  { %s8542_s0 = inlined_call_operand.vmem [shape: f32[16,256], index: 0, kind: input, shape index: {}]   ;;  %s8543_s1 = inlined_call_operand.vmem [shape: f32[16,16], index: 1, kind: input, shape index: {}]   ;;  %s8544_s2 = inlined_call_operand.hbm [shape: f32[1,256], index: 2, kind: input, shape index: {}]   ;;  %s8545_s3 = inlined_call_operand.vmem [shape: f32[1,256], index: 3, kind: input, shape index: {}]   ;;  %s8546_s4 = inlined_call_operand.hbm [shape: bf16[2,256,768], index: 4, kind: input, shape index: {}]   ;;  %s8547_s5 = inlined_call_operand.vmem [shape: f32[2,1,768], index: 5, kind: input, shape index: {}]   ;;  %s8548_s6 = inlined_call_operand.vmem [shape: bf16[2,256,256], index: 6, kind: input, shape index: {}]   ;;  %s8549_s7 = inlined_call_operand.vmem [shape: f32[2,1,256], index: 7, kind: input, shape index: {}]   ;;  %s8550_s8 = inlined_call_operand.hbm [shape: f32[2,1,256], index: 8, kind: input, shape index: {}]   ;;  %s8551_s9 = inlined_call_operand.hbm [shape: f32[2,1,256], index: 9, kind: input, shape index: {}]   ;;  %s8552_s10 = inlined_call_operand.hbm [shape: bf16[2,256,512], index: 10, kind: input, shape index: {}]   ;;  %s8553_s11 = inlined_call_operand.vmem [shape: f32[2,1,512], index: 11, kind: input, shape index: {}]   ;;  %s8554_s12 = inlined_call_operand.hbm [shape: bf16[2,512,256], index: 12, kind: input, shape index: {}]   ;;  %s8555_s13 = inlined_call_operand.vmem [shape: f32[2,1,256], index: 13, kind: input, shape index: {}]   ;;  %s8556_s14 = inlined_call_operand.hbm [shape: f32[2,1,256], index: 14, kind: input, shape index: {}]   ;;  %s8557_s15 = inlined_call_operand.hbm [shape: f32[2,1,256], index: 15, kind: input, shape index: {}]   ;;  %s8558_s16 = inlined_call_operand.vmem [shape: bf16[256,256], index: 16, kind: input, shape index: {}]   ;;  %s8559_s17 = inlined_call_operand.hbm [shape: f32[1,256], index: 17, kind: input, shape index: {}]   ;;  %s8560_s18 = inlined_call_operand.hbm [shape: bf16[256,128], index: 18, kind: input, shape index: {}]   ;;  %s8561_s19 = inlined_call_operand.vmem [shape: f32[1,128], index: 19, kind: input, shape index: {}]   ;;  %s8562_s20 = inlined_call_operand.vmem [shape: f32[16,128], index: 20, kind: output, shape index: {}]  }
   0x1   :  { %8568 = sst [smem:[#allocation24_spill]] %s8542_s0 }
   0x2   :  { %8569 = sst [smem:[#allocation25_spill]] %s8543_s1 }
   0x3   :  { %8570 = sst [smem:[#allocation26_spill]] %s8544_s2 }
   0x4   :  { %8571 = sst [smem:[#allocation27_spill]] %s8545_s3 }
   0x5   :  { %8572 = sst [smem:[#allocation28_spill]] %s8546_s4 }
   0x6   :  { %8573 = sst [smem:[#allocation29_spill]] %s8561_s19 }
   0x7   :  { %8574 = sst [smem:[#allocation30_spill]] %s8562_s20 }
   0x8   :  { %25 = vsyncpa [#allocation3], 0 }
   0x9   :  { %26 = vsyncpa [#allocation5], 0 }
   0xa   :  { %27 = vsyncpa [#allocation8], 0 }
   0xb   :  { %28 = vsyncpa [#allocation11], 0 }
   0xc   :  { %29 = vsyncpa [#allocation14], 0 }
   0xd   :  { %30 = vsyncpa [#allocation17], 0  ;;  %s7420_s1 = smov [#allocation4]   ;;  %s8575_s2 = sld [smem:[#allocation28_spill]] }
   0xe   :  { %s52_s22 = sshll.u32 %s7420_s1, 4  ;;  %s53_s22 = int_to_ptr.vmem [resolvable:$true] %s52_s22 }
  0x13   :  { %s7188_s25 = scalar_lea.hbm %s8575_s2, 24576 }
  0x14   :  { %p7189_p0 = scmp.ne.s32.totalorder %s8575_s2, %s7188_s25  ;;  %p7192_p1 = scmp.lt.u32.totalorder %s7188_s25, %s8575_s2 }
  0x16   :  { %p7194_p2 = pnand %p7192_p1, %p7189_p0 }
  0x18   :  { %7197 = shalt.err (!%p7194_p2)
}
  0x19   :  { %s7198_s4 = scalar_lea.vmem %s53_s22, 24576  ;;  %p7203_p4 = scmp.lt.s32.totalorder %s53_s22, %s53_s22 }
  0x1a   :  { %p7199_p3 = scmp.ne.s32.totalorder %s53_s22, %s7198_s4  ;;  %p7204_p5 = scmp.lt.s32.totalorder %s7198_s4, %s7198_s4 }
  0x1c   :  { %p7205_p6 = por %p7204_p5, %p7203_p4 }
  0x1e   :  { %p7206_p7 = pnand %p7205_p6, %p7199_p3 }
  0x20   :  { %7209 = shalt.err (!%p7206_p7)
}
  0x21   :  { %s7421_s29 = smov 384   ;;  %s7422_s30 = smov 24  }
  0x22   :  { %58 = dma.hbm_to_vmem [thread:$0]  %s8575_s2, 24576, %s53_s22, [#allocation5], %s7421_s29, %s7421_s29, %s7422_s30  }
  0x23   :  { %s7423_s1 = smov [#allocation7]   ;;  %s7424_s24 = smov [#allocation10]  }
  0x24   :  { %s82_s23 = sshll.u32 %s7423_s1, 4  ;;  %s108_s25 = sshll.u32 %s7424_s24, 4  ;;  %s83_s23 = int_to_ptr.vmem [resolvable:$true] %s82_s23  ;;  %s109_s25 = int_to_ptr.vmem [resolvable:$true] %s108_s25 }
  0x25   :  { %s7210_s27 = scalar_lea.hbm %s8551_s9, 64 }
  0x26   :  { %p7211_p8 = scmp.ne.s32.totalorder %s8551_s9, %s7210_s27  ;;  %p7214_p9 = scmp.lt.u32.totalorder %s7210_s27, %s8551_s9 }
  0x28   :  { %p7216_p10 = pnand %p7214_p9, %p7211_p8 }
  0x2a   :  { %7219 = shalt.err (!%p7216_p10)
}
  0x2b   :  { %s7220_s22 = scalar_lea.vmem %s83_s23, 64  ;;  %p7225_p12 = scmp.lt.s32.totalorder %s83_s23, %s83_s23 }
  0x2c   :  { %p7221_p11 = scmp.ne.s32.totalorder %s83_s23, %s7220_s22  ;;  %p7226_p13 = scmp.lt.s32.totalorder %s7220_s22, %s7220_s22 }
  0x2e   :  { %p7227_p0 = por %p7226_p13, %p7225_p12 }
  0x30   :  { %p7228_p1 = pnand %p7227_p0, %p7221_p11 }
  0x32   :  { %7231 = shalt.err (!%p7228_p1)
}
  0x33   :  { %s7425_s2 = smov 32   ;;  %s7426_s29 = smov 2  }
  0x34   :  { %88 = dma.hbm_to_vmem [thread:$0]  %s8551_s9, 64, %s83_s23, [#allocation8], %s7425_s2, %s7425_s2, %s7426_s29  }
  0x35   :  { %s7232_s21 = scalar_lea.hbm %s8554_s12, 16384 }
  0x36   :  { %p7233_p2 = scmp.ne.s32.totalorder %s8554_s12, %s7232_s21  ;;  %p7236_p3 = scmp.lt.u32.totalorder %s7232_s21, %s8554_s12 }
  0x38   :  { %p7238_p4 = pnand %p7236_p3, %p7233_p2 }
  0x3a   :  { %7241 = shalt.err (!%p7238_p4)
}
  0x3b   :  { %s7242_s27 = scalar_lea.vmem %s109_s25, 16384  ;;  %p7247_p6 = scmp.lt.s32.totalorder %s109_s25, %s109_s25 }
  0x3c   :  { %p7243_p5 = scmp.ne.s32.totalorder %s109_s25, %s7242_s27  ;;  %p7248_p7 = scmp.lt.s32.totalorder %s7242_s27, %s7242_s27 }
  0x3e   :  { %p7249_p8 = por %p7248_p7, %p7247_p6 }
  0x40   :  { %p7250_p9 = pnand %p7249_p8, %p7243_p5 }
  0x42   :  { %7253 = shalt.err (!%p7250_p9)
}
  0x43   :  { %s7427_s9 = smov 128   ;;  %s7428_s23 = smov 8  }
  0x44   :  { %114 = dma.hbm_to_vmem [thread:$0]  %s8554_s12, 16384, %s109_s25, [#allocation11], %s7427_s9, %s7427_s9, %s7428_s23  }
  0x45   :  { %s7429_s22 = smov [#allocation13]   ;;  %s7430_s0 = smov [#allocation2]  }
  0x46   :  { %s134_s30 = sshll.u32 %s7429_s22, 4  ;;  %s41_s19 = sshll.u32 %s7430_s0, 4  ;;  %s135_s30 = int_to_ptr.vmem [resolvable:$true] %s134_s30  ;;  %s42_s19 = int_to_ptr.vmem [resolvable:$true] %s41_s19 }
  0x47   :  { %s7254_s1 = scalar_lea.hbm %s8557_s15, 64 }
  0x48   :  { %p7255_p10 = scmp.ne.s32.totalorder %s8557_s15, %s7254_s1  ;;  %p7258_p11 = scmp.lt.u32.totalorder %s7254_s1, %s8557_s15 }
  0x4a   :  { %p7260_p12 = pnand %p7258_p11, %p7255_p10 }
  0x4c   :  { %7263 = shalt.err (!%p7260_p12)
}
  0x4d   :  { %s7264_s12 = scalar_lea.vmem %s135_s30, 64  ;;  %p7269_p0 = scmp.lt.s32.totalorder %s135_s30, %s135_s30 }
  0x4e   :  { %p7265_p13 = scmp.ne.s32.totalorder %s135_s30, %s7264_s12  ;;  %p7270_p1 = scmp.lt.s32.totalorder %s7264_s12, %s7264_s12 }
  0x50   :  { %p7271_p2 = por %p7270_p1, %p7269_p0 }
  0x52   :  { %p7272_p3 = pnand %p7271_p2, %p7265_p13 }
  0x54   :  { %7275 = shalt.err (!%p7272_p3)
}
  0x55   :  { %140 = dma.hbm_to_vmem [thread:$0]  %s8557_s15, 64, %s135_s30, [#allocation14], %s7425_s2, %s7425_s2, %s7426_s29  }
  0x56   :  { %s8576_s4 = sld [smem:[#allocation26_spill]] }
  0x5c   :  { %s7276_s22 = scalar_lea.hbm %s8576_s4, 32 }
  0x5d   :  { %p7277_p4 = scmp.ne.s32.totalorder %s8576_s4, %s7276_s22  ;;  %p7280_p5 = scmp.lt.u32.totalorder %s7276_s22, %s8576_s4 }
  0x5f   :  { %p7282_p6 = pnand %p7280_p5, %p7277_p4 }
  0x61   :  { %7285 = shalt.err (!%p7282_p6)
}
  0x62   :  { %s7286_s24 = scalar_lea.vmem %s42_s19, 32  ;;  %p7291_p8 = scmp.lt.s32.totalorder %s42_s19, %s42_s19 }
  0x63   :  { %p7287_p7 = scmp.ne.s32.totalorder %s42_s19, %s7286_s24  ;;  %p7292_p9 = scmp.lt.s32.totalorder %s7286_s24, %s7286_s24 }
  0x65   :  { %p7293_p10 = por %p7292_p9, %p7291_p8 }
  0x67   :  { %p7294_p11 = pnand %p7293_p10, %p7287_p7 }
  0x69   :  { %7297 = shalt.err (!%p7294_p11)
}
  0x6a   :  { %44 = dma.hbm_to_vmem [thread:$0]  %s8576_s4, 32, %s42_s19, [#allocation3]  }
  0x6b   :  { %s7431_s3 = smov [#allocation6]   ;;  %s7432_s27 = smov [#allocation9]  }
  0x6c   :  { %s70_s26 = sshll.u32 %s7431_s3, 4  ;;  %s94_s12 = sshll.u32 %s7432_s27, 4  ;;  %s71_s26 = int_to_ptr.vmem [resolvable:$true] %s70_s26  ;;  %s95_s12 = int_to_ptr.vmem [resolvable:$true] %s94_s12 }
  0x6d   :  { %s7298_s23 = scalar_lea.hbm %s8550_s8, 64 }
  0x6e   :  { %p7299_p12 = scmp.ne.s32.totalorder %s8550_s8, %s7298_s23  ;;  %p7302_p13 = scmp.lt.u32.totalorder %s7298_s23, %s8550_s8 }
  0x70   :  { %p7304_p0 = pnand %p7302_p13, %p7299_p12 }
  0x72   :  { %7307 = shalt.err (!%p7304_p0)
}
  0x73   :  { %s7308_s19 = scalar_lea.vmem %s71_s26, 64  ;;  %p7313_p2 = scmp.lt.s32.totalorder %s71_s26, %s71_s26 }
  0x74   :  { %p7309_p1 = scmp.ne.s32.totalorder %s71_s26, %s7308_s19  ;;  %p7314_p3 = scmp.lt.s32.totalorder %s7308_s19, %s7308_s19 }
  0x76   :  { %p7315_p4 = por %p7314_p3, %p7313_p2 }
  0x78   :  { %p7316_p5 = pnand %p7315_p4, %p7309_p1 }
  0x7a   :  { %7319 = shalt.err (!%p7316_p5)
}
  0x7b   :  { %76 = dma.hbm_to_vmem [thread:$0]  %s8550_s8, 64, %s71_s26, [#allocation5], %s7425_s2, %s7425_s2, %s7426_s29  }
  0x7c   :  { %s7320_s15 = scalar_lea.hbm %s8552_s10, 16384 }
  0x7d   :  { %p7321_p6 = scmp.ne.s32.totalorder %s8552_s10, %s7320_s15  ;;  %p7324_p7 = scmp.lt.u32.totalorder %s7320_s15, %s8552_s10 }
  0x7f   :  { %p7326_p8 = pnand %p7324_p7, %p7321_p6 }
  0x81   :  { %7329 = shalt.err (!%p7326_p8)
}
  0x82   :  { %s7330_s9 = scalar_lea.vmem %s95_s12, 16384  ;;  %p7335_p10 = scmp.lt.s32.totalorder %s95_s12, %s95_s12 }
  0x83   :  { %p7331_p9 = scmp.ne.s32.totalorder %s95_s12, %s7330_s9  ;;  %p7336_p11 = scmp.lt.s32.totalorder %s7330_s9, %s7330_s9 }
  0x85   :  { %p7337_p12 = por %p7336_p11, %p7335_p10 }
  0x87   :  { %p7338_p13 = pnand %p7337_p12, %p7331_p9 }
  0x89   :  { %7341 = shalt.err (!%p7338_p13)
}
  0x8a   :  { %s7433_s8 = smov 256   ;;  %s7434_s26 = smov 16  }
  0x8b   :  { %100 = dma.hbm_to_vmem [thread:$0]  %s8552_s10, 16384, %s95_s12, [#allocation8], %s7433_s8, %s7433_s8, %s7434_s26  }
  0x8c   :  { %s7435_s22 = smov [#allocation12]   ;;  %s7436_s20 = smov [#allocation15]  }
  0x8d   :  { %s122_s0 = sshll.u32 %s7435_s22, 4  ;;  %s149_s19 = sshll.u32 %s7436_s20, 4  ;;  %s123_s0 = int_to_ptr.vmem [resolvable:$true] %s122_s0  ;;  %s150_s19 = int_to_ptr.vmem [resolvable:$true] %s149_s19 }
  0x8e   :  { %s7342_s1 = scalar_lea.hbm %s8556_s14, 64 }
  0x8f   :  { %p7343_p0 = scmp.ne.s32.totalorder %s8556_s14, %s7342_s1  ;;  %p7346_p1 = scmp.lt.u32.totalorder %s7342_s1, %s8556_s14 }
  0x91   :  { %p7348_p2 = pnand %p7346_p1, %p7343_p0 }
  0x93   :  { %7351 = shalt.err (!%p7348_p2)
}
  0x94   :  { %s7352_s10 = scalar_lea.vmem %s123_s0, 64  ;;  %p7357_p4 = scmp.lt.s32.totalorder %s123_s0, %s123_s0 }
  0x95   :  { %p7353_p3 = scmp.ne.s32.totalorder %s123_s0, %s7352_s10  ;;  %p7358_p5 = scmp.lt.s32.totalorder %s7352_s10, %s7352_s10 }
  0x97   :  { %p7359_p6 = por %p7358_p5, %p7357_p4 }
  0x99   :  { %p7360_p7 = pnand %p7359_p6, %p7353_p3 }
  0x9b   :  { %7363 = shalt.err (!%p7360_p7)
}
  0x9c   :  { %128 = dma.hbm_to_vmem [thread:$0]  %s8556_s14, 64, %s123_s0, [#allocation11], %s7425_s2, %s7425_s2, %s7426_s29  }
  0x9d   :  { %s7364_s8 = scalar_lea.hbm %s8559_s17, 32 }
  0x9e   :  { %p7365_p8 = scmp.ne.s32.totalorder %s8559_s17, %s7364_s8  ;;  %p7368_p9 = scmp.lt.u32.totalorder %s7364_s8, %s8559_s17 }
  0xa0   :  { %p7370_p10 = pnand %p7368_p9, %p7365_p8 }
  0xa2   :  { %7373 = shalt.err (!%p7370_p10)
}
  0xa3   :  { %s7374_s20 = scalar_lea.vmem %s150_s19, 32  ;;  %p7379_p12 = scmp.lt.s32.totalorder %s150_s19, %s150_s19 }
  0xa4   :  { %p7375_p11 = scmp.ne.s32.totalorder %s150_s19, %s7374_s20  ;;  %p7380_p13 = scmp.lt.s32.totalorder %s7374_s20, %s7374_s20 }
  0xa6   :  { %p7381_p0 = por %p7380_p13, %p7379_p12 }
  0xa8   :  { %p7382_p1 = pnand %p7381_p0, %p7375_p11 }
  0xaa   :  { %7385 = shalt.err (!%p7382_p1)
}
  0xab   :  { %152 = dma.hbm_to_vmem [thread:$0]  %s8559_s17, 32, %s150_s19, [#allocation14]  }
  0xac   :  { %s7437_s29 = smov [#allocation16]   ;;  %s7386_s1 = scalar_lea.hbm %s8560_s18, 2048 }
  0xad   :  { %s158_s0 = sshll.u32 %s7437_s29, 4  ;;  %p7387_p2 = scmp.ne.s32.totalorder %s8560_s18, %s7386_s1  ;;  %s159_s0 = int_to_ptr.vmem [resolvable:$true] %s158_s0 }
  0xae   :  { %p7390_p3 = scmp.lt.u32.totalorder %s7386_s1, %s8560_s18 }
  0xb0   :  { %p7392_p4 = pnand %p7390_p3, %p7387_p2 }
  0xb2   :  { %7395 = shalt.err (!%p7392_p4)
}
  0xb3   :  { %s7396_s10 = scalar_lea.vmem %s159_s0, 2048  ;;  %p7401_p6 = scmp.lt.s32.totalorder %s159_s0, %s159_s0 }
  0xb4   :  { %p7397_p5 = scmp.ne.s32.totalorder %s159_s0, %s7396_s10  ;;  %p7402_p7 = scmp.lt.s32.totalorder %s7396_s10, %s7396_s10 }
  0xb6   :  { %p7403_p8 = por %p7402_p7, %p7401_p6 }
  0xb8   :  { %p7404_p9 = pnand %p7403_p8, %p7397_p5 }
  0xba   :  { %7407 = shalt.err (!%p7404_p9)
}
  0xbb   :  { %s7438_s17 = smov 64   ;;  %s7439_s19 = smov 4  }
  0xbc   :  { %164 = dma.hbm_to_vmem [thread:$0]  %s8560_s18, 2048, %s159_s0, [#allocation17], %s7438_s17, %s7438_s17, %s7439_s19  }
  0xbd   :  { %7408 = dma.done.wait [#allocation3], 32  }
  0xbe   :  { %7409 = vsyncadd [#allocation3], 4294967264 }
  0xbf   :  { %7410 = dma.done.wait [#allocation5], 24640  }
  0xc0   :  { %7411 = vsyncadd [#allocation5], 4294942656 }
  0xc1   :  { %7412 = dma.done.wait [#allocation8], 16448  }
  0xc2   :  { %7413 = vsyncadd [#allocation8], 4294950848 }
  0xc3   :  { %7414 = dma.done.wait [#allocation11], 16448  }
  0xc4   :  { %7415 = vsyncadd [#allocation11], 4294950848 }
  0xc5   :  { %7416 = dma.done.wait [#allocation14], 96  }
  0xc6   :  { %7417 = vsyncadd [#allocation14], 4294967200 }
  0xc7   :  { %7418 = dma.done.wait [#allocation17], 2048  }
  0xc8   :  { %7419 = vsyncadd [#allocation17], 4294965248  ;;  %s8577_s8 = sld [smem:[#allocation24_spill]]  ;;  %v6262_v6 = vld [vmem:[#allocation4 + $0x4] ss:$24 sps:$4 sm:$0xff]   ;;  %s8578_s29 = sld [smem:[#allocation27_spill]] }
  0xc9   :  { %v6264_v7 = vld [vmem:[#allocation4] ss:$24 sps:$4 sm:$0xff]   ;;  %v6265_v8 = vld [vmem:[#allocation4 + $0xc] ss:$24 sps:$4 sm:$0xff]   ;;  %879 = vmatprep.subr.bf16.mxu0 %v6262_v6  ;;  %v6271_v11 = vld [vmem:[#allocation4 + $0x3c] ss:$24 sps:$4 sm:$0xff]  }
  0xca   :  { %v6267_v9 = vld [vmem:[#allocation4 + $0x8] ss:$24 sps:$4 sm:$0xff]   ;;  %v6268_v10 = vld [vmem:[#allocation4 + $0x34] ss:$24 sps:$4 sm:$0xff]   ;;  %922 = vmatprep.subr.bf16.mxu1 %v6265_v8  ;;  %880 = vmatpush1.bf16.msra.mxu0 %v6264_v7  ;;  %v6273_v13 = vld [vmem:[#allocation4 + $0x38] ss:$24 sps:$4 sm:$0xff]  }
  0xcb   :  { %923 = vmatpush1.bf16.msra.mxu1 %v6267_v9  ;;  %v6270_v12 = vld [vmem:[#allocation4 + $0x30] ss:$24 sps:$4 sm:$0xff]   ;;  %881 = vmatprep.subr.bf16.mxu0 %v6268_v10  ;;  %v6274_v14 = vld [vmem:[#allocation4 + $0x64] ss:$24 sps:$4 sm:$0xff]   ;;  %v6276_v16 = vld [vmem:[#allocation4 + $0x60] ss:$24 sps:$4 sm:$0xff]  }
  0xcc   :  { %924 = vmatprep.subr.bf16.mxu1 %v6271_v11  ;;  %v6277_v15 = vld [vmem:[#allocation4 + $0x6c] ss:$24 sps:$4 sm:$0xff]   ;;  %v6279_v17 = vld [vmem:[#allocation4 + $0x68] ss:$24 sps:$4 sm:$0xff]   ;;  %v6283_v19 = vld [vmem:[#allocation4 + $0x9c] ss:$24 sps:$4 sm:$0xff]  }
  0xcd   :  { %v6280_v18 = vld [vmem:[#allocation4 + $0x94] ss:$24 sps:$4 sm:$0xff]   ;;  %v6282_v20 = vld [vmem:[#allocation4 + $0x90] ss:$24 sps:$4 sm:$0xff]   ;;  %v6286_v22 = vld [vmem:[#allocation4 + $0xc4] ss:$24 sps:$4 sm:$0xff]  }
  0xce   :  { %v7682_v0 = vld [vmem:[%s8577_s8] sm:$0xff]  ;;  %v7687_v1 = vld [vmem:[%s8577_s8 + $0x8] sm:$0xff]  ;;  %v7692_v2 = vld [vmem:[%s8577_s8 + $0x10] sm:$0xff]  ;;  %882 = vmatpush1.bf16.msra.mxu0 %v6270_v12  ;;  %vm7441_vm0 = vmmov 0   ;;  %s8579_s24 = sld [smem:[#allocation25_spill]]  ;;  %vm1059_vm1 = vcmask 130048  }
  0xcf   :  { %v204_v3 = vadd.f32 %v7687_v1, %v7682_v0  ;;  %v7699_v4 = vld [vmem:[%s8577_s8 + $0x18] sm:$0xff]  ;;  %925 = vmatpush1.bf16.msra.mxu1 %v6273_v13  ;;  %883 = vmatprep.subr.bf16.mxu0 %v6274_v14  ;;  %v6289_v23 = vld [vmem:[#allocation4 + $0xcc] ss:$24 sps:$4 sm:$0xff]   ;;  %v6291_v25 = vld [vmem:[#allocation4 + $0xc8] ss:$24 sps:$4 sm:$0xff]   ;;  %s8580_s1 = sld [smem:[#allocation29_spill]] }
  0xd0   :  { %v207_v5 = vadd.f32 %v7699_v4, %v7692_v2  ;;  %926 = vmatprep.subr.bf16.mxu1 %v6277_v15  ;;  %v6285_v21 = vld [vmem:[#allocation4 + $0x98] ss:$24 sps:$4 sm:$0xff]   ;;  %v6292_v26 = vld [vmem:[#allocation4 + $0xf4] ss:$24 sps:$4 sm:$0xff]   ;;  %v6298_v30 = vld [vmem:[#allocation4 + $0x124] ss:$24 sps:$4 sm:$0xff]  }
  0xd1   :  { %205 = vadd.xlane.f32.xlu0 %v204_v3  ;;  %v6288_v24 = vld [vmem:[#allocation4 + $0xc0] ss:$24 sps:$4 sm:$0xff]   ;;  %v6295_v27 = vld [vmem:[#allocation4 + $0xfc] ss:$24 sps:$4 sm:$0xff]   ;;  %v6294_v28 = vld [vmem:[#allocation4 + $0xf0] ss:$24 sps:$4 sm:$0xff]  }
  0xd2   :  { %884 = vmatpush1.bf16.msra.mxu0 %v6276_v16  ;;  %v6297_v29 = vld [vmem:[#allocation4 + $0xf8] ss:$24 sps:$4 sm:$0xff]   ;;  %v6301_v31 = vld [vmem:[#allocation4 + $0x12c] ss:$24 sps:$4 sm:$0xff]   ;;  %v6303_v33 = vld [vmem:[#allocation4 + $0x128] ss:$24 sps:$4 sm:$0xff]  }
  0xd3   :  { %927 = vmatpush1.bf16.msra.mxu1 %v6279_v17  ;;  %885 = vmatprep.subr.bf16.mxu0 %v6280_v18  ;;  %v6300_v32 = vld [vmem:[#allocation4 + $0x120] ss:$24 sps:$4 sm:$0xff]   ;;  %v6304_v34 = vld [vmem:[#allocation4 + $0x154] ss:$24 sps:$4 sm:$0xff]   ;;  %v6306_v36 = vld [vmem:[#allocation4 + $0x150] ss:$24 sps:$4 sm:$0xff]  }
  0xd4   :  { %928 = vmatprep.subr.bf16.mxu1 %v6283_v19  ;;  %v6307_v35 = vld [vmem:[#allocation4 + $0x15c] ss:$24 sps:$4 sm:$0xff]   ;;  %v6309_v37 = vld [vmem:[#allocation4 + $0x158] ss:$24 sps:$4 sm:$0xff]   ;;  %v6313_v39 = vld [vmem:[#allocation4 + $0x18c] ss:$24 sps:$4 sm:$0xff]  }
  0xd5   :  { %208 = vadd.xlane.f32.xlu0 %v207_v5  ;;  %v6310_v38 = vld [vmem:[#allocation4 + $0x184] ss:$24 sps:$4 sm:$0xff]   ;;  %v6312_v40 = vld [vmem:[#allocation4 + $0x180] ss:$24 sps:$4 sm:$0xff]   ;;  %v6316_v42 = vld [vmem:[#allocation4 + $0x1b4] ss:$24 sps:$4 sm:$0xff]  }
  0xd6   :  { %886 = vmatpush1.bf16.msra.mxu0 %v6282_v20  ;;  %v6315_v41 = vld [vmem:[#allocation4 + $0x188] ss:$24 sps:$4 sm:$0xff]   ;;  %v6319_v58 = vld [vmem:[#allocation4 + $0x1bc] ss:$24 sps:$4 sm:$0xff]   ;;  %v6321_v59 = vld [vmem:[#allocation4 + $0x1b8] ss:$24 sps:$4 sm:$0xff]  }
  0xd7   :  { %929 = vmatpush1.bf16.msra.mxu1 %v6285_v21  ;;  %887 = vmatprep.subr.bf16.mxu0 %v6286_v22  ;;  %v6318_v57 = vld [vmem:[#allocation4 + $0x1b0] ss:$24 sps:$4 sm:$0xff]   ;;  %v6322_v60 = vld [vmem:[#allocation4 + $0x1e4] ss:$24 sps:$4 sm:$0xff]   ;;  %v6324_v61 = vld [vmem:[#allocation4 + $0x1e0] ss:$24 sps:$4 sm:$0xff]  }
  0xd8   :  { %930 = vmatprep.subr.bf16.mxu1 %v6289_v23  ;;  %v6325_v62 = vld [vmem:[#allocation4 + $0x1ec] ss:$24 sps:$4 sm:$0xff]   ;;  %v6327_v63 = vld [vmem:[#allocation4 + $0x1e8] ss:$24 sps:$4 sm:$0xff]   ;;  %v6333_v3 = vld [vmem:[#allocation4 + $0x218] ss:$24 sps:$4 sm:$0xff]  }
  0xd9   :  { %v6336_v5 = vld [vmem:[#allocation4 + $0x240] ss:$24 sps:$4 sm:$0xff]   ;;  %v6337_v6 = vld [vmem:[#allocation4 + $0x24c] ss:$24 sps:$4 sm:$0xff]   ;;  %v6343_v9 = vld [vmem:[#allocation4 + $0x27c] ss:$24 sps:$4 sm:$0xff]  }
  0xda   :  { %888 = vmatpush1.bf16.msra.mxu0 %v6288_v24  ;;  %v6339_v7 = vld [vmem:[#allocation4 + $0x248] ss:$24 sps:$4 sm:$0xff]   ;;  %v6340_v8 = vld [vmem:[#allocation4 + $0x274] ss:$24 sps:$4 sm:$0xff]   ;;  %v6345_v11 = vld [vmem:[#allocation4 + $0x278] ss:$24 sps:$4 sm:$0xff]  }
  0xdb   :  { %931 = vmatpush1.bf16.msra.mxu1 %v6291_v25  ;;  %889 = vmatprep.subr.bf16.mxu0 %v6292_v26  ;;  %v6342_v10 = vld [vmem:[#allocation4 + $0x270] ss:$24 sps:$4 sm:$0xff]   ;;  %v6346_v12 = vld [vmem:[#allocation4 + $0x2a4] ss:$24 sps:$4 sm:$0xff]   ;;  %v6348_v14 = vld [vmem:[#allocation4 + $0x2a0] ss:$24 sps:$4 sm:$0xff]   ;;  %v238_v25 = vlaneseq }
  0xdc   :  { %932 = vmatprep.subr.bf16.mxu1 %v6295_v27  ;;  %v6349_v13 = vld [vmem:[#allocation4 + $0x2ac] ss:$24 sps:$4 sm:$0xff]   ;;  %v6351_v15 = vld [vmem:[#allocation4 + $0x2a8] ss:$24 sps:$4 sm:$0xff]   ;;  %v6355_v17 = vld [vmem:[#allocation4 + $0x2dc] ss:$24 sps:$4 sm:$0xff]  }
  0xdd   :  { %v6352_v16 = vld [vmem:[#allocation4 + $0x2d4] ss:$24 sps:$4 sm:$0xff]   ;;  %v6354_v18 = vld [vmem:[#allocation4 + $0x2d0] ss:$24 sps:$4 sm:$0xff]  }
  0xde   :  { %890 = vmatpush1.bf16.msra.mxu0 %v6294_v28  ;;  %v6357_v19 = vld [vmem:[#allocation4 + $0x2d8] ss:$24 sps:$4 sm:$0xff]   ;;  %v6360_v20 = vld [vmem:[#allocation4 + $0x14] ss:$24 sps:$4 sm:$0xff]   ;;  %v7723_v28 = vshrl.u32 %v238_v25, 7 }
  0xdf   :  { %933 = vmatpush1.bf16.msra.mxu1 %v6297_v29  ;;  %891 = vmatprep.subr.bf16.mxu0 %v6298_v30 }
  0xe0   :  { %934 = vmatprep.subr.bf16.mxu1 %v6301_v31  ;;  %v7726_v29 = vsub.s32 1, %v7723_v28  ;;  %v7729_v30 = vsub.s32 0, %v7723_v28  ;;  %v202_v31 = vld [vmem:[#allocation2] sm:$0x3] }
  0xe2   :  { %892 = vmatpush1.bf16.msra.mxu0 %v6300_v32 }
  0xe3   :  { %935 = vmatpush1.bf16.msra.mxu1 %v6303_v33  ;;  %893 = vmatprep.subr.bf16.mxu0 %v6304_v34  ;;  %v203_v33 = vld [vmem:[%s8578_s29] sm:$0x3] }
  0xe4   :  { %936 = vmatprep.subr.bf16.mxu1 %v6307_v35  ;;  %v245_v35 = vrot.slane %v202_v31, %v7726_v29 }
  0xe6   :  { %894 = vmatpush1.bf16.msra.mxu0 %v6306_v36 }
  0xe7   :  { %937 = vmatpush1.bf16.msra.mxu1 %v6309_v37  ;;  %895 = vmatprep.subr.bf16.mxu0 %v6310_v38  ;;  %v241_v37 = vrot.slane %v202_v31, %v7729_v30 }
  0xe8   :  { %938 = vmatprep.subr.bf16.mxu1 %v6313_v39  ;;  %v260_v39 = vrot.slane %v203_v33, %v7726_v29 }
  0xea   :  { %896 = vmatpush1.bf16.msra.mxu0 %v6312_v40  ;;  %v256_v40 = vrot.slane %v203_v33, %v7729_v30 }
  0xeb   :  { %939 = vmatpush1.bf16.msra.mxu1 %v6315_v41  ;;  %897 = vmatprep.subr.bf16.mxu0 %v6316_v42 }
  0xec   :  { %940 = vmatprep.subr.bf16.mxu1 %v6319_v58  ;;  %v6369_v58 = vld [vmem:[#allocation4 + $0xa4] ss:$24 sps:$4 sm:$0xff]  }
  0xee   :  { %898 = vmatpush1.bf16.msra.mxu0 %v6318_v57  ;;  %v6364_v57 = vld [vmem:[#allocation4 + $0x70] ss:$24 sps:$4 sm:$0xff]  }
  0xef   :  { %941 = vmatpush1.bf16.msra.mxu1 %v6321_v59  ;;  %899 = vmatprep.subr.bf16.mxu0 %v6322_v60  ;;  %v6367_v59 = vld [vmem:[#allocation4 + $0xa0] ss:$24 sps:$4 sm:$0xff]   ;;  %v6372_v60 = vld [vmem:[#allocation4 + $0xd4] ss:$24 sps:$4 sm:$0xff]  }
  0xf0   :  { %942 = vmatprep.subr.bf16.mxu1 %v6325_v62  ;;  %v6375_v62 = vld [vmem:[#allocation4 + $0x104] ss:$24 sps:$4 sm:$0xff]  }
  0xf2   :  { %900 = vmatpush1.bf16.msra.mxu0 %v6324_v61  ;;  %v6370_v61 = vld [vmem:[#allocation4 + $0xd0] ss:$24 sps:$4 sm:$0xff]  }
  0xf3   :  { %943 = vmatpush1.bf16.msra.mxu1 %v6327_v63  ;;  %v6373_v63 = vld [vmem:[#allocation4 + $0x100] ss:$24 sps:$4 sm:$0xff]  }
 0x15e   :  { %v206_v43 = vpop.xlane.xlu0 %205 }
 0x15f   :  { %v211_v44 = vmul.f32 0.00390625, %v206_v43 }
 0x161   :  { %v7704_v45 = vsub.f32 %v7682_v0, %v211_v44  ;;  %v7707_v46 = vsub.f32 %v7687_v1, %v211_v44  ;;  %v6328_v0 = vld [vmem:[#allocation4 + $0x214] ss:$24 sps:$4 sm:$0xff]   ;;  %v6330_v1 = vld [vmem:[#allocation4 + $0x210] ss:$24 sps:$4 sm:$0xff]  }
 0x162   :  { %v209_v47 = vpop.xlane.xlu0 %208  ;;  %901 = vmatprep.subr.bf16.mxu0 %v6328_v0  ;;  %v6378_v0 = vld [vmem:[#allocation4 + $0x134] ss:$24 sps:$4 sm:$0xff]  }
 0x163   :  { %v212_v48 = vmul.f32 0.00390625, %v209_v47  ;;  %v217_v49 = vmul.f32 %v7704_v45, %v7704_v45  ;;  %v218_v50 = vmul.f32 %v7707_v46, %v7707_v46  ;;  %902 = vmatpush1.bf16.msra.mxu0 %v6330_v1  ;;  %v6376_v1 = vld [vmem:[#allocation4 + $0x130] ss:$24 sps:$4 sm:$0xff]  }
 0x165   :  { %v7714_v51 = vsub.f32 %v7692_v2, %v212_v48  ;;  %v7717_v52 = vsub.f32 %v7699_v4, %v212_v48  ;;  %v221_v53 = vadd.f32 %v218_v50, %v217_v49  ;;  %v6331_v2 = vld [vmem:[#allocation4 + $0x21c] ss:$24 sps:$4 sm:$0xff]  }
 0x166   :  { %944 = vmatprep.subr.bf16.mxu1 %v6331_v2  ;;  %v6334_v4 = vld [vmem:[#allocation4 + $0x244] ss:$24 sps:$4 sm:$0xff]  }
 0x167   :  { %222 = vadd.xlane.f32.xlu1 %v221_v53  ;;  %v219_v54 = vmul.f32 %v7714_v51, %v7714_v51  ;;  %v220_v55 = vmul.f32 %v7717_v52, %v7717_v52  ;;  %945 = vmatpush1.bf16.msra.mxu1 %v6333_v3  ;;  %v6381_v2 = vld [vmem:[#allocation4 + $0x164] ss:$24 sps:$4 sm:$0xff]   ;;  %v6379_v3 = vld [vmem:[#allocation4 + $0x160] ss:$24 sps:$4 sm:$0xff]  }
 0x168   :  { %903 = vmatprep.subr.bf16.mxu0 %v6334_v4  ;;  %946 = vmatprep.subr.bf16.mxu1 %v6337_v6  ;;  %v6384_v4 = vld [vmem:[#allocation4 + $0x194] ss:$24 sps:$4 sm:$0xff]   ;;  %v6387_v6 = vld [vmem:[#allocation4 + $0x1c4] ss:$24 sps:$4 sm:$0xff]  }
 0x169   :  { %v224_v56 = vadd.f32 %v220_v55, %v219_v54  ;;  %904 = vmatpush1.bf16.msra.mxu0 %v6336_v5  ;;  %v6358_v54 = vld [vmem:[#allocation4 + $0x10] ss:$24 sps:$4 sm:$0xff]   ;;  %v6361_v55 = vld [vmem:[#allocation4 + $0x40] ss:$24 sps:$4 sm:$0xff]  }
 0x16a   :  { %905 = vmatprep.subr.bf16.mxu0 %v6340_v8  ;;  %v6382_v5 = vld [vmem:[#allocation4 + $0x190] ss:$24 sps:$4 sm:$0xff]   ;;  %v6390_v8 = vld [vmem:[#allocation4 + $0x1f4] ss:$24 sps:$4 sm:$0xff]  }
 0x16b   :  { %225 = vadd.xlane.f32.xlu1 %v224_v56  ;;  %947 = vmatpush1.bf16.msra.mxu1 %v6339_v7  ;;  %v6366_v56 = vld [vmem:[#allocation4 + $0x74] ss:$24 sps:$4 sm:$0xff]   ;;  %v6385_v7 = vld [vmem:[#allocation4 + $0x1c0] ss:$24 sps:$4 sm:$0xff]  }
 0x16c   :  { %948 = vmatprep.subr.bf16.mxu1 %v6343_v9  ;;  %v6388_v9 = vld [vmem:[#allocation4 + $0x1f0] ss:$24 sps:$4 sm:$0xff]  }
 0x16d   :  { %906 = vmatpush1.bf16.msra.mxu0 %v6342_v10  ;;  %v6393_v10 = vld [vmem:[#allocation4 + $0x224] ss:$24 sps:$4 sm:$0xff]  }
 0x16e   :  { %907 = vmatprep.subr.bf16.mxu0 %v6346_v12  ;;  %v6396_v12 = vld [vmem:[#allocation4 + $0x254] ss:$24 sps:$4 sm:$0xff]  }
 0x16f   :  { %949 = vmatpush1.bf16.msra.mxu1 %v6345_v11  ;;  %v6391_v11 = vld [vmem:[#allocation4 + $0x220] ss:$24 sps:$4 sm:$0xff]  }
 0x170   :  { %950 = vmatprep.subr.bf16.mxu1 %v6349_v13  ;;  %v6394_v13 = vld [vmem:[#allocation4 + $0x250] ss:$24 sps:$4 sm:$0xff]  }
 0x171   :  { %908 = vmatpush1.bf16.msra.mxu0 %v6348_v14  ;;  %v6399_v14 = vld [vmem:[#allocation4 + $0x284] ss:$24 sps:$4 sm:$0xff]  }
 0x172   :  { %909 = vmatprep.subr.bf16.mxu0 %v6352_v16  ;;  %v6402_v16 = vld [vmem:[#allocation4 + $0x2b4] ss:$24 sps:$4 sm:$0xff]  }
 0x173   :  { %951 = vmatpush1.bf16.msra.mxu1 %v6351_v15  ;;  %v6397_v15 = vld [vmem:[#allocation4 + $0x280] ss:$24 sps:$4 sm:$0xff]  }
 0x174   :  { %952 = vmatprep.subr.bf16.mxu1 %v6355_v17  ;;  %v6400_v17 = vld [vmem:[#allocation4 + $0x2b0] ss:$24 sps:$4 sm:$0xff]  }
 0x175   :  { %910 = vmatpush1.bf16.msra.mxu0 %v6354_v18  ;;  %v6405_v18 = vld [vmem:[#allocation4 + $0x2e4] ss:$24 sps:$4 sm:$0xff]  }
 0x176   :  { %965 = vmatprep.subr.bf16.mxu0 %v6360_v20  ;;  %v7440_v20 = vmov 0.0  }
 0x177   :  { %953 = vmatpush1.bf16.msra.mxu1 %v6357_v19  ;;  %v6403_v19 = vld [vmem:[#allocation4 + $0x2e0] ss:$24 sps:$4 sm:$0xff]  }
 0x178   :  { %6176 = vmatprep.subr.bf16.mxu1 %v7440_v20 }
 0x1f4   :  { %v223_v21 = vpop.xlane.xlu1 %222 }
 0x1f5   :  { %v227_v22 = vmul.f32 0.00390625, %v223_v21  ;;  %v7763_v21 = vsub.s32 2, %v7723_v28 }
 0x1f7   :  { %v229_v23 = vadd.f32 1e-05, %v227_v22  ;;  %v367_v22 = vld [vmem:[%s8547_s5] sm:$0x3f] }
 0x1f8   :  { %v226_v24 = vpop.xlane.xlu1 %225  ;;  %v380_v25 = vrot.slane %v367_v22, %v7763_v21  ;;  %v376_v31 = vrot.slane %v367_v22, %v7726_v29 }
 0x1f9   :  { %7094 = vrsqrt.f32 %v229_v23  ;;  %v228_v26 = vmul.f32 0.00390625, %v226_v24  ;;  %v7769_v23 = vsub.s32 3, %v7723_v28  ;;  %v372_v24 = vrot.slane %v367_v22, %v7729_v30 }
 0x1fb   :  { %v230_v27 = vadd.f32 1e-05, %v228_v26 }
 0x1fd   :  { %7096 = vrsqrt.f32 %v230_v27 }
 0x203   :  { %v7095_v32 = vpop.eup %7094 }
 0x204   :  { %v234_v34 = vmul.f32 %v7095_v32, %v7707_v46  ;;  %v233_v36 = vmul.f32 %v7095_v32, %v7704_v45  ;;  %v384_v32 = vrot.slane %v367_v22, %v7769_v23 }
 0x206   :  { %v249_v42 = vmul.f32 %v245_v35, %v234_v34  ;;  %v248_v44 = vmul.f32 %v241_v37, %v233_v36 }
 0x207   :  { %v7097_v38 = vpop.eup %7096 }
 0x208   :  { %v236_v41 = vmul.f32 %v7097_v38, %v7717_v52  ;;  %v235_v43 = vmul.f32 %v7097_v38, %v7714_v51  ;;  %v7742_v46 = vadd.f32 %v260_v39, %v249_v42  ;;  %v7746_v45 = vadd.f32 %v256_v40, %v248_v44  ;;  %v6363_v51 = vld [vmem:[#allocation4 + $0x44] ss:$24 sps:$4 sm:$0xff]  }
 0x20a   :  { %v251_v47 = vmul.f32 %v245_v35, %v236_v41  ;;  %v250_v48 = vmul.f32 %v241_v37, %v235_v43 }
 0x20c   :  { %v7744_v49 = vadd.f32 %v260_v39, %v251_v47  ;;  %v7748_v50 = vadd.f32 %v256_v40, %v250_v48 }
 0x20e   :  { %v270_v53 = vpack.c.bf16 %v7744_v49, %v7742_v46  ;;  %v7754_v52 = vpack.c.bf16 %v7748_v50, %v7746_v45 }
 0x210   :  { %911 = vmatprep.mubr.bf16.mxu0 %v270_v53  ;;  %954 = vmatprep.mubr.bf16.mxu1 %v270_v53 }
 0x211   :  { %912 = vmatmul.mubr.bf16.vlgmr.msra.gmra.mrb[0].mxu0 %v7754_v52  ;;  %955 = vmatmul.mubr.bf16.vlgmr.msra.gmra.mrb[0].mxu1 %v7754_v52 }
 0x212   :  { %966 = vmatpush1.bf16.msra.mxu0 %v6358_v54  ;;  %997 = vmatprep.mubr.bf16.mxu0 %v270_v53 }
 0x213   :  { %967 = vmatprep.subr.bf16.mxu0 %v6363_v51  ;;  %6178 = vmatprep.mubr.msk.bf16.mxu1 %vm7441_vm0, %v7440_v20 }
 0x216   :  { %968 = vmatpush1.bf16.msra.mxu0 %v6361_v55  ;;  %v387_v55 = vsub.s32 4, %v7723_v28 }
 0x217   :  { %969 = vmatprep.subr.bf16.mxu0 %v6366_v56  ;;  %v391_v56 = vsub.s32 5, %v7723_v28 }
 0x21a   :  { %970 = vmatpush1.bf16.msra.mxu0 %v6364_v57  ;;  %v388_v57 = vrot.slane %v367_v22, %v387_v55 }
 0x21b   :  { %971 = vmatprep.subr.bf16.mxu0 %v6369_v58 }
 0x21e   :  { %972 = vmatpush1.bf16.msra.mxu0 %v6367_v59  ;;  %v392_v59 = vrot.slane %v367_v22, %v391_v56 }
 0x21f   :  { %973 = vmatprep.subr.bf16.mxu0 %v6372_v60 }
 0x222   :  { %974 = vmatpush1.bf16.msra.mxu0 %v6370_v61 }
 0x223   :  { %975 = vmatprep.subr.bf16.mxu0 %v6375_v62 }
 0x226   :  { %976 = vmatpush1.bf16.msra.mxu0 %v6373_v63 }
 0x227   :  { %977 = vmatprep.subr.bf16.mxu0 %v6378_v0 }
 0x22a   :  { %978 = vmatpush1.bf16.msra.mxu0 %v6376_v1 }
 0x22b   :  { %979 = vmatprep.subr.bf16.mxu0 %v6381_v2 }
 0x22e   :  { %980 = vmatpush1.bf16.msra.mxu0 %v6379_v3 }
 0x22f   :  { %981 = vmatprep.subr.bf16.mxu0 %v6384_v4 }
 0x232   :  { %982 = vmatpush1.bf16.msra.mxu0 %v6382_v5 }
 0x233   :  { %983 = vmatprep.subr.bf16.mxu0 %v6387_v6  ;;  %v267_v6 = vld [vmem:[%s8579_s24] sm:$0xff] }
 0x236   :  { %984 = vmatpush1.bf16.msra.mxu0 %v6385_v7 }
 0x237   :  { %985 = vmatprep.subr.bf16.mxu0 %v6390_v8 }
 0x23a   :  { %986 = vmatpush1.bf16.msra.mxu0 %v6388_v9 }
 0x23b   :  { %987 = vmatprep.subr.bf16.mxu0 %v6393_v10  ;;  %v268_v10 = vld [vmem:[%s8579_s24 + $0x8] sm:$0xff] }
 0x23e   :  { %988 = vmatpush1.bf16.msra.mxu0 %v6391_v11 }
 0x23f   :  { %989 = vmatprep.subr.bf16.mxu0 %v6396_v12 }
 0x242   :  { %990 = vmatpush1.bf16.msra.mxu0 %v6394_v13 }
 0x243   :  { %991 = vmatprep.subr.bf16.mxu0 %v6399_v14 }
 0x246   :  { %992 = vmatpush1.bf16.msra.mxu0 %v6397_v15 }
 0x247   :  { %993 = vmatprep.subr.bf16.mxu0 %v6402_v16 }
 0x24a   :  { %994 = vmatpush1.bf16.msra.mxu0 %v6400_v17 }
 0x24b   :  { %995 = vmatprep.subr.bf16.mxu0 %v6405_v18 }
 0x24e   :  { %996 = vmatpush1.bf16.msra.mxu0 %v6403_v19 }
 0x251   :  { %998 = vmatmul.mubr.bf16.vlgmr.msra.gmra.mrb[4].mxu0 %v7754_v52 }
 0x2e4   :  { %v913_v26 = vpop.f32.mrb[0].mxu0  ;;  %v956_v27 = vpop.f32.mrb[0].mxu1 }
 0x2e5   :  { %v915_v33 = vpop.f32.mrb[1].mxu0  ;;  %v958_v34 = vpop.f32.mrb[1].mxu1  ;;  %v914_v37 = vadd.f32 %v913_v26, %v372_v24  ;;  %v957_v38 = vadd.f32 %v956_v27, %v380_v25 }
 0x2e6   :  { %v917_v35 = vpop.f32.mrb[2].mxu0  ;;  %v960_v36 = vpop.f32.mrb[2].mxu1  ;;  %v7775_v43 = vadd.f32 %v915_v33, %v376_v31  ;;  %v7777_v44 = vadd.f32 %v958_v34, %v384_v32 }
 0x2e7   :  { %v918_v39 = vadd.f32 %v917_v35, %v372_v24  ;;  %v961_v40 = vadd.f32 %v960_v36, %v380_v25  ;;  %v919_v41 = vpop.f32.mrb[3].mxu0  ;;  %v962_v42 = vpop.f32.mrb[3].mxu1 }
 0x2e8   :  { %v7779_v47 = vadd.f32 %v919_v41, %v376_v31  ;;  %v7781_v48 = vadd.f32 %v962_v42, %v384_v32 }
 0x2e9   :  { %v1008_v53 = vpack.c.bf16 %v918_v39, %v914_v37  ;;  %v1010_v54 = vpack.c.bf16 %v961_v40, %v957_v38 }
 0x2ea   :  { %v1009_v52 = vpack.c.bf16 %v7779_v47, %v7775_v43  ;;  %v1011_v51 = vpack.c.bf16 %v7781_v48, %v7777_v44 }
 0x2eb   :  { %6177 = vmatpush3.bf16.xpose.msra.mxu1 %v1010_v54 }
 0x2ec   :  { %6182 = vmatprep.subr.bf16.mxu1 %v7440_v20 }
 0x2f2   :  { %6179 = vmatmul.mubr.bf16.vlgmr.msra.gmra.mrb[4].mxu1 %v1008_v53 }
 0x2f3   :  { %6184 = vmatprep.mubr.msk.bf16.mxu1 %vm7441_vm0, %v7440_v20 }
 0x324   :  { %v999_v58 = vpop.f32.mrb[4].mxu0 }
 0x325   :  { %v1001_v60 = vpop.f32.mrb[5].mxu0  ;;  %v1000_v62 = vadd.f32 %v999_v58, %v388_v57 }
 0x326   :  { %v1003_v61 = vpop.f32.mrb[6].mxu0  ;;  %v1002_v1 = vadd.f32 %v1001_v60, %v392_v59 }
 0x327   :  { %v1004_v63 = vadd.f32 %v1003_v61, %v388_v57  ;;  %v1005_v0 = vpop.f32.mrb[7].mxu0 }
 0x328   :  { %v1006_v2 = vadd.f32 %v1005_v0, %v392_v59 }
 0x329   :  { %v1012_v3 = vpack.c.bf16 %v1004_v63, %v1000_v62 }
 0x32a   :  { %v1013_v4 = vpack.c.bf16 %v1006_v2, %v1002_v1 }
 0x32b   :  { %6183 = vmatpush3.bf16.msra.mxu1 %v1012_v3 }
 0x32c   :  { %6188 = vmatprep.subr.bf16.mxu1 %v7440_v20 }
 0x3c5   :  { %v1048_v5 = vpop.f32.mrb[4].mxu1 }
 0x3c6   :  { %v1055_v7 = vmul.f32 0.088388346, %v1048_v5  ;;  %v6180_v8 = vpop.f32.mrb[5].mxu1 }
 0x3c7   :  { %v1051_v9 = vpop.f32.mrb[6].mxu1 }
 0x3c8   :  { %v1056_v11 = vmul.f32 0.088388346, %v1051_v9  ;;  %v6181_v12 = vpop.f32.mrb[7].mxu1  ;;  %v1057_v13 = vadd.f32 %v1055_v7, %v267_v6  ;;  %v6408_v7 = vld [vmem:[%s8548_s6 + $0x4] ss:$8 sps:$4 sm:$0xff]  }
 0x3ca   :  { %v1060_v14 = vsel %vm1059_vm1, %v1057_v13, -inf  ;;  %v1058_v15 = vadd.f32 %v1056_v11, %v268_v10 }
 0x3cb   :  { %1061 = vmax.xlane.f32.xlu0 %v1060_v14  ;;  %v6406_v14 = vld [vmem:[%s8548_s6] ss:$8 sps:$4 sm:$0xff]  }
 0x3cc   :  { %v1063_v16 = vsel %vm1059_vm1, %v1058_v15, -inf }
 0x3cd   :  { %1064 = vmax.xlane.f32.xlu1 %v1063_v16  ;;  %v6411_v16 = vld [vmem:[%s8548_s6 + $0x14] ss:$8 sps:$4 sm:$0xff]  }
 0x458   :  { %v1062_v17 = vpop.xlane.xlu0 %1061 }
 0x459   :  { %v1066_v18 = vsub.f32 %v1057_v13, %v1062_v17  ;;  %v6409_v17 = vld [vmem:[%s8548_s6 + $0x10] ss:$8 sps:$4 sm:$0xff]  }
 0x45a   :  { %v1065_v19 = vpop.xlane.xlu1 %1064 }
 0x45b   :  { %v1068_v22 = vmul.f32 1.442695, %v1066_v18  ;;  %v1067_v24 = vsub.f32 %v1058_v15, %v1065_v19  ;;  %v6414_v18 = vld [vmem:[%s8548_s6 + $0x24] ss:$8 sps:$4 sm:$0xff]   ;;  %v6412_v19 = vld [vmem:[%s8548_s6 + $0x20] ss:$8 sps:$4 sm:$0xff]  }
 0x45d   :  { %7098 = vpow2.f32 %v1068_v22  ;;  %v1070_v25 = vmul.f32 1.442695, %v1067_v24  ;;  %v6417_v22 = vld [vmem:[%s8548_s6 + $0x34] ss:$8 sps:$4 sm:$0xff]   ;;  %v6415_v24 = vld [vmem:[%s8548_s6 + $0x30] ss:$8 sps:$4 sm:$0xff]  }
 0x45f   :  { %7100 = vpow2.f32 %v1070_v25  ;;  %v6420_v25 = vld [vmem:[%s8548_s6 + $0x44] ss:$8 sps:$4 sm:$0xff]  }
 0x467   :  { %v7099_v26 = vpop.eup %7098 }
 0x468   :  { %v1072_v27 = vsel %vm1059_vm1, %v7099_v26, 0.0 }
 0x469   :  { %v7101_v31 = vpop.eup %7100  ;;  %1073 = vadd.xlane.f32.xlu0 %v1072_v27  ;;  %v6423_v27 = vld [vmem:[%s8548_s6 + $0x54] ss:$8 sps:$4 sm:$0xff]  }
 0x46a   :  { %v1075_v32 = vsel %vm1059_vm1, %v7101_v31, 0.0 }
 0x46b   :  { %1076 = vadd.xlane.f32.xlu1 %v1075_v32  ;;  %v6426_v32 = vld [vmem:[%s8548_s6 + $0x64] ss:$8 sps:$4 sm:$0xff]  }
 0x4f6   :  { %v1074_v33 = vpop.xlane.xlu0 %1073 }
 0x4f7   :  { %7102 = vrcp.f32 %v1074_v33  ;;  %v6424_v33 = vld [vmem:[%s8548_s6 + $0x60] ss:$8 sps:$4 sm:$0xff]  }
 0x4f8   :  { %v1077_v34 = vpop.xlane.xlu1 %1076 }
 0x4f9   :  { %7104 = vrcp.f32 %v1077_v34  ;;  %v6429_v34 = vld [vmem:[%s8548_s6 + $0x74] ss:$8 sps:$4 sm:$0xff]  }
 0x501   :  { %v7103_v35 = vpop.eup %7102 }
 0x502   :  { %v1080_v37 = vmul.f32 %v7103_v35, %v7099_v26  ;;  %v6418_v26 = vld [vmem:[%s8548_s6 + $0x40] ss:$8 sps:$4 sm:$0xff]   ;;  %v6427_v35 = vld [vmem:[%s8548_s6 + $0x70] ss:$8 sps:$4 sm:$0xff]  }
 0x503   :  { %v7105_v36 = vpop.eup %7104 }
 0x504   :  { %v1081_v38 = vmul.f32 %v7105_v36, %v7101_v31  ;;  %v6421_v31 = vld [vmem:[%s8548_s6 + $0x50] ss:$8 sps:$4 sm:$0xff]   ;;  %v6432_v36 = vld [vmem:[%s8548_s6 + $0x84] ss:$8 sps:$4 sm:$0xff]  }
 0x506   :  { %v1082_v39 = vpack.c.bf16 %v1081_v38, %v1080_v37  ;;  %v6430_v37 = vld [vmem:[%s8548_s6 + $0x80] ss:$8 sps:$4 sm:$0xff]   ;;  %v6435_v38 = vld [vmem:[%s8548_s6 + $0x94] ss:$8 sps:$4 sm:$0xff]  }
 0x508   :  { %6185 = vmatmul.mubr.msk.bf16.vlgmr.msra.gmra.mrb[8].mxu1 %vm1059_vm1, %v1082_v39  ;;  %v6433_v39 = vld [vmem:[%s8548_s6 + $0x90] ss:$8 sps:$4 sm:$0xff]  }
 0x509   :  { %6189 = vmatpush3.bf16.xpose.msra.mxu1 %v1011_v51  ;;  %6190 = vmatprep.mubr.msk.bf16.mxu1 %vm7441_vm0, %v7440_v20 }
 0x50a   :  { %6194 = vmatprep.subr.bf16.mxu1 %v7440_v20 }
 0x510   :  { %6191 = vmatmul.mubr.bf16.vlgmr.msra.gmra.mrb[12].mxu1 %v1009_v52 }
 0x511   :  { %6195 = vmatpush3.bf16.msra.mxu1 %v1013_v4  ;;  %6196 = vmatprep.mubr.msk.bf16.mxu1 %vm7441_vm0, %v7440_v20 }
 0x512   :  { %1445 = vmatprep.subr.bf16.mxu1 %v6408_v7 }
 0x5db   :  { %v7816_v40 = vpop.f32.mrb[8].mxu1 }
 0x5dc   :  { %v6186_v41 = vpop.f32.mrb[9].mxu1 }
 0x5dd   :  { %v7818_v42 = vpop.f32.mrb[10].mxu1  ;;  %v6438_v41 = vld [vmem:[%s8548_s6 + $0xa4] ss:$8 sps:$4 sm:$0xff]  }
 0x5de   :  { %v1239_v44 = vpack.c.bf16 %v7818_v42, %v7816_v40  ;;  %v6187_v48 = vpop.f32.mrb[11].mxu1 }
 0x5df   :  { %v6436_v48 = vld [vmem:[%s8548_s6 + $0xa0] ss:$8 sps:$4 sm:$0xff]  }
 0x5e3   :  { %v1161_v53 = vpop.f32.mrb[12].mxu1 }
 0x5e4   :  { %v1168_v54 = vmul.f32 0.088388346, %v1161_v53  ;;  %v6192_v51 = vpop.f32.mrb[13].mxu1  ;;  %v6441_v53 = vld [vmem:[%s8548_s6 + $0xb4] ss:$8 sps:$4 sm:$0xff]  }
 0x5e5   :  { %v1164_v57 = vpop.f32.mrb[14].mxu1  ;;  %v6444_v51 = vld [vmem:[%s8548_s6 + $0xc4] ss:$8 sps:$4 sm:$0xff]  }
 0x5e6   :  { %v1169_v58 = vmul.f32 0.088388346, %v1164_v57  ;;  %v6193_v43 = vpop.f32.mrb[15].mxu1  ;;  %v1170_v47 = vadd.f32 %v1168_v54, %v267_v6  ;;  %v6439_v54 = vld [vmem:[%s8548_s6 + $0xb0] ss:$8 sps:$4 sm:$0xff]  }
 0x5e7   :  { %v6442_v57 = vld [vmem:[%s8548_s6 + $0xc0] ss:$8 sps:$4 sm:$0xff]   ;;  %v6445_v43 = vld [vmem:[%s8548_s6 + $0xd0] ss:$8 sps:$4 sm:$0xff]  }
 0x5e8   :  { %v1172_v52 = vsel %vm1059_vm1, %v1170_v47, -inf  ;;  %v1171_v59 = vadd.f32 %v1169_v58, %v268_v10  ;;  %v6447_v58 = vld [vmem:[%s8548_s6 + $0xd4] ss:$8 sps:$4 sm:$0xff]  }
 0x5e9   :  { %1173 = vmax.xlane.f32.xlu0 %v1172_v52  ;;  %v6448_v52 = vld [vmem:[%s8548_s6 + $0xe0] ss:$8 sps:$4 sm:$0xff]  }
 0x5ea   :  { %v1175_v60 = vsel %vm1059_vm1, %v1171_v59, -inf }
 0x5eb   :  { %1176 = vmax.xlane.f32.xlu1 %v1175_v60  ;;  %v6451_v60 = vld [vmem:[%s8548_s6 + $0xf0] ss:$8 sps:$4 sm:$0xff]  }
 0x676   :  { %v1174_v61 = vpop.xlane.xlu0 %1173 }
 0x677   :  { %v1178_v62 = vsub.f32 %v1170_v47, %v1174_v61  ;;  %v6450_v47 = vld [vmem:[%s8548_s6 + $0xe4] ss:$8 sps:$4 sm:$0xff]  }
 0x678   :  { %v1177_v63 = vpop.xlane.xlu1 %1176 }
 0x679   :  { %v1180_v0 = vmul.f32 1.442695, %v1178_v62  ;;  %v1179_v1 = vsub.f32 %v1171_v59, %v1177_v63  ;;  %v6453_v59 = vld [vmem:[%s8548_s6 + $0xf4] ss:$8 sps:$4 sm:$0xff]  }
 0x67b   :  { %7106 = vpow2.f32 %v1180_v0  ;;  %v1182_v2 = vmul.f32 1.442695, %v1179_v1 }
 0x67d   :  { %7108 = vpow2.f32 %v1182_v2  ;;  %v1273_v2 = vld [vmem:[%s8549_s7] sm:$0x3] }
 0x685   :  { %v7107_v3 = vpop.eup %7106 }
 0x686   :  { %v1184_v4 = vsel %vm1059_vm1, %v7107_v3, 0.0 }
 0x687   :  { %v7109_v5 = vpop.eup %7108  ;;  %1185 = vadd.xlane.f32.xlu0 %v1184_v4  ;;  %v1282_v4 = vrot.slane %v1273_v2, %v7726_v29 }
 0x688   :  { %v1187_v6 = vsel %vm1059_vm1, %v7109_v5, 0.0 }
 0x689   :  { %1188 = vadd.xlane.f32.xlu1 %v1187_v6 }
 0x714   :  { %v1186_v8 = vpop.xlane.xlu0 %1185 }
 0x715   :  { %7110 = vrcp.f32 %v1186_v8 }
 0x716   :  { %v1189_v9 = vpop.xlane.xlu1 %1188 }
 0x717   :  { %7112 = vrcp.f32 %v1189_v9 }
 0x71f   :  { %v7111_v10 = vpop.eup %7110 }
 0x720   :  { %v1192_v12 = vmul.f32 %v7111_v10, %v7107_v3  ;;  %v1278_v3 = vrot.slane %v1273_v2, %v7729_v30  ;;  %v6511_v2 = vld [vmem:[#allocation9 + $0x128] ss:$16 sps:$4 sm:$0xff]  }
 0x721   :  { %v7113_v11 = vpop.eup %7112 }
 0x722   :  { %v1193_v13 = vmul.f32 %v7113_v11, %v7109_v5 }
 0x724   :  { %v1194_v15 = vpack.c.bf16 %v1193_v13, %v1192_v12 }
 0x726   :  { %6197 = vmatmul.mubr.msk.bf16.vlgmr.msra.gmra.mrb[16].mxu1 %vm1059_vm1, %v1194_v15  ;;  %v6454_v15 = vld [vmem:[#allocation9] ss:$16 sps:$4 sm:$0xff]  }
 0x727   :  { %1446 = vmatpush1.bf16.msra.mxu1 %v6406_v14 }
 0x728   :  { %1447 = vmatprep.subr.bf16.mxu1 %v6411_v16  ;;  %v6456_v16 = vld [vmem:[#allocation9 + $0x4] ss:$16 sps:$4 sm:$0xff]  }
 0x729   :  { %1964 = vmatprep.subr.bf16.mxu0 %v6456_v16  ;;  %v6517_v16 = vld [vmem:[#allocation9 + $0x148] ss:$16 sps:$4 sm:$0xff]  }
 0x72a   :  { %1965 = vmatpush1.bf16.msra.mxu0 %v6454_v15  ;;  %v6519_v15 = vld [vmem:[#allocation9 + $0x14c] ss:$16 sps:$4 sm:$0xff]  }
 0x72b   :  { %1448 = vmatpush1.bf16.msra.mxu1 %v6409_v17  ;;  %v6457_v17 = vld [vmem:[#allocation9 + $0x8] ss:$16 sps:$4 sm:$0xff]  }
 0x72c   :  { %1449 = vmatprep.subr.bf16.mxu1 %v6414_v18  ;;  %v6462_v18 = vld [vmem:[#allocation9 + $0x24] ss:$16 sps:$4 sm:$0xff]  }
 0x72d   :  { %1966 = vmatprep.subr.bf16.mxu0 %v6462_v18  ;;  %v6520_v18 = vld [vmem:[#allocation9 + $0x160] ss:$16 sps:$4 sm:$0xff]  }
 0x72f   :  { %1450 = vmatpush1.bf16.msra.mxu1 %v6412_v19  ;;  %v6465_v19 = vld [vmem:[#allocation9 + $0x2c] ss:$16 sps:$4 sm:$0xff]  }
 0x730   :  { %1451 = vmatprep.subr.bf16.mxu1 %v6417_v22  ;;  %v6468_v22 = vld [vmem:[#allocation9 + $0x44] ss:$16 sps:$4 sm:$0xff]  }
 0x733   :  { %1452 = vmatpush1.bf16.msra.mxu1 %v6415_v24  ;;  %v6471_v24 = vld [vmem:[#allocation9 + $0x4c] ss:$16 sps:$4 sm:$0xff]  }
 0x734   :  { %1453 = vmatprep.subr.bf16.mxu1 %v6420_v25  ;;  %v6466_v25 = vld [vmem:[#allocation9 + $0x40] ss:$16 sps:$4 sm:$0xff]  }
 0x737   :  { %1454 = vmatpush1.bf16.msra.mxu1 %v6418_v26  ;;  %v6469_v26 = vld [vmem:[#allocation9 + $0x48] ss:$16 sps:$4 sm:$0xff]  }
 0x738   :  { %1455 = vmatprep.subr.bf16.mxu1 %v6423_v27  ;;  %v6474_v27 = vld [vmem:[#allocation9 + $0x64] ss:$16 sps:$4 sm:$0xff]  }
 0x73b   :  { %1456 = vmatpush1.bf16.msra.mxu1 %v6421_v31  ;;  %v6477_v31 = vld [vmem:[#allocation9 + $0x6c] ss:$16 sps:$4 sm:$0xff]  }
 0x73c   :  { %1457 = vmatprep.subr.bf16.mxu1 %v6426_v32  ;;  %v6472_v32 = vld [vmem:[#allocation9 + $0x60] ss:$16 sps:$4 sm:$0xff]  }
 0x73f   :  { %1458 = vmatpush1.bf16.msra.mxu1 %v6424_v33  ;;  %v6475_v33 = vld [vmem:[#allocation9 + $0x68] ss:$16 sps:$4 sm:$0xff]  }
 0x740   :  { %1459 = vmatprep.subr.bf16.mxu1 %v6429_v34  ;;  %v6480_v34 = vld [vmem:[#allocation9 + $0x84] ss:$16 sps:$4 sm:$0xff]  }
 0x743   :  { %1460 = vmatpush1.bf16.msra.mxu1 %v6427_v35  ;;  %v6483_v35 = vld [vmem:[#allocation9 + $0x8c] ss:$16 sps:$4 sm:$0xff]  }
 0x744   :  { %1461 = vmatprep.subr.bf16.mxu1 %v6432_v36  ;;  %v6478_v36 = vld [vmem:[#allocation9 + $0x80] ss:$16 sps:$4 sm:$0xff]  }
 0x747   :  { %1462 = vmatpush1.bf16.msra.mxu1 %v6430_v37  ;;  %v6481_v37 = vld [vmem:[#allocation9 + $0x88] ss:$16 sps:$4 sm:$0xff]  }
 0x748   :  { %1463 = vmatprep.subr.bf16.mxu1 %v6435_v38  ;;  %v6486_v38 = vld [vmem:[#allocation9 + $0xa4] ss:$16 sps:$4 sm:$0xff]  }
 0x74b   :  { %1464 = vmatpush1.bf16.msra.mxu1 %v6433_v39  ;;  %v6489_v39 = vld [vmem:[#allocation9 + $0xac] ss:$16 sps:$4 sm:$0xff]  }
 0x74c   :  { %1465 = vmatprep.subr.bf16.mxu1 %v6438_v41  ;;  %v6484_v41 = vld [vmem:[#allocation9 + $0xa0] ss:$16 sps:$4 sm:$0xff]  }
 0x74f   :  { %1466 = vmatpush1.bf16.msra.mxu1 %v6436_v48  ;;  %v6487_v48 = vld [vmem:[#allocation9 + $0xa8] ss:$16 sps:$4 sm:$0xff]  }
 0x750   :  { %1467 = vmatprep.subr.bf16.mxu1 %v6441_v53  ;;  %v6492_v53 = vld [vmem:[#allocation9 + $0xc4] ss:$16 sps:$4 sm:$0xff]  }
 0x753   :  { %1468 = vmatpush1.bf16.msra.mxu1 %v6439_v54  ;;  %v6495_v54 = vld [vmem:[#allocation9 + $0xcc] ss:$16 sps:$4 sm:$0xff]  }
 0x754   :  { %1469 = vmatprep.subr.bf16.mxu1 %v6444_v51  ;;  %v6490_v51 = vld [vmem:[#allocation9 + $0xc0] ss:$16 sps:$4 sm:$0xff]  }
 0x757   :  { %1470 = vmatpush1.bf16.msra.mxu1 %v6442_v57  ;;  %v6493_v57 = vld [vmem:[#allocation9 + $0xc8] ss:$16 sps:$4 sm:$0xff]  }
 0x758   :  { %1471 = vmatprep.subr.bf16.mxu1 %v6447_v58  ;;  %v6498_v58 = vld [vmem:[#allocation9 + $0xe4] ss:$16 sps:$4 sm:$0xff]  }
 0x75b   :  { %1472 = vmatpush1.bf16.msra.mxu1 %v6445_v43  ;;  %v6501_v43 = vld [vmem:[#allocation9 + $0xec] ss:$16 sps:$4 sm:$0xff]  }
 0x75c   :  { %1473 = vmatprep.subr.bf16.mxu1 %v6450_v47  ;;  %v6496_v47 = vld [vmem:[#allocation9 + $0xe0] ss:$16 sps:$4 sm:$0xff]  }
 0x75f   :  { %1474 = vmatpush1.bf16.msra.mxu1 %v6448_v52  ;;  %v6499_v52 = vld [vmem:[#allocation9 + $0xe8] ss:$16 sps:$4 sm:$0xff]  }
 0x760   :  { %1475 = vmatprep.subr.bf16.mxu1 %v6453_v59  ;;  %v6504_v59 = vld [vmem:[#allocation9 + $0x104] ss:$16 sps:$4 sm:$0xff]  }
 0x763   :  { %1476 = vmatpush1.bf16.msra.mxu1 %v6451_v60  ;;  %v6507_v60 = vld [vmem:[#allocation9 + $0x10c] ss:$16 sps:$4 sm:$0xff]  }
 0x7f9   :  { %v1232_v61 = vpop.f32.mrb[16].mxu1 }
 0x7fa   :  { %v6198_v62 = vpop.f32.mrb[17].mxu1 }
 0x7fb   :  { %v1235_v63 = vpop.f32.mrb[18].mxu1  ;;  %v6505_v62 = vld [vmem:[#allocation9 + $0x108] ss:$16 sps:$4 sm:$0xff]  }
 0x7fc   :  { %v1240_v0 = vpack.c.bf16 %v1235_v63, %v1232_v61  ;;  %v6199_v1 = vpop.f32.mrb[19].mxu1  ;;  %v6502_v61 = vld [vmem:[#allocation9 + $0x100] ss:$16 sps:$4 sm:$0xff]   ;;  %v6510_v63 = vld [vmem:[#allocation9 + $0x124] ss:$16 sps:$4 sm:$0xff]  }
 0x7fd   :  { %v6508_v1 = vld [vmem:[#allocation9 + $0x120] ss:$16 sps:$4 sm:$0xff]  }
 0x7fe   :  { %1477 = vmatprep.mubr.bf16.mxu1 %v1240_v0  ;;  %v6513_v0 = vld [vmem:[#allocation9 + $0x12c] ss:$16 sps:$4 sm:$0xff]  }
 0x7ff   :  { %1478 = vmatmul.mubr.bf16.vlgmr.msra.gmra.mrb[20].mxu1 %v1239_v44 }
 0x8d2   :  { %v1479_v5 = vpop.f32.mrb[20].mxu1 }
 0x8d3   :  { %v1480_v6 = vadd.f32 %v1479_v5, %v1278_v3  ;;  %v1481_v7 = vpop.f32.mrb[21].mxu1 }
 0x8d4   :  { %v1482_v8 = vadd.f32 %v1481_v7, %v1282_v4  ;;  %v1483_v9 = vpop.f32.mrb[22].mxu1 }
 0x8d5   :  { %v7932_v10 = vadd.f32 %v1480_v6, %v7746_v45  ;;  %v1484_v11 = vadd.f32 %v1483_v9, %v1278_v3  ;;  %v1485_v12 = vpop.f32.mrb[23].mxu1 }
 0x8d6   :  { %v7935_v40 = vadd.f32 %v1482_v8, %v7742_v46  ;;  %v1486_v42 = vadd.f32 %v1485_v12, %v1282_v4  ;;  %v6459_v46 = vld [vmem:[#allocation9 + $0xc] ss:$16 sps:$4 sm:$0xff]  }
 0x8d7   :  { %v7938_v44 = vadd.f32 %v1484_v11, %v7748_v50  ;;  %2007 = vmatprep.subr.bf16.mxu1 %v6459_v46  ;;  %v6460_v50 = vld [vmem:[#allocation9 + $0x20] ss:$16 sps:$4 sm:$0xff]   ;;  %v6525_v46 = vld [vmem:[#allocation9 + $0x16c] ss:$16 sps:$4 sm:$0xff]  }
 0x8d8   :  { %v7941_v13 = vadd.f32 %v1486_v42, %v7744_v49  ;;  %v1494_v14 = vadd.f32 %v7935_v40, %v7932_v10  ;;  %2008 = vmatpush1.bf16.msra.mxu1 %v6457_v17  ;;  %v6463_v49 = vld [vmem:[#allocation9 + $0x28] ss:$16 sps:$4 sm:$0xff]   ;;  %1967 = vmatpush1.bf16.msra.mxu0 %v6460_v50  ;;  %v6522_v17 = vld [vmem:[#allocation9 + $0x164] ss:$16 sps:$4 sm:$0xff]  }
 0x8d9   :  { %2009 = vmatprep.subr.bf16.mxu1 %v6465_v19  ;;  %1968 = vmatprep.subr.bf16.mxu0 %v6468_v22  ;;  %v6523_v19 = vld [vmem:[#allocation9 + $0x168] ss:$16 sps:$4 sm:$0xff]   ;;  %v6528_v50 = vld [vmem:[#allocation9 + $0x184] ss:$16 sps:$4 sm:$0xff]   ;;  %v6526_v22 = vld [vmem:[#allocation9 + $0x180] ss:$16 sps:$4 sm:$0xff]  }
 0x8da   :  { %1495 = vadd.xlane.f32.xlu0 %v1494_v14  ;;  %v1497_v45 = vadd.f32 %v7941_v13, %v7938_v44 }
 0x8dc   :  { %1498 = vadd.xlane.f32.xlu1 %v1497_v45  ;;  %2010 = vmatpush1.bf16.msra.mxu1 %v6463_v49  ;;  %v6531_v49 = vld [vmem:[#allocation9 + $0x18c] ss:$16 sps:$4 sm:$0xff]  }
 0x8dd   :  { %2011 = vmatprep.subr.bf16.mxu1 %v6471_v24  ;;  %1969 = vmatpush1.bf16.msra.mxu0 %v6466_v25  ;;  %v6529_v24 = vld [vmem:[#allocation9 + $0x188] ss:$16 sps:$4 sm:$0xff]   ;;  %v6534_v25 = vld [vmem:[#allocation9 + $0x1a4] ss:$16 sps:$4 sm:$0xff]  }
 0x8de   :  { %1970 = vmatprep.subr.bf16.mxu0 %v6474_v27  ;;  %v6532_v27 = vld [vmem:[#allocation9 + $0x1a0] ss:$16 sps:$4 sm:$0xff]  }
 0x8e0   :  { %2012 = vmatpush1.bf16.msra.mxu1 %v6469_v26  ;;  %v6537_v26 = vld [vmem:[#allocation9 + $0x1ac] ss:$16 sps:$4 sm:$0xff]  }
 0x8e1   :  { %2013 = vmatprep.subr.bf16.mxu1 %v6477_v31  ;;  %1971 = vmatpush1.bf16.msra.mxu0 %v6472_v32  ;;  %v6535_v31 = vld [vmem:[#allocation9 + $0x1a8] ss:$16 sps:$4 sm:$0xff]   ;;  %v6538_v32 = vld [vmem:[#allocation9 + $0x1c0] ss:$16 sps:$4 sm:$0xff]  }
 0x8e2   :  { %1972 = vmatprep.subr.bf16.mxu0 %v6480_v34  ;;  %v6541_v34 = vld [vmem:[#allocation9 + $0x1c8] ss:$16 sps:$4 sm:$0xff]  }
 0x8e4   :  { %2014 = vmatpush1.bf16.msra.mxu1 %v6475_v33  ;;  %v6540_v33 = vld [vmem:[#allocation9 + $0x1c4] ss:$16 sps:$4 sm:$0xff]  }
 0x8e5   :  { %2015 = vmatprep.subr.bf16.mxu1 %v6483_v35  ;;  %1973 = vmatpush1.bf16.msra.mxu0 %v6478_v36  ;;  %v6543_v35 = vld [vmem:[#allocation9 + $0x1cc] ss:$16 sps:$4 sm:$0xff]   ;;  %v6546_v36 = vld [vmem:[#allocation9 + $0x1e4] ss:$16 sps:$4 sm:$0xff]  }
 0x8e6   :  { %1974 = vmatprep.subr.bf16.mxu0 %v6486_v38  ;;  %v6544_v38 = vld [vmem:[#allocation9 + $0x1e0] ss:$16 sps:$4 sm:$0xff]  }
 0x8e8   :  { %2016 = vmatpush1.bf16.msra.mxu1 %v6481_v37  ;;  %v6549_v37 = vld [vmem:[#allocation9 + $0x1ec] ss:$16 sps:$4 sm:$0xff]  }
 0x8e9   :  { %2017 = vmatprep.subr.bf16.mxu1 %v6489_v39  ;;  %1975 = vmatpush1.bf16.msra.mxu0 %v6484_v41  ;;  %v6547_v39 = vld [vmem:[#allocation9 + $0x1e8] ss:$16 sps:$4 sm:$0xff]   ;;  %v6552_v41 = vld [vmem:[#allocation10 + $0x4] ss:$8 sps:$4 sm:$0xff]  }
 0x8ea   :  { %1976 = vmatprep.subr.bf16.mxu0 %v6492_v53 }
 0x8ec   :  { %2018 = vmatpush1.bf16.msra.mxu1 %v6487_v48 }
 0x8ed   :  { %2019 = vmatprep.subr.bf16.mxu1 %v6495_v54  ;;  %1977 = vmatpush1.bf16.msra.mxu0 %v6490_v51 }
 0x8ee   :  { %1978 = vmatprep.subr.bf16.mxu0 %v6498_v58 }
 0x8f0   :  { %2020 = vmatpush1.bf16.msra.mxu1 %v6493_v57 }
 0x8f1   :  { %2021 = vmatprep.subr.bf16.mxu1 %v6501_v43  ;;  %1979 = vmatpush1.bf16.msra.mxu0 %v6496_v47  ;;  %v1492_v43 = vld [vmem:[#allocation6] sm:$0x3]  ;;  %v1493_v47 = vld [vmem:[#allocation7] sm:$0x3] }
 0x8f2   :  { %1980 = vmatprep.subr.bf16.mxu0 %v6504_v59  ;;  %v1534_v59 = vrot.slane %v1492_v43, %v7726_v29 }
 0x8f4   :  { %2022 = vmatpush1.bf16.msra.mxu1 %v6499_v52  ;;  %v1530_v52 = vrot.slane %v1492_v43, %v7729_v30 }
 0x8f5   :  { %2023 = vmatprep.subr.bf16.mxu1 %v6507_v60  ;;  %1981 = vmatpush1.bf16.msra.mxu0 %v6502_v61 }
 0x8f6   :  { %1982 = vmatprep.subr.bf16.mxu0 %v6510_v63 }
 0x8f8   :  { %2024 = vmatpush1.bf16.msra.mxu1 %v6505_v62 }
 0x8f9   :  { %2025 = vmatprep.subr.bf16.mxu1 %v6513_v0  ;;  %1983 = vmatpush1.bf16.msra.mxu0 %v6508_v1  ;;  %v1545_v0 = vrot.slane %v1493_v47, %v7729_v30  ;;  %v1549_v1 = vrot.slane %v1493_v47, %v7726_v29 }
 0x8fc   :  { %2026 = vmatpush1.bf16.msra.mxu1 %v6511_v2 }
 0x8fd   :  { %2027 = vmatprep.subr.bf16.mxu1 %v6519_v15  ;;  %v6556_v15 = vld [vmem:[#allocation10 + $0x20] ss:$8 sps:$4 sm:$0xff]  }
 0x900   :  { %2028 = vmatpush1.bf16.msra.mxu1 %v6517_v16  ;;  %v6559_v16 = vld [vmem:[#allocation10 + $0x30] ss:$8 sps:$4 sm:$0xff]  }
 0x901   :  { %2029 = vmatprep.subr.bf16.mxu1 %v6525_v46  ;;  %v6562_v46 = vld [vmem:[#allocation10 + $0x40] ss:$8 sps:$4 sm:$0xff]  }
 0x904   :  { %2030 = vmatpush1.bf16.msra.mxu1 %v6523_v19  ;;  %v6565_v19 = vld [vmem:[#allocation10 + $0x50] ss:$8 sps:$4 sm:$0xff]  }
 0x905   :  { %2031 = vmatprep.subr.bf16.mxu1 %v6531_v49  ;;  %v6568_v49 = vld [vmem:[#allocation10 + $0x60] ss:$8 sps:$4 sm:$0xff]  }
 0x908   :  { %2032 = vmatpush1.bf16.msra.mxu1 %v6529_v24  ;;  %v6571_v24 = vld [vmem:[#allocation10 + $0x70] ss:$8 sps:$4 sm:$0xff]  }
 0x909   :  { %2033 = vmatprep.subr.bf16.mxu1 %v6537_v26  ;;  %v6574_v26 = vld [vmem:[#allocation10 + $0x80] ss:$8 sps:$4 sm:$0xff]  }
 0x90c   :  { %2034 = vmatpush1.bf16.msra.mxu1 %v6535_v31  ;;  %v6577_v31 = vld [vmem:[#allocation10 + $0x90] ss:$8 sps:$4 sm:$0xff]  }
 0x90d   :  { %2035 = vmatprep.subr.bf16.mxu1 %v6543_v35  ;;  %v6583_v35 = vld [vmem:[#allocation10 + $0xb0] ss:$8 sps:$4 sm:$0xff]  }
 0x910   :  { %2036 = vmatpush1.bf16.msra.mxu1 %v6541_v34  ;;  %v6585_v34 = vld [vmem:[#allocation10 + $0xb4] ss:$8 sps:$4 sm:$0xff]  }
 0x911   :  { %2037 = vmatprep.subr.bf16.mxu1 %v6549_v37  ;;  %v6586_v37 = vld [vmem:[#allocation10 + $0xc0] ss:$8 sps:$4 sm:$0xff]  }
 0x914   :  { %2038 = vmatpush1.bf16.msra.mxu1 %v6547_v39  ;;  %v6589_v39 = vld [vmem:[#allocation10 + $0xd0] ss:$8 sps:$4 sm:$0xff]  }
 0x967   :  { %v1496_v3 = vpop.xlane.xlu0 %1495 }
 0x968   :  { %v1500_v4 = vmul.f32 0.00390625, %v1496_v3 }
 0x969   :  { %v1499_v5 = vpop.xlane.xlu1 %1498 }
 0x96a   :  { %v7948_v6 = vsub.f32 %v7932_v10, %v1500_v4  ;;  %v7951_v7 = vsub.f32 %v7935_v40, %v1500_v4  ;;  %v1501_v8 = vmul.f32 0.00390625, %v1499_v5 }
 0x96c   :  { %v7954_v9 = vsub.f32 %v7938_v44, %v1501_v8  ;;  %v7957_v11 = vsub.f32 %v7941_v13, %v1501_v8  ;;  %v1506_v12 = vmul.f32 %v7948_v6, %v7948_v6  ;;  %v1507_v42 = vmul.f32 %v7951_v7, %v7951_v7  ;;  %v6516_v44 = vld [vmem:[#allocation9 + $0x144] ss:$16 sps:$4 sm:$0xff]   ;;  %v6514_v13 = vld [vmem:[#allocation9 + $0x140] ss:$16 sps:$4 sm:$0xff]  }
 0x96d   :  { %1984 = vmatprep.subr.bf16.mxu0 %v6516_v44  ;;  %v6558_v44 = vld [vmem:[#allocation10 + $0x24] ss:$8 sps:$4 sm:$0xff]  }
 0x96e   :  { %v1510_v14 = vadd.f32 %v1507_v42, %v1506_v12  ;;  %v1508_v10 = vmul.f32 %v7954_v9, %v7954_v9  ;;  %v1509_v40 = vmul.f32 %v7957_v11, %v7957_v11  ;;  %1985 = vmatpush1.bf16.msra.mxu0 %v6514_v13  ;;  %v6561_v13 = vld [vmem:[#allocation10 + $0x34] ss:$8 sps:$4 sm:$0xff]  }
 0x96f   :  { %1986 = vmatprep.subr.bf16.mxu0 %v6522_v17  ;;  %v6564_v17 = vld [vmem:[#allocation10 + $0x44] ss:$8 sps:$4 sm:$0xff]  }
 0x970   :  { %1511 = vadd.xlane.f32.xlu0 %v1510_v14  ;;  %v1513_v45 = vadd.f32 %v1509_v40, %v1508_v10  ;;  %v6550_v40 = vld [vmem:[#allocation10] ss:$8 sps:$4 sm:$0xff]  }
 0x972   :  { %1514 = vadd.xlane.f32.xlu1 %v1513_v45  ;;  %1987 = vmatpush1.bf16.msra.mxu0 %v6520_v18  ;;  %v6553_v45 = vld [vmem:[#allocation10 + $0x10] ss:$8 sps:$4 sm:$0xff]   ;;  %v6567_v18 = vld [vmem:[#allocation10 + $0x54] ss:$8 sps:$4 sm:$0xff]  }
 0x973   :  { %1988 = vmatprep.subr.bf16.mxu0 %v6528_v50  ;;  %v6570_v50 = vld [vmem:[#allocation10 + $0x64] ss:$8 sps:$4 sm:$0xff]  }
 0x976   :  { %1989 = vmatpush1.bf16.msra.mxu0 %v6526_v22  ;;  %v6573_v22 = vld [vmem:[#allocation10 + $0x74] ss:$8 sps:$4 sm:$0xff]  }
 0x977   :  { %1990 = vmatprep.subr.bf16.mxu0 %v6534_v25  ;;  %v6576_v25 = vld [vmem:[#allocation10 + $0x84] ss:$8 sps:$4 sm:$0xff]  }
 0x97a   :  { %1991 = vmatpush1.bf16.msra.mxu0 %v6532_v27  ;;  %v6579_v27 = vld [vmem:[#allocation10 + $0x94] ss:$8 sps:$4 sm:$0xff]  }
 0x97b   :  { %1992 = vmatprep.subr.bf16.mxu0 %v6540_v33  ;;  %v6580_v33 = vld [vmem:[#allocation10 + $0xa0] ss:$8 sps:$4 sm:$0xff]  }
 0x97e   :  { %1993 = vmatpush1.bf16.msra.mxu0 %v6538_v32  ;;  %v6582_v32 = vld [vmem:[#allocation10 + $0xa4] ss:$8 sps:$4 sm:$0xff]  }
 0x97f   :  { %1994 = vmatprep.subr.bf16.mxu0 %v6546_v36  ;;  %v6588_v36 = vld [vmem:[#allocation10 + $0xc4] ss:$8 sps:$4 sm:$0xff]  }
 0x982   :  { %1995 = vmatpush1.bf16.msra.mxu0 %v6544_v38  ;;  %v6591_v38 = vld [vmem:[#allocation10 + $0xd4] ss:$8 sps:$4 sm:$0xff]  }
 0x983   :  { %2522 = vmatprep.subr.bf16.mxu0 %v6552_v41  ;;  %v6594_v41 = vld [vmem:[#allocation10 + $0xe4] ss:$8 sps:$4 sm:$0xff]  }
 0x9fd   :  { %v1512_v48 = vpop.xlane.xlu0 %1511 }
 0x9fe   :  { %v1516_v53 = vmul.f32 0.00390625, %v1512_v48  ;;  %v6592_v48 = vld [vmem:[#allocation10 + $0xe0] ss:$8 sps:$4 sm:$0xff]  }
 0x9ff   :  { %v1515_v54 = vpop.xlane.xlu1 %1514 }
 0xa00   :  { %v1518_v51 = vadd.f32 1e-05, %v1516_v53  ;;  %v1517_v57 = vmul.f32 0.00390625, %v1515_v54  ;;  %v6595_v53 = vld [vmem:[#allocation10 + $0xf0] ss:$8 sps:$4 sm:$0xff]  }
 0xa01   :  { %v6597_v54 = vld [vmem:[#allocation10 + $0xf4] ss:$8 sps:$4 sm:$0xff]  }
 0xa02   :  { %7114 = vrsqrt.f32 %v1518_v51  ;;  %v1519_v58 = vadd.f32 1e-05, %v1517_v57  ;;  %v6600_v51 = vld [vmem:[#allocation10 + $0x104] ss:$8 sps:$4 sm:$0xff]   ;;  %v1622_v57 = vld [vmem:[%s8553_s11] sm:$0xf] }
 0xa03   :  { %v1635_v43 = vrot.slane %v1622_v57, %v7763_v21  ;;  %v1631_v47 = vrot.slane %v1622_v57, %v7726_v29 }
 0xa04   :  { %7116 = vrsqrt.f32 %v1519_v58  ;;  %v1627_v58 = vrot.slane %v1622_v57, %v7729_v30 }
 0xa0c   :  { %v7115_v60 = vpop.eup %7114 }
 0xa0d   :  { %v1522_v61 = vmul.f32 %v7115_v60, %v7948_v6  ;;  %v1523_v62 = vmul.f32 %v7115_v60, %v7951_v7 }
 0xa0e   :  { %v7117_v63 = vpop.eup %7116 }
 0xa0f   :  { %v1524_v2 = vmul.f32 %v7117_v63, %v7954_v9  ;;  %v1525_v3 = vmul.f32 %v7117_v63, %v7957_v11  ;;  %v1538_v4 = vmul.f32 %v1534_v59, %v1523_v62  ;;  %v1537_v5 = vmul.f32 %v1530_v52, %v1522_v61  ;;  %v6555_v11 = vld [vmem:[#allocation10 + $0x14] ss:$8 sps:$4 sm:$0xff]  }
 0xa11   :  { %v1540_v8 = vmul.f32 %v1534_v59, %v1525_v3  ;;  %v1539_v12 = vmul.f32 %v1530_v52, %v1524_v2  ;;  %v7975_v42 = vadd.f32 %v1549_v1, %v1538_v4  ;;  %v7979_v6 = vadd.f32 %v1545_v0, %v1537_v5 }
 0xa12   :  { %v1639_v52 = vrot.slane %v1622_v57, %v7769_v23 }
 0xa13   :  { %v7977_v14 = vadd.f32 %v1549_v1, %v1540_v8  ;;  %v7981_v7 = vadd.f32 %v1545_v0, %v1539_v12 }
 0xa15   :  { %v1557_v10 = vpack.c.bf16 %v7977_v14, %v7975_v42  ;;  %v1556_v9 = vpack.c.bf16 %v7981_v7, %v7979_v6 }
 0xa17   :  { %1996 = vmatprep.mubr.bf16.mxu0 %v1557_v10  ;;  %2039 = vmatprep.mubr.bf16.mxu1 %v1557_v10 }
 0xa18   :  { %1997 = vmatmul.mubr.bf16.vlgmr.msra.gmra.mrb[8].mxu0 %v1556_v9  ;;  %2040 = vmatmul.mubr.bf16.vlgmr.msra.gmra.mrb[24].mxu1 %v1556_v9 }
 0xa19   :  { %2523 = vmatpush1.bf16.msra.mxu0 %v6550_v40 }
 0xa1a   :  { %2524 = vmatprep.subr.bf16.mxu0 %v6555_v11 }
 0xa1d   :  { %2525 = vmatpush1.bf16.msra.mxu0 %v6553_v45 }
 0xa1e   :  { %2526 = vmatprep.subr.bf16.mxu0 %v6558_v44 }
 0xa21   :  { %2527 = vmatpush1.bf16.msra.mxu0 %v6556_v15 }
 0xa22   :  { %2528 = vmatprep.subr.bf16.mxu0 %v6561_v13 }
 0xa25   :  { %2529 = vmatpush1.bf16.msra.mxu0 %v6559_v16 }
 0xa26   :  { %2530 = vmatprep.subr.bf16.mxu0 %v6564_v17 }
 0xa29   :  { %2531 = vmatpush1.bf16.msra.mxu0 %v6562_v46 }
 0xa2a   :  { %2532 = vmatprep.subr.bf16.mxu0 %v6567_v18 }
 0xa2d   :  { %2533 = vmatpush1.bf16.msra.mxu0 %v6565_v19 }
 0xa2e   :  { %2534 = vmatprep.subr.bf16.mxu0 %v6570_v50 }
 0xa31   :  { %2535 = vmatpush1.bf16.msra.mxu0 %v6568_v49 }
 0xa32   :  { %2536 = vmatprep.subr.bf16.mxu0 %v6573_v22 }
 0xa35   :  { %2537 = vmatpush1.bf16.msra.mxu0 %v6571_v24 }
 0xa36   :  { %2538 = vmatprep.subr.bf16.mxu0 %v6576_v25 }
 0xa39   :  { %2539 = vmatpush1.bf16.msra.mxu0 %v6574_v26 }
 0xa3a   :  { %2540 = vmatprep.subr.bf16.mxu0 %v6579_v27 }
 0xa3d   :  { %2541 = vmatpush1.bf16.msra.mxu0 %v6577_v31 }
 0xa3e   :  { %2542 = vmatprep.subr.bf16.mxu0 %v6582_v32 }
 0xa41   :  { %2543 = vmatpush1.bf16.msra.mxu0 %v6580_v33 }
 0xa42   :  { %2544 = vmatprep.subr.bf16.mxu0 %v6585_v34 }
 0xa45   :  { %2545 = vmatpush1.bf16.msra.mxu0 %v6583_v35 }
 0xa46   :  { %2546 = vmatprep.subr.bf16.mxu0 %v6588_v36 }
 0xa49   :  { %2547 = vmatpush1.bf16.msra.mxu0 %v6586_v37 }
 0xa4a   :  { %2548 = vmatprep.subr.bf16.mxu0 %v6591_v38 }
 0xa4d   :  { %2549 = vmatpush1.bf16.msra.mxu0 %v6589_v39 }
 0xa4e   :  { %2550 = vmatprep.subr.bf16.mxu0 %v6594_v41 }
 0xa51   :  { %2551 = vmatpush1.bf16.msra.mxu0 %v6592_v48 }
 0xa52   :  { %2552 = vmatprep.subr.bf16.mxu0 %v6597_v54 }
 0xa55   :  { %2553 = vmatpush1.bf16.msra.mxu0 %v6595_v53 }
 0xa56   :  { %2565 = vmatprep.subr.bf16.mxu0 %v6600_v51 }
 0xaeb   :  { %v1998_v59 = vpop.f32.mrb[8].mxu0  ;;  %v2041_v60 = vpop.f32.mrb[24].mxu1 }
 0xaec   :  { %v7994_v61 = vadd.f32 %v1998_v59, %v1627_v58  ;;  %v7996_v62 = vadd.f32 %v2041_v60, %v1635_v43  ;;  %v2000_v63 = vpop.f32.mrb[9].mxu0  ;;  %v2043_v0 = vpop.f32.mrb[25].mxu1 }
 0xaed   :  { %v7998_v1 = vadd.f32 %v2000_v63, %v1631_v47  ;;  %v8000_v2 = vadd.f32 %v2043_v0, %v1639_v52  ;;  %v2002_v3 = vpop.f32.mrb[10].mxu0  ;;  %v2045_v4 = vpop.f32.mrb[26].mxu1 }
 0xaee   :  { %v2050_v5 = vmul.f32 %v7994_v61, %v7994_v61  ;;  %v2052_v8 = vmul.f32 %v7996_v62, %v7996_v62  ;;  %v8006_v12 = vadd.f32 %v2002_v3, %v1627_v58  ;;  %v8008_v10 = vadd.f32 %v2045_v4, %v1635_v43  ;;  %v2004_v9 = vpop.f32.mrb[11].mxu0  ;;  %v2047_v40 = vpop.f32.mrb[27].mxu1 }
 0xaef   :  { %v2051_v11 = vmul.f32 %v7998_v1, %v7998_v1  ;;  %v2053_v45 = vmul.f32 %v8000_v2, %v8000_v2  ;;  %v8014_v44 = vadd.f32 %v2004_v9, %v1631_v47  ;;  %v8016_v15 = vadd.f32 %v2047_v40, %v1639_v52 }
 0xaf0   :  { %v2058_v13 = vmul.f32 %v2050_v5, %v7994_v61  ;;  %v2060_v16 = vmul.f32 %v2052_v8, %v7996_v62  ;;  %v2054_v17 = vmul.f32 %v8006_v12, %v8006_v12  ;;  %v2056_v46 = vmul.f32 %v8008_v10, %v8008_v10 }
 0xaf1   :  { %v2059_v18 = vmul.f32 %v2051_v11, %v7998_v1  ;;  %v2061_v19 = vmul.f32 %v2053_v45, %v8000_v2  ;;  %v2055_v50 = vmul.f32 %v8014_v44, %v8014_v44  ;;  %v2057_v49 = vmul.f32 %v8016_v15, %v8016_v15 }
 0xaf2   :  { %v2066_v22 = vmul.f32 0.044715, %v2058_v13  ;;  %v2068_v24 = vmul.f32 0.044715, %v2060_v16  ;;  %v2062_v25 = vmul.f32 %v2054_v17, %v8006_v12  ;;  %v2064_v26 = vmul.f32 %v2056_v46, %v8008_v10 }
 0xaf3   :  { %v2067_v27 = vmul.f32 0.044715, %v2059_v18  ;;  %v2069_v31 = vmul.f32 0.044715, %v2061_v19  ;;  %v2063_v32 = vmul.f32 %v2055_v50, %v8014_v44  ;;  %v2065_v33 = vmul.f32 %v2057_v49, %v8016_v15 }
 0xaf4   :  { %v2074_v34 = vadd.f32 %v2066_v22, %v7994_v61  ;;  %v2076_v35 = vadd.f32 %v2068_v24, %v7996_v62  ;;  %v2070_v36 = vmul.f32 0.044715, %v2062_v25  ;;  %v2072_v37 = vmul.f32 0.044715, %v2064_v26 }
 0xaf5   :  { %v2075_v38 = vadd.f32 %v2067_v27, %v7998_v1  ;;  %v2077_v39 = vadd.f32 %v2069_v31, %v8000_v2  ;;  %v2071_v41 = vmul.f32 0.044715, %v2063_v32  ;;  %v2073_v48 = vmul.f32 0.044715, %v2065_v33 }
 0xaf6   :  { %v2082_v53 = vmul.f32 0.7978846, %v2074_v34  ;;  %v2084_v54 = vmul.f32 0.7978846, %v2076_v35  ;;  %v2078_v51 = vadd.f32 %v2070_v36, %v8006_v12  ;;  %v2080_v57 = vadd.f32 %v2072_v37, %v8008_v10 }
 0xaf7   :  { %v2083_v58 = vmul.f32 0.7978846, %v2075_v38  ;;  %v2085_v43 = vmul.f32 0.7978846, %v2077_v39  ;;  %v2079_v47 = vadd.f32 %v2071_v41, %v8014_v44  ;;  %v2081_v52 = vadd.f32 %v2073_v48, %v8016_v15 }
 0xaf8   :  { %7118 = vtanh.f32 %v2082_v53  ;;  %v2086_v59 = vmul.f32 0.7978846, %v2078_v51  ;;  %v2088_v60 = vmul.f32 0.7978846, %v2080_v57  ;;  %v6603_v51 = vld [vmem:[#allocation10 + $0x114] ss:$8 sps:$4 sm:$0xff]  }
 0xaf9   :  { %7120 = vtanh.f32 %v2084_v54  ;;  %v2087_v63 = vmul.f32 0.7978846, %v2079_v47  ;;  %v2089_v0 = vmul.f32 0.7978846, %v2081_v52  ;;  %v6598_v54 = vld [vmem:[#allocation10 + $0x100] ss:$8 sps:$4 sm:$0xff]  }
 0xafa   :  { %7122 = vtanh.f32 %v2083_v58  ;;  %v6612_v57 = vld [vmem:[#allocation10 + $0x144] ss:$8 sps:$4 sm:$0xff]   ;;  %v6610_v58 = vld [vmem:[#allocation10 + $0x140] ss:$8 sps:$4 sm:$0xff]   ;;  %v6613_v47 = vld [vmem:[#allocation10 + $0x150] ss:$8 sps:$4 sm:$0xff]  }
 0xafb   :  { %7124 = vtanh.f32 %v2085_v43  ;;  %v6615_v43 = vld [vmem:[#allocation10 + $0x154] ss:$8 sps:$4 sm:$0xff]   ;;  %v6618_v52 = vld [vmem:[#allocation10 + $0x164] ss:$8 sps:$4 sm:$0xff]  }
 0xafc   :  { %7126 = vtanh.f32 %v2086_v59  ;;  %v6616_v59 = vld [vmem:[#allocation10 + $0x160] ss:$8 sps:$4 sm:$0xff]  }
 0xafd   :  { %7128 = vtanh.f32 %v2088_v60  ;;  %v6621_v60 = vld [vmem:[#allocation10 + $0x174] ss:$8 sps:$4 sm:$0xff]  }
 0xafe   :  { %7130 = vtanh.f32 %v2087_v63  ;;  %v6619_v63 = vld [vmem:[#allocation10 + $0x170] ss:$8 sps:$4 sm:$0xff]  }
 0xaff   :  { %7132 = vtanh.f32 %v2089_v0  ;;  %v6624_v0 = vld [vmem:[#allocation10 + $0x184] ss:$8 sps:$4 sm:$0xff]  }
 0xb02   :  { %v7119_v3 = vpop.eup %7118 }
 0xb03   :  { %v7121_v4 = vpop.eup %7120  ;;  %v2098_v5 = vadd.f32 1.0, %v7119_v3  ;;  %v6622_v3 = vld [vmem:[#allocation10 + $0x180] ss:$8 sps:$4 sm:$0xff]  }
 0xb04   :  { %v7123_v8 = vpop.eup %7122  ;;  %v2100_v9 = vadd.f32 1.0, %v7121_v4  ;;  %v6627_v4 = vld [vmem:[#allocation10 + $0x194] ss:$8 sps:$4 sm:$0xff]  }
 0xb05   :  { %v7125_v40 = vpop.eup %7124  ;;  %v2099_v11 = vadd.f32 1.0, %v7123_v8  ;;  %v2106_v17 = vmul.f32 0.5, %v2098_v5  ;;  %v6625_v5 = vld [vmem:[#allocation10 + $0x190] ss:$8 sps:$4 sm:$0xff]   ;;  %v6630_v8 = vld [vmem:[#allocation10 + $0x1a4] ss:$8 sps:$4 sm:$0xff]  }
 0xb06   :  { %v7127_v45 = vpop.eup %7126  ;;  %v2101_v13 = vadd.f32 1.0, %v7125_v40  ;;  %v2108_v19 = vmul.f32 0.5, %v2100_v9  ;;  %v6628_v9 = vld [vmem:[#allocation10 + $0x1a0] ss:$8 sps:$4 sm:$0xff]   ;;  %v6633_v40 = vld [vmem:[#allocation10 + $0x1b4] ss:$8 sps:$4 sm:$0xff]  }
 0xb07   :  { %v7129_v16 = vpop.eup %7128  ;;  %v2102_v46 = vadd.f32 1.0, %v7127_v45  ;;  %v2107_v25 = vmul.f32 0.5, %v2099_v11  ;;  %v2114_v32 = vmul.f32 %v2106_v17, %v7994_v61  ;;  %v6631_v11 = vld [vmem:[#allocation10 + $0x1b0] ss:$8 sps:$4 sm:$0xff]   ;;  %v6636_v45 = vld [vmem:[#allocation10 + $0x1c4] ss:$8 sps:$4 sm:$0xff]  }
 0xb08   :  { %v7131_v18 = vpop.eup %7130  ;;  %v2104_v50 = vadd.f32 1.0, %v7129_v16  ;;  %v2109_v31 = vmul.f32 0.5, %v2101_v13  ;;  %v8045_v35 = vmul.f32 %v2108_v19, %v7996_v62  ;;  %v6634_v13 = vld [vmem:[#allocation10 + $0x1c0] ss:$8 sps:$4 sm:$0xff]   ;;  %v6639_v16 = vld [vmem:[#allocation10 + $0x1d4] ss:$8 sps:$4 sm:$0xff]  }
 0xb09   :  { %v7133_v49 = vpop.eup %7132  ;;  %v2110_v22 = vmul.f32 0.5, %v2102_v46  ;;  %v2103_v24 = vadd.f32 1.0, %v7131_v18  ;;  %v2115_v38 = vmul.f32 %v2107_v25, %v7998_v1  ;;  %v6606_v1 = vld [vmem:[#allocation10 + $0x124] ss:$8 sps:$4 sm:$0xff]   ;;  %v6637_v17 = vld [vmem:[#allocation10 + $0x1d0] ss:$8 sps:$4 sm:$0xff]  }
 0xb0a   :  { %v2112_v26 = vmul.f32 0.5, %v2104_v50  ;;  %v2105_v27 = vadd.f32 1.0, %v7133_v49  ;;  %v2117_v48 = vmul.f32 %v2109_v31, %v8000_v2  ;;  %v6609_v2 = vld [vmem:[#allocation10 + $0x134] ss:$8 sps:$4 sm:$0xff]   ;;  %v6642_v46 = vld [vmem:[#allocation10 + $0x1e4] ss:$8 sps:$4 sm:$0xff]  }
 0xb0b   :  { %v2118_v33 = vmul.f32 %v2110_v22, %v8006_v12  ;;  %v2111_v34 = vmul.f32 0.5, %v2103_v24  ;;  %v6640_v18 = vld [vmem:[#allocation10 + $0x1e0] ss:$8 sps:$4 sm:$0xff]   ;;  %v6645_v19 = vld [vmem:[#allocation10 + $0x1f4] ss:$8 sps:$4 sm:$0xff]  }
 0xb0c   :  { %v8048_v36 = vmul.f32 %v2112_v26, %v8008_v10  ;;  %v2113_v37 = vmul.f32 0.5, %v2105_v27  ;;  %v6601_v10 = vld [vmem:[#allocation10 + $0x110] ss:$8 sps:$4 sm:$0xff]   ;;  %v2190_v49 = vld [vmem:[%s8555_s13] sm:$0x3] }
 0xb0d   :  { %v2119_v39 = vmul.f32 %v2111_v34, %v8014_v44  ;;  %v2122_v41 = vpack.c.bf16 %v2118_v33, %v2114_v32  ;;  %v6604_v44 = vld [vmem:[#allocation10 + $0x120] ss:$8 sps:$4 sm:$0xff]   ;;  %v6643_v50 = vld [vmem:[#allocation10 + $0x1f0] ss:$8 sps:$4 sm:$0xff]   ;;  %v2195_v22 = vrot.slane %v2190_v49, %v7729_v30  ;;  %v2199_v24 = vrot.slane %v2190_v49, %v7726_v29 }
 0xb0e   :  { %v2121_v53 = vmul.f32 %v2113_v37, %v8016_v15  ;;  %v2124_v61 = vpack.c.bf16 %v8048_v36, %v8045_v35  ;;  %v6607_v15 = vld [vmem:[#allocation10 + $0x130] ss:$8 sps:$4 sm:$0xff]  }
 0xb0f   :  { %v2123_v12 = vpack.c.bf16 %v2119_v39, %v2115_v38  ;;  %v6703_v49 = vld [vmem:[#allocation4 + $0x4c0] ss:$24 sps:$4 sm:$0xff]  }
 0xb10   :  { %v2125_v62 = vpack.c.bf16 %v2121_v53, %v2117_v48  ;;  %v6646_v48 = vld [vmem:[#allocation4 + $0x300] ss:$24 sps:$4 sm:$0xff]   ;;  %v6648_v53 = vld [vmem:[#allocation4 + $0x304] ss:$24 sps:$4 sm:$0xff]  }
 0xb11   :  { %2554 = vmatprep.mubr.bf16.mxu0 %v2123_v12  ;;  %v6654_v12 = vld [vmem:[#allocation4 + $0x334] ss:$24 sps:$4 sm:$0xff]   ;;  %3288 = vmatprep.subr.bf16.mxu1 %v6648_v53  ;;  %v6709_v53 = vld [vmem:[#allocation4 + $0x4f0] ss:$24 sps:$4 sm:$0xff]  }
 0xb12   :  { %2555 = vmatmul.mubr.bf16.vlgmr.msra.gmra.mrb[12].mxu0 %v2122_v41  ;;  %3289 = vmatpush1.bf16.msra.mxu1 %v6646_v48  ;;  %v6706_v48 = vld [vmem:[#allocation4 + $0x4e0] ss:$24 sps:$4 sm:$0xff]  }
 0xb13   :  { %2566 = vmatpush1.bf16.msra.mxu0 %v6598_v54  ;;  %2597 = vmatprep.mubr.bf16.mxu0 %v2125_v62  ;;  %v6657_v54 = vld [vmem:[#allocation4 + $0x344] ss:$24 sps:$4 sm:$0xff]  }
 0xb14   :  { %2567 = vmatprep.subr.bf16.mxu0 %v6603_v51  ;;  %3290 = vmatprep.subr.bf16.mxu1 %v6654_v12  ;;  %v6660_v62 = vld [vmem:[#allocation4 + $0x364] ss:$24 sps:$4 sm:$0xff]   ;;  %v6663_v51 = vld [vmem:[#allocation4 + $0x374] ss:$24 sps:$4 sm:$0xff]  }
 0xb15   :  { %v6717_v12 = vld [vmem:[#allocation4 + $0x524] ss:$24 sps:$4 sm:$0xff]  }
 0xb17   :  { %2568 = vmatpush1.bf16.msra.mxu0 %v6601_v10  ;;  %v6658_v10 = vld [vmem:[#allocation4 + $0x360] ss:$24 sps:$4 sm:$0xff]  }
 0xb18   :  { %2569 = vmatprep.subr.bf16.mxu0 %v6606_v1  ;;  %v6661_v1 = vld [vmem:[#allocation4 + $0x370] ss:$24 sps:$4 sm:$0xff]  }
 0xb1b   :  { %2570 = vmatpush1.bf16.msra.mxu0 %v6604_v44  ;;  %v6666_v44 = vld [vmem:[#allocation4 + $0x394] ss:$24 sps:$4 sm:$0xff]  }
 0xb1c   :  { %2571 = vmatprep.subr.bf16.mxu0 %v6609_v2  ;;  %v6669_v2 = vld [vmem:[#allocation4 + $0x3a4] ss:$24 sps:$4 sm:$0xff]  }
 0xb1f   :  { %2572 = vmatpush1.bf16.msra.mxu0 %v6607_v15  ;;  %v6664_v15 = vld [vmem:[#allocation4 + $0x390] ss:$24 sps:$4 sm:$0xff]  }
 0xb20   :  { %2573 = vmatprep.subr.bf16.mxu0 %v6612_v57  ;;  %v6667_v57 = vld [vmem:[#allocation4 + $0x3a0] ss:$24 sps:$4 sm:$0xff]  }
 0xb23   :  { %2574 = vmatpush1.bf16.msra.mxu0 %v6610_v58  ;;  %v6672_v58 = vld [vmem:[#allocation4 + $0x3c4] ss:$24 sps:$4 sm:$0xff]  }
 0xb24   :  { %2575 = vmatprep.subr.bf16.mxu0 %v6615_v43  ;;  %v6675_v43 = vld [vmem:[#allocation4 + $0x3d4] ss:$24 sps:$4 sm:$0xff]  }
 0xb27   :  { %2576 = vmatpush1.bf16.msra.mxu0 %v6613_v47  ;;  %v6670_v47 = vld [vmem:[#allocation4 + $0x3c0] ss:$24 sps:$4 sm:$0xff]  }
 0xb28   :  { %2577 = vmatprep.subr.bf16.mxu0 %v6618_v52  ;;  %v6673_v52 = vld [vmem:[#allocation4 + $0x3d0] ss:$24 sps:$4 sm:$0xff]  }
 0xb2b   :  { %2578 = vmatpush1.bf16.msra.mxu0 %v6616_v59  ;;  %v6678_v59 = vld [vmem:[#allocation4 + $0x3f4] ss:$24 sps:$4 sm:$0xff]  }
 0xb2c   :  { %2579 = vmatprep.subr.bf16.mxu0 %v6621_v60  ;;  %v6681_v60 = vld [vmem:[#allocation4 + $0x404] ss:$24 sps:$4 sm:$0xff]  }
 0xb2f   :  { %2580 = vmatpush1.bf16.msra.mxu0 %v6619_v63  ;;  %v6676_v63 = vld [vmem:[#allocation4 + $0x3f0] ss:$24 sps:$4 sm:$0xff]  }
 0xb30   :  { %2581 = vmatprep.subr.bf16.mxu0 %v6624_v0  ;;  %v6679_v0 = vld [vmem:[#allocation4 + $0x400] ss:$24 sps:$4 sm:$0xff]  }
 0xb33   :  { %2582 = vmatpush1.bf16.msra.mxu0 %v6622_v3  ;;  %v6684_v3 = vld [vmem:[#allocation4 + $0x424] ss:$24 sps:$4 sm:$0xff]  }
 0xb34   :  { %2583 = vmatprep.subr.bf16.mxu0 %v6627_v4  ;;  %v6687_v4 = vld [vmem:[#allocation4 + $0x434] ss:$24 sps:$4 sm:$0xff]  }
 0xb37   :  { %2584 = vmatpush1.bf16.msra.mxu0 %v6625_v5  ;;  %v6682_v5 = vld [vmem:[#allocation4 + $0x420] ss:$24 sps:$4 sm:$0xff]  }
 0xb38   :  { %2585 = vmatprep.subr.bf16.mxu0 %v6630_v8  ;;  %v6685_v8 = vld [vmem:[#allocation4 + $0x430] ss:$24 sps:$4 sm:$0xff]  }
 0xb3b   :  { %2586 = vmatpush1.bf16.msra.mxu0 %v6628_v9  ;;  %v6690_v9 = vld [vmem:[#allocation4 + $0x454] ss:$24 sps:$4 sm:$0xff]  }
 0xb3c   :  { %2587 = vmatprep.subr.bf16.mxu0 %v6633_v40  ;;  %v6693_v40 = vld [vmem:[#allocation4 + $0x464] ss:$24 sps:$4 sm:$0xff]  }
 0xb3f   :  { %2588 = vmatpush1.bf16.msra.mxu0 %v6631_v11  ;;  %v6688_v11 = vld [vmem:[#allocation4 + $0x450] ss:$24 sps:$4 sm:$0xff]  }
 0xb40   :  { %2589 = vmatprep.subr.bf16.mxu0 %v6636_v45  ;;  %v6691_v45 = vld [vmem:[#allocation4 + $0x460] ss:$24 sps:$4 sm:$0xff]  }
 0xb43   :  { %2590 = vmatpush1.bf16.msra.mxu0 %v6634_v13  ;;  %v6696_v13 = vld [vmem:[#allocation4 + $0x484] ss:$24 sps:$4 sm:$0xff]  }
 0xb44   :  { %2591 = vmatprep.subr.bf16.mxu0 %v6639_v16  ;;  %v6699_v16 = vld [vmem:[#allocation4 + $0x494] ss:$24 sps:$4 sm:$0xff]  }
 0xb47   :  { %2592 = vmatpush1.bf16.msra.mxu0 %v6637_v17  ;;  %v6694_v17 = vld [vmem:[#allocation4 + $0x480] ss:$24 sps:$4 sm:$0xff]  }
 0xb48   :  { %2593 = vmatprep.subr.bf16.mxu0 %v6642_v46  ;;  %v6697_v46 = vld [vmem:[#allocation4 + $0x490] ss:$24 sps:$4 sm:$0xff]  }
 0xb4b   :  { %2594 = vmatpush1.bf16.msra.mxu0 %v6640_v18  ;;  %v6702_v18 = vld [vmem:[#allocation4 + $0x4b4] ss:$24 sps:$4 sm:$0xff]  }
 0xb4c   :  { %2595 = vmatprep.subr.bf16.mxu0 %v6645_v19  ;;  %v6705_v19 = vld [vmem:[#allocation4 + $0x4c4] ss:$24 sps:$4 sm:$0xff]  }
 0xb4f   :  { %2596 = vmatpush1.bf16.msra.mxu0 %v6643_v50  ;;  %v6700_v50 = vld [vmem:[#allocation4 + $0x4b0] ss:$24 sps:$4 sm:$0xff]  }
 0xb52   :  { %2598 = vmatmul.mubr.bf16.vlgmr.msra.gmra.mrb[12].mxu0 %v2124_v61  ;;  %v6649_v61 = vld [vmem:[#allocation4 + $0x310] ss:$24 sps:$4 sm:$0xff]  }
 0xc25   :  { %v2599_v25 = vpop.f32.mrb[12].mxu0 }
 0xc26   :  { %v6224_v26 = vadd.f32 %v2599_v25, %v2195_v22  ;;  %v2601_v27 = vpop.f32.mrb[13].mxu0 }
 0xc27   :  { %v6225_v31 = vadd.f32 %v2601_v27, %v2199_v24  ;;  %v2603_v32 = vpop.f32.mrb[14].mxu0 }
 0xc28   :  { %v8065_v33 = vadd.f32 %v6224_v26, %v7979_v6  ;;  %v6226_v34 = vadd.f32 %v2603_v32, %v2195_v22  ;;  %v2605_v37 = vpop.f32.mrb[15].mxu0 }
 0xc29   :  { %v8068_v35 = vadd.f32 %v6225_v31, %v7975_v42  ;;  %v6227_v36 = vadd.f32 %v2605_v37, %v2199_v24  ;;  %v6651_v42 = vld [vmem:[#allocation4 + $0x314] ss:$24 sps:$4 sm:$0xff]  }
 0xc2a   :  { %v8071_v38 = vadd.f32 %v6226_v34, %v7981_v7  ;;  %3374 = vmatprep.subr.bf16.mxu0 %v6651_v42  ;;  %v6652_v7 = vld [vmem:[#allocation4 + $0x330] ss:$24 sps:$4 sm:$0xff]  }
 0xc2b   :  { %v8074_v39 = vadd.f32 %v6227_v36, %v7977_v14  ;;  %v2614_v41 = vadd.f32 %v8068_v35, %v8065_v33  ;;  %3375 = vmatpush1.bf16.msra.mxu0 %v6649_v61  ;;  %v6655_v14 = vld [vmem:[#allocation4 + $0x340] ss:$24 sps:$4 sm:$0xff]   ;;  %3291 = vmatpush1.bf16.msra.mxu1 %v6652_v7  ;;  %v6714_v61 = vld [vmem:[#allocation4 + $0x514] ss:$24 sps:$4 sm:$0xff]   ;;  %v6712_v42 = vld [vmem:[#allocation4 + $0x510] ss:$24 sps:$4 sm:$0xff]  }
 0xc2c   :  { %3376 = vmatprep.subr.bf16.mxu0 %v6657_v54  ;;  %3292 = vmatprep.subr.bf16.mxu1 %v6660_v62  ;;  %v6715_v54 = vld [vmem:[#allocation4 + $0x520] ss:$24 sps:$4 sm:$0xff]   ;;  %v6720_v7 = vld [vmem:[#allocation4 + $0x544] ss:$24 sps:$4 sm:$0xff]   ;;  %v6723_v62 = vld [vmem:[#allocation4 + $0x554] ss:$24 sps:$4 sm:$0xff]  }
 0xc2d   :  { %2615 = vadd.xlane.f32.xlu0 %v2614_v41  ;;  %v2617_v6 = vadd.f32 %v8074_v39, %v8071_v38 }
 0xc2f   :  { %2618 = vadd.xlane.f32.xlu1 %v2617_v6  ;;  %3377 = vmatpush1.bf16.msra.mxu0 %v6655_v14  ;;  %v6718_v14 = vld [vmem:[#allocation4 + $0x540] ss:$24 sps:$4 sm:$0xff]  }
 0xc30   :  { %3378 = vmatprep.subr.bf16.mxu0 %v6663_v51  ;;  %3293 = vmatpush1.bf16.msra.mxu1 %v6658_v10  ;;  %v6721_v51 = vld [vmem:[#allocation4 + $0x550] ss:$24 sps:$4 sm:$0xff]   ;;  %v6726_v10 = vld [vmem:[#allocation4 + $0x574] ss:$24 sps:$4 sm:$0xff]  }
 0xc31   :  { %3294 = vmatprep.subr.bf16.mxu1 %v6666_v44  ;;  %v6729_v44 = vld [vmem:[#allocation4 + $0x584] ss:$24 sps:$4 sm:$0xff]  }
 0xc33   :  { %3379 = vmatpush1.bf16.msra.mxu0 %v6661_v1  ;;  %v6724_v1 = vld [vmem:[#allocation4 + $0x570] ss:$24 sps:$4 sm:$0xff]  }
 0xc34   :  { %3380 = vmatprep.subr.bf16.mxu0 %v6669_v2  ;;  %3295 = vmatpush1.bf16.msra.mxu1 %v6664_v15  ;;  %v6727_v2 = vld [vmem:[#allocation4 + $0x580] ss:$24 sps:$4 sm:$0xff]   ;;  %v6732_v15 = vld [vmem:[#allocation4 + $0x5a4] ss:$24 sps:$4 sm:$0xff]  }
 0xc35   :  { %3296 = vmatprep.subr.bf16.mxu1 %v6672_v58  ;;  %v6735_v58 = vld [vmem:[#allocation4 + $0x5b4] ss:$24 sps:$4 sm:$0xff]  }
 0xc37   :  { %3381 = vmatpush1.bf16.msra.mxu0 %v6667_v57  ;;  %v6730_v57 = vld [vmem:[#allocation4 + $0x5a0] ss:$24 sps:$4 sm:$0xff]  }
 0xc38   :  { %3382 = vmatprep.subr.bf16.mxu0 %v6675_v43  ;;  %3297 = vmatpush1.bf16.msra.mxu1 %v6670_v47  ;;  %v6733_v43 = vld [vmem:[#allocation4 + $0x5b0] ss:$24 sps:$4 sm:$0xff]   ;;  %v6738_v47 = vld [vmem:[#allocation4 + $0x5d4] ss:$24 sps:$4 sm:$0xff]  }
 0xc39   :  { %3298 = vmatprep.subr.bf16.mxu1 %v6678_v59  ;;  %v6741_v59 = vld [vmem:[#allocation4 + $0x5e4] ss:$24 sps:$4 sm:$0xff]  }
 0xc3b   :  { %3383 = vmatpush1.bf16.msra.mxu0 %v6673_v52  ;;  %v6736_v52 = vld [vmem:[#allocation4 + $0x5d0] ss:$24 sps:$4 sm:$0xff]  }
 0xc3c   :  { %3384 = vmatprep.subr.bf16.mxu0 %v6681_v60  ;;  %3299 = vmatpush1.bf16.msra.mxu1 %v6676_v63  ;;  %v6739_v60 = vld [vmem:[#allocation4 + $0x5e0] ss:$24 sps:$4 sm:$0xff]   ;;  %v6744_v63 = vld [vmem:[#allocation4 + $0x30c] ss:$24 sps:$4 sm:$0xff]  }
 0xc3d   :  { %3300 = vmatprep.subr.bf16.mxu1 %v6684_v3 }
 0xc3f   :  { %3385 = vmatpush1.bf16.msra.mxu0 %v6679_v0 }
 0xc40   :  { %3386 = vmatprep.subr.bf16.mxu0 %v6687_v4  ;;  %3301 = vmatpush1.bf16.msra.mxu1 %v6682_v5 }
 0xc41   :  { %3302 = vmatprep.subr.bf16.mxu1 %v6690_v9 }
 0xc43   :  { %3387 = vmatpush1.bf16.msra.mxu0 %v6685_v8 }
 0xc44   :  { %3388 = vmatprep.subr.bf16.mxu0 %v6693_v40  ;;  %3303 = vmatpush1.bf16.msra.mxu1 %v6688_v11  ;;  %v2612_v40 = vld [vmem:[#allocation12] sm:$0x3]  ;;  %v2613_v11 = vld [vmem:[#allocation13] sm:$0x3] }
 0xc45   :  { %3304 = vmatprep.subr.bf16.mxu1 %v6696_v13  ;;  %v2654_v13 = vrot.slane %v2612_v40, %v7726_v29 }
 0xc47   :  { %3389 = vmatpush1.bf16.msra.mxu0 %v6691_v45  ;;  %v2650_v45 = vrot.slane %v2612_v40, %v7729_v30 }
 0xc48   :  { %3390 = vmatprep.subr.bf16.mxu0 %v6699_v16  ;;  %3305 = vmatpush1.bf16.msra.mxu1 %v6694_v17 }
 0xc49   :  { %3306 = vmatprep.subr.bf16.mxu1 %v6702_v18 }
 0xc4b   :  { %3391 = vmatpush1.bf16.msra.mxu0 %v6697_v46 }
 0xc4c   :  { %3392 = vmatprep.subr.bf16.mxu0 %v6705_v19  ;;  %3307 = vmatpush1.bf16.msra.mxu1 %v6700_v50  ;;  %v2665_v19 = vrot.slane %v2613_v11, %v7729_v30  ;;  %v2669_v50 = vrot.slane %v2613_v11, %v7726_v29 }
 0xc4f   :  { %3393 = vmatpush1.bf16.msra.mxu0 %v6703_v49 }
 0xcba   :  { %v2616_v22 = vpop.xlane.xlu0 %2615 }
 0xcbb   :  { %v2620_v24 = vmul.f32 0.00390625, %v2616_v22 }
 0xcbc   :  { %v2619_v25 = vpop.xlane.xlu1 %2618 }
 0xcbd   :  { %v8081_v26 = vsub.f32 %v8065_v33, %v2620_v24  ;;  %v8084_v27 = vsub.f32 %v8068_v35, %v2620_v24  ;;  %v2621_v31 = vmul.f32 0.00390625, %v2619_v25 }
 0xcbf   :  { %v8087_v32 = vsub.f32 %v8071_v38, %v2621_v31  ;;  %v8090_v34 = vsub.f32 %v8074_v39, %v2621_v31  ;;  %v2626_v37 = vmul.f32 %v8081_v26, %v8081_v26  ;;  %v2627_v36 = vmul.f32 %v8084_v27, %v8084_v27  ;;  %v6708_v38 = vld [vmem:[#allocation4 + $0x4e4] ss:$24 sps:$4 sm:$0xff]   ;;  %v6711_v39 = vld [vmem:[#allocation4 + $0x4f4] ss:$24 sps:$4 sm:$0xff]  }
 0xcc0   :  { %3308 = vmatprep.subr.bf16.mxu1 %v6708_v38  ;;  %3394 = vmatprep.subr.bf16.mxu0 %v6711_v39  ;;  %v6750_v38 = vld [vmem:[#allocation4 + $0x36c] ss:$24 sps:$4 sm:$0xff]   ;;  %v6753_v39 = vld [vmem:[#allocation4 + $0x39c] ss:$24 sps:$4 sm:$0xff]  }
 0xcc1   :  { %v2630_v41 = vadd.f32 %v2627_v36, %v2626_v37  ;;  %v2628_v33 = vmul.f32 %v8087_v32, %v8087_v32  ;;  %v2629_v35 = vmul.f32 %v8090_v34, %v8090_v34  ;;  %3309 = vmatpush1.bf16.msra.mxu1 %v6706_v48  ;;  %3395 = vmatpush1.bf16.msra.mxu0 %v6709_v53  ;;  %v6748_v48 = vld [vmem:[#allocation4 + $0x368] ss:$24 sps:$4 sm:$0xff]   ;;  %v6751_v53 = vld [vmem:[#allocation4 + $0x398] ss:$24 sps:$4 sm:$0xff]  }
 0xcc2   :  { %3310 = vmatprep.subr.bf16.mxu1 %v6714_v61  ;;  %3396 = vmatprep.subr.bf16.mxu0 %v6717_v12  ;;  %v6756_v61 = vld [vmem:[#allocation4 + $0x3cc] ss:$24 sps:$4 sm:$0xff]   ;;  %v6759_v12 = vld [vmem:[#allocation4 + $0x3fc] ss:$24 sps:$4 sm:$0xff]  }
 0xcc3   :  { %2631 = vadd.xlane.f32.xlu0 %v2630_v41  ;;  %v2633_v6 = vadd.f32 %v2629_v35, %v2628_v33  ;;  %v6742_v35 = vld [vmem:[#allocation4 + $0x308] ss:$24 sps:$4 sm:$0xff]  }
 0xcc5   :  { %2634 = vadd.xlane.f32.xlu1 %v2633_v6  ;;  %3311 = vmatpush1.bf16.msra.mxu1 %v6712_v42  ;;  %v6745_v6 = vld [vmem:[#allocation4 + $0x338] ss:$24 sps:$4 sm:$0xff]   ;;  %v6754_v42 = vld [vmem:[#allocation4 + $0x3c8] ss:$24 sps:$4 sm:$0xff]  }
 0xcc6   :  { %3397 = vmatpush1.bf16.msra.mxu0 %v6715_v54  ;;  %3312 = vmatprep.subr.bf16.mxu1 %v6720_v7  ;;  %v6757_v54 = vld [vmem:[#allocation4 + $0x3f8] ss:$24 sps:$4 sm:$0xff]   ;;  %v6762_v7 = vld [vmem:[#allocation4 + $0x42c] ss:$24 sps:$4 sm:$0xff]  }
 0xcc7   :  { %3398 = vmatprep.subr.bf16.mxu0 %v6723_v62  ;;  %v6765_v62 = vld [vmem:[#allocation4 + $0x45c] ss:$24 sps:$4 sm:$0xff]  }
 0xcc9   :  { %3313 = vmatpush1.bf16.msra.mxu1 %v6718_v14  ;;  %v6760_v14 = vld [vmem:[#allocation4 + $0x428] ss:$24 sps:$4 sm:$0xff]  }
 0xcca   :  { %3399 = vmatpush1.bf16.msra.mxu0 %v6721_v51  ;;  %3314 = vmatprep.subr.bf16.mxu1 %v6726_v10  ;;  %v6763_v51 = vld [vmem:[#allocation4 + $0x458] ss:$24 sps:$4 sm:$0xff]   ;;  %v6768_v10 = vld [vmem:[#allocation4 + $0x48c] ss:$24 sps:$4 sm:$0xff]  }
 0xccb   :  { %3400 = vmatprep.subr.bf16.mxu0 %v6729_v44  ;;  %v6771_v44 = vld [vmem:[#allocation4 + $0x4bc] ss:$24 sps:$4 sm:$0xff]  }
 0xccd   :  { %3315 = vmatpush1.bf16.msra.mxu1 %v6724_v1  ;;  %v6766_v1 = vld [vmem:[#allocation4 + $0x488] ss:$24 sps:$4 sm:$0xff]  }
 0xcce   :  { %3401 = vmatpush1.bf16.msra.mxu0 %v6727_v2  ;;  %3316 = vmatprep.subr.bf16.mxu1 %v6732_v15  ;;  %v6769_v2 = vld [vmem:[#allocation4 + $0x4b8] ss:$24 sps:$4 sm:$0xff]   ;;  %v6774_v15 = vld [vmem:[#allocation4 + $0x4ec] ss:$24 sps:$4 sm:$0xff]  }
 0xccf   :  { %3402 = vmatprep.subr.bf16.mxu0 %v6735_v58  ;;  %v6777_v58 = vld [vmem:[#allocation4 + $0x51c] ss:$24 sps:$4 sm:$0xff]  }
 0xcd1   :  { %3317 = vmatpush1.bf16.msra.mxu1 %v6730_v57  ;;  %v6772_v57 = vld [vmem:[#allocation4 + $0x4e8] ss:$24 sps:$4 sm:$0xff]  }
 0xcd2   :  { %3403 = vmatpush1.bf16.msra.mxu0 %v6733_v43  ;;  %3318 = vmatprep.subr.bf16.mxu1 %v6738_v47  ;;  %v6775_v43 = vld [vmem:[#allocation4 + $0x518] ss:$24 sps:$4 sm:$0xff]   ;;  %v6780_v47 = vld [vmem:[#allocation4 + $0x54c] ss:$24 sps:$4 sm:$0xff]  }
 0xcd3   :  { %3404 = vmatprep.subr.bf16.mxu0 %v6741_v59  ;;  %v6783_v59 = vld [vmem:[#allocation4 + $0x57c] ss:$24 sps:$4 sm:$0xff]  }
 0xcd5   :  { %3319 = vmatpush1.bf16.msra.mxu1 %v6736_v52  ;;  %v6778_v52 = vld [vmem:[#allocation4 + $0x548] ss:$24 sps:$4 sm:$0xff]  }
 0xcd6   :  { %3405 = vmatpush1.bf16.msra.mxu0 %v6739_v60  ;;  %3331 = vmatprep.subr.bf16.mxu1 %v6744_v63  ;;  %v6781_v60 = vld [vmem:[#allocation4 + $0x578] ss:$24 sps:$4 sm:$0xff]   ;;  %v6786_v63 = vld [vmem:[#allocation4 + $0x5ac] ss:$24 sps:$4 sm:$0xff]  }
 0xd50   :  { %v2632_v0 = vpop.xlane.xlu0 %2631 }
 0xd51   :  { %v2636_v3 = vmul.f32 0.00390625, %v2632_v0  ;;  %v6784_v0 = vld [vmem:[#allocation4 + $0x5a8] ss:$24 sps:$4 sm:$0xff]  }
 0xd52   :  { %v2635_v4 = vpop.xlane.xlu1 %2634 }
 0xd53   :  { %v2638_v5 = vadd.f32 1e-05, %v2636_v3  ;;  %v2637_v8 = vmul.f32 0.00390625, %v2635_v4  ;;  %v6789_v3 = vld [vmem:[#allocation4 + $0x5dc] ss:$24 sps:$4 sm:$0xff]  }
 0xd54   :  { %v6787_v4 = vld [vmem:[#allocation4 + $0x5d8] ss:$24 sps:$4 sm:$0xff]  }
 0xd55   :  { %7134 = vrsqrt.f32 %v2638_v5  ;;  %v2639_v9 = vadd.f32 1e-05, %v2637_v8  ;;  %v5795_v5 = vld [vmem:[%s8547_s5 + $0x6] sm:$0x3f]  ;;  %s8581_s5 = sld [smem:[#allocation30_spill]] }
 0xd56   :  { %v2781_v8 = vrot.slane %v5795_v5, %v7729_v30 }
 0xd57   :  { %7136 = vrsqrt.f32 %v2639_v9  ;;  %v2797_v9 = vrot.slane %v5795_v5, %v387_v55 }
 0xd5f   :  { %v7135_v16 = vpop.eup %7134 }
 0xd60   :  { %v2642_v17 = vmul.f32 %v7135_v16, %v8081_v26  ;;  %v2643_v46 = vmul.f32 %v7135_v16, %v8084_v27 }
 0xd61   :  { %v7137_v18 = vpop.eup %7136 }
 0xd62   :  { %v2644_v49 = vmul.f32 %v7137_v18, %v8087_v32  ;;  %v2645_v22 = vmul.f32 %v7137_v18, %v8090_v34  ;;  %v2658_v24 = vmul.f32 %v2654_v13, %v2643_v46  ;;  %v2657_v25 = vmul.f32 %v2650_v45, %v2642_v17  ;;  %v6747_v34 = vld [vmem:[#allocation4 + $0x33c] ss:$24 sps:$4 sm:$0xff]  }
 0xd64   :  { %v2660_v31 = vmul.f32 %v2654_v13, %v2645_v22  ;;  %v2659_v37 = vmul.f32 %v2650_v45, %v2644_v49  ;;  %v8108_v36 = vadd.f32 %v2669_v50, %v2658_v24  ;;  %v8112_v26 = vadd.f32 %v2665_v19, %v2657_v25 }
 0xd65   :  { %v2785_v45 = vrot.slane %v5795_v5, %v7726_v29  ;;  %v2801_v13 = vrot.slane %v5795_v5, %v391_v56 }
 0xd66   :  { %v8110_v41 = vadd.f32 %v2669_v50, %v2660_v31  ;;  %v8114_v27 = vadd.f32 %v2665_v19, %v2659_v37 }
 0xd68   :  { %v2677_v33 = vpack.c.bf16 %v8110_v41, %v8108_v36  ;;  %v8120_v32 = vpack.c.bf16 %v8114_v27, %v8112_v26 }
 0xd6a   :  { %3320 = vmatprep.mubr.bf16.mxu1 %v2677_v33  ;;  %3406 = vmatprep.mubr.bf16.mxu0 %v2677_v33 }
 0xd6b   :  { %3321 = vmatmul.mubr.bf16.vlgmr.msra.gmra.mrb[28].mxu1 %v8120_v32  ;;  %3407 = vmatmul.mubr.bf16.vlgmr.msra.gmra.mrb[16].mxu0 %v8120_v32 }
 0xd6c   :  { %3332 = vmatpush1.bf16.msra.mxu1 %v6742_v35  ;;  %3363 = vmatprep.mubr.bf16.mxu1 %v2677_v33 }
 0xd6d   :  { %3333 = vmatprep.subr.bf16.mxu1 %v6747_v34  ;;  %v2789_v34 = vrot.slane %v5795_v5, %v7763_v21 }
 0xd70   :  { %3334 = vmatpush1.bf16.msra.mxu1 %v6745_v6 }
 0xd71   :  { %3335 = vmatprep.subr.bf16.mxu1 %v6750_v38  ;;  %v2793_v38 = vrot.slane %v5795_v5, %v7769_v23 }
 0xd74   :  { %3336 = vmatpush1.bf16.msra.mxu1 %v6748_v48 }
 0xd75   :  { %3337 = vmatprep.subr.bf16.mxu1 %v6753_v39 }
 0xd78   :  { %3338 = vmatpush1.bf16.msra.mxu1 %v6751_v53 }
 0xd79   :  { %3339 = vmatprep.subr.bf16.mxu1 %v6756_v61 }
 0xd7c   :  { %3340 = vmatpush1.bf16.msra.mxu1 %v6754_v42 }
 0xd7d   :  { %3341 = vmatprep.subr.bf16.mxu1 %v6759_v12 }
 0xd80   :  { %3342 = vmatpush1.bf16.msra.mxu1 %v6757_v54 }
 0xd81   :  { %3343 = vmatprep.subr.bf16.mxu1 %v6762_v7 }
 0xd84   :  { %3344 = vmatpush1.bf16.msra.mxu1 %v6760_v14 }
 0xd85   :  { %3345 = vmatprep.subr.bf16.mxu1 %v6765_v62 }
 0xd88   :  { %3346 = vmatpush1.bf16.msra.mxu1 %v6763_v51 }
 0xd89   :  { %3347 = vmatprep.subr.bf16.mxu1 %v6768_v10 }
 0xd8c   :  { %3348 = vmatpush1.bf16.msra.mxu1 %v6766_v1 }
 0xd8d   :  { %3349 = vmatprep.subr.bf16.mxu1 %v6771_v44 }
 0xd90   :  { %3350 = vmatpush1.bf16.msra.mxu1 %v6769_v2 }
 0xd91   :  { %3351 = vmatprep.subr.bf16.mxu1 %v6774_v15  ;;  %v7186_v15 = vld [vmem:[%s8579_s24] sm:$0xff] }
 0xd94   :  { %3352 = vmatpush1.bf16.msra.mxu1 %v6772_v57 }
 0xd95   :  { %3353 = vmatprep.subr.bf16.mxu1 %v6777_v58 }
 0xd98   :  { %3354 = vmatpush1.bf16.msra.mxu1 %v6775_v43  ;;  %v7187_v43 = vld [vmem:[%s8579_s24 + $0x8] sm:$0xff] }
 0xd99   :  { %3355 = vmatprep.subr.bf16.mxu1 %v6780_v47 }
 0xd9c   :  { %3356 = vmatpush1.bf16.msra.mxu1 %v6778_v52 }
 0xd9d   :  { %3357 = vmatprep.subr.bf16.mxu1 %v6783_v59 }
 0xda0   :  { %3358 = vmatpush1.bf16.msra.mxu1 %v6781_v60 }
 0xda1   :  { %3359 = vmatprep.subr.bf16.mxu1 %v6786_v63 }
 0xda4   :  { %3360 = vmatpush1.bf16.msra.mxu1 %v6784_v0 }
 0xda5   :  { %3361 = vmatprep.subr.bf16.mxu1 %v6789_v3 }
 0xda8   :  { %3362 = vmatpush1.bf16.msra.mxu1 %v6787_v4 }
 0xda9   :  { %6200 = vmatprep.subr.bf16.mxu1 %v7440_v20 }
 0xdab   :  { %3364 = vmatmul.mubr.bf16.vlgmr.msra.gmra.mrb[32].mxu1 %v8120_v32 }
 0xdac   :  { %6202 = vmatprep.mubr.msk.bf16.mxu1 %vm7441_vm0, %v7440_v20 }
 0xe3e   :  { %v3322_v40 = vpop.f32.mrb[28].mxu1  ;;  %v3408_v11 = vpop.f32.mrb[16].mxu0 }
 0xe3f   :  { %v3324_v16 = vpop.f32.mrb[29].mxu1  ;;  %v3410_v17 = vpop.f32.mrb[17].mxu0  ;;  %v3323_v19 = vadd.f32 %v3322_v40, %v2781_v8  ;;  %v3409_v50 = vadd.f32 %v3408_v11, %v2797_v9 }
 0xe40   :  { %v3326_v46 = vpop.f32.mrb[30].mxu1  ;;  %v3412_v18 = vpop.f32.mrb[18].mxu0  ;;  %v8137_v31 = vadd.f32 %v3324_v16, %v2785_v45  ;;  %v8139_v55 = vadd.f32 %v3410_v17, %v2801_v13 }
 0xe41   :  { %v3327_v49 = vadd.f32 %v3326_v46, %v2781_v8  ;;  %v3413_v22 = vadd.f32 %v3412_v18, %v2797_v9  ;;  %v3328_v24 = vpop.f32.mrb[31].mxu1  ;;  %v3414_v25 = vpop.f32.mrb[19].mxu0 }
 0xe42   :  { %v8141_v37 = vadd.f32 %v3328_v24, %v2785_v45  ;;  %v8143_v33 = vadd.f32 %v3414_v25, %v2801_v13 }
 0xe43   :  { %v3417_v28 = vpack.c.bf16 %v3327_v49, %v3323_v19  ;;  %v3421_v56 = vpack.c.bf16 %v3413_v22, %v3409_v50 }
 0xe44   :  { %v3418_v35 = vpack.c.bf16 %v8141_v37, %v8137_v31  ;;  %v3422_v32 = vpack.c.bf16 %v8143_v33, %v8139_v55 }
 0xe7e   :  { %v3365_v6 = vpop.f32.mrb[32].mxu1 }
 0xe7f   :  { %v3367_v48 = vpop.f32.mrb[33].mxu1  ;;  %v3366_v53 = vadd.f32 %v3365_v6, %v2789_v34 }
 0xe80   :  { %v3369_v39 = vpop.f32.mrb[34].mxu1  ;;  %v3368_v12 = vadd.f32 %v3367_v48, %v2793_v38 }
 0xe81   :  { %v3370_v61 = vadd.f32 %v3369_v39, %v2789_v34  ;;  %v3371_v42 = vpop.f32.mrb[35].mxu1 }
 0xe82   :  { %v3372_v54 = vadd.f32 %v3371_v42, %v2793_v38 }
 0xe83   :  { %v3419_v7 = vpack.c.bf16 %v3370_v61, %v3366_v53 }
 0xe84   :  { %v3420_v14 = vpack.c.bf16 %v3372_v54, %v3368_v12 }
 0xe85   :  { %6201 = vmatpush3.bf16.xpose.msra.mxu1 %v3419_v7  ;;  %v6790_v7 = vld [vmem:[%s8548_s6 + $0x100] ss:$8 sps:$4 sm:$0xff]  }
 0xe86   :  { %6206 = vmatprep.subr.bf16.mxu1 %v7440_v20 }
 0xe8c   :  { %6203 = vmatmul.mubr.bf16.vlgmr.msra.gmra.mrb[36].mxu1 %v3417_v28 }
 0xe8d   :  { %6207 = vmatpush3.bf16.msra.mxu1 %v3421_v56  ;;  %6208 = vmatprep.mubr.msk.bf16.mxu1 %vm7441_vm0, %v7440_v20 }
 0xe8e   :  { %6212 = vmatprep.subr.bf16.mxu1 %v7440_v20 }
 0xf5f   :  { %v3457_v62 = vpop.f32.mrb[36].mxu1 }
 0xf60   :  { %v3464_v51 = vmul.f32 0.088388346, %v3457_v62  ;;  %v6204_v10 = vpop.f32.mrb[37].mxu1  ;;  %v6795_v62 = vld [vmem:[%s8548_s6 + $0x114] ss:$8 sps:$4 sm:$0xff]  }
 0xf61   :  { %v3460_v1 = vpop.f32.mrb[38].mxu1  ;;  %v6798_v10 = vld [vmem:[%s8548_s6 + $0x124] ss:$8 sps:$4 sm:$0xff]  }
 0xf62   :  { %v3465_v44 = vmul.f32 0.088388346, %v3460_v1  ;;  %v6205_v2 = vpop.f32.mrb[39].mxu1  ;;  %v3466_v57 = vadd.f32 %v7186_v15, %v3464_v51  ;;  %v6793_v51 = vld [vmem:[%s8548_s6 + $0x110] ss:$8 sps:$4 sm:$0xff]  }
 0xf63   :  { %v6796_v1 = vld [vmem:[%s8548_s6 + $0x120] ss:$8 sps:$4 sm:$0xff]   ;;  %v6799_v2 = vld [vmem:[%s8548_s6 + $0x130] ss:$8 sps:$4 sm:$0xff]  }
 0xf64   :  { %v3468_v58 = vsel %vm1059_vm1, %v3466_v57, -inf  ;;  %v3467_v47 = vadd.f32 %v7187_v43, %v3465_v44  ;;  %v6801_v44 = vld [vmem:[%s8548_s6 + $0x134] ss:$8 sps:$4 sm:$0xff]  }
 0xf65   :  { %3469 = vmax.xlane.f32.xlu0 %v3468_v58  ;;  %v6807_v58 = vld [vmem:[%s8548_s6 + $0x154] ss:$8 sps:$4 sm:$0xff]  }
 0xf66   :  { %v3471_v52 = vsel %vm1059_vm1, %v3467_v47, -inf }
 0xf67   :  { %3472 = vmax.xlane.f32.xlu1 %v3471_v52  ;;  %v6808_v52 = vld [vmem:[%s8548_s6 + $0x160] ss:$8 sps:$4 sm:$0xff]  }
 0xff2   :  { %v3470_v59 = vpop.xlane.xlu0 %3469 }
 0xff3   :  { %v3474_v60 = vsub.f32 %v3466_v57, %v3470_v59  ;;  %v6802_v57 = vld [vmem:[%s8548_s6 + $0x140] ss:$8 sps:$4 sm:$0xff]   ;;  %v6813_v59 = vld [vmem:[%s8548_s6 + $0x174] ss:$8 sps:$4 sm:$0xff]  }
 0xff4   :  { %v3473_v63 = vpop.xlane.xlu1 %3472 }
 0xff5   :  { %v3476_v0 = vmul.f32 1.442695, %v3474_v60  ;;  %v3475_v3 = vsub.f32 %v3467_v47, %v3473_v63  ;;  %v6810_v47 = vld [vmem:[%s8548_s6 + $0x164] ss:$8 sps:$4 sm:$0xff]   ;;  %v6811_v60 = vld [vmem:[%s8548_s6 + $0x170] ss:$8 sps:$4 sm:$0xff]  }
 0xff6   :  { %v6816_v63 = vld [vmem:[%s8548_s6 + $0x184] ss:$8 sps:$4 sm:$0xff]  }
 0xff7   :  { %7138 = vpow2.f32 %v3476_v0  ;;  %v3478_v4 = vmul.f32 1.442695, %v3475_v3  ;;  %v6814_v0 = vld [vmem:[%s8548_s6 + $0x180] ss:$8 sps:$4 sm:$0xff]   ;;  %v6819_v3 = vld [vmem:[%s8548_s6 + $0x194] ss:$8 sps:$4 sm:$0xff]  }
 0xff9   :  { %7140 = vpow2.f32 %v3478_v4  ;;  %v6817_v4 = vld [vmem:[%s8548_s6 + $0x190] ss:$8 sps:$4 sm:$0xff]  }
0x1001   :  { %v7139_v5 = vpop.eup %7138 }
0x1002   :  { %v3480_v8 = vsel %vm1059_vm1, %v7139_v5, 0.0 }
0x1003   :  { %v7141_v9 = vpop.eup %7140  ;;  %3481 = vadd.xlane.f32.xlu0 %v3480_v8  ;;  %v6820_v8 = vld [vmem:[%s8548_s6 + $0x1a0] ss:$8 sps:$4 sm:$0xff]  }
0x1004   :  { %v3483_v40 = vsel %vm1059_vm1, %v7141_v9, 0.0 }
0x1005   :  { %3484 = vadd.xlane.f32.xlu1 %v3483_v40  ;;  %v6823_v40 = vld [vmem:[%s8548_s6 + $0x1b0] ss:$8 sps:$4 sm:$0xff]  }
0x1090   :  { %v3482_v11 = vpop.xlane.xlu0 %3481 }
0x1091   :  { %7142 = vrcp.f32 %v3482_v11  ;;  %v6828_v11 = vld [vmem:[%s8548_s6 + $0x1c4] ss:$8 sps:$4 sm:$0xff]  }
0x1092   :  { %v3485_v45 = vpop.xlane.xlu1 %3484 }
0x1093   :  { %7144 = vrcp.f32 %v3485_v45  ;;  %v6826_v45 = vld [vmem:[%s8548_s6 + $0x1c0] ss:$8 sps:$4 sm:$0xff]  }
0x109b   :  { %v7143_v13 = vpop.eup %7142 }
0x109c   :  { %v3488_v17 = vmul.f32 %v7143_v13, %v7139_v5  ;;  %v6822_v5 = vld [vmem:[%s8548_s6 + $0x1a4] ss:$8 sps:$4 sm:$0xff]   ;;  %v6831_v13 = vld [vmem:[%s8548_s6 + $0x1d4] ss:$8 sps:$4 sm:$0xff]  }
0x109d   :  { %v7145_v16 = vpop.eup %7144 }
0x109e   :  { %v3489_v46 = vmul.f32 %v7145_v16, %v7141_v9  ;;  %v6825_v9 = vld [vmem:[%s8548_s6 + $0x1b4] ss:$8 sps:$4 sm:$0xff]   ;;  %v6829_v16 = vld [vmem:[%s8548_s6 + $0x1d0] ss:$8 sps:$4 sm:$0xff]  }
0x10a0   :  { %v3490_v18 = vpack.c.bf16 %v3489_v46, %v3488_v17  ;;  %v6834_v17 = vld [vmem:[%s8548_s6 + $0x1e4] ss:$8 sps:$4 sm:$0xff]   ;;  %v6832_v46 = vld [vmem:[%s8548_s6 + $0x1e0] ss:$8 sps:$4 sm:$0xff]  }
0x10a2   :  { %6209 = vmatmul.mubr.msk.bf16.vlgmr.msra.gmra.mrb[40].mxu1 %vm1059_vm1, %v3490_v18 }
0x10a3   :  { %6213 = vmatpush3.bf16.xpose.msra.mxu1 %v3420_v14  ;;  %6214 = vmatprep.mubr.msk.bf16.mxu1 %vm7441_vm0, %v7440_v20  ;;  %v6792_v14 = vld [vmem:[%s8548_s6 + $0x104] ss:$8 sps:$4 sm:$0xff]  }
0x10a4   :  { %6218 = vmatprep.subr.bf16.mxu1 %v7440_v20  ;;  %3855 = vmatprep.subr.bf16.mxu0 %v6792_v14 }
0x10a5   :  { %3856 = vmatpush1.bf16.msra.mxu0 %v6790_v7 }
0x10a6   :  { %3857 = vmatprep.subr.bf16.mxu0 %v6795_v62 }
0x10a9   :  { %3858 = vmatpush1.bf16.msra.mxu0 %v6793_v51 }
0x10aa   :  { %6215 = vmatmul.mubr.bf16.vlgmr.msra.gmra.mrb[44].mxu1 %v3418_v35  ;;  %3859 = vmatprep.subr.bf16.mxu0 %v6798_v10  ;;  %v6838_v10 = vld [vmem:[#allocation9 + $0x200] ss:$16 sps:$4 sm:$0xff]  }
0x10ab   :  { %6219 = vmatpush3.bf16.msra.mxu1 %v3422_v32  ;;  %6220 = vmatprep.mubr.msk.bf16.mxu1 %vm7441_vm0, %v7440_v20 }
0x10ad   :  { %3860 = vmatpush1.bf16.msra.mxu0 %v6796_v1  ;;  %v6840_v1 = vld [vmem:[#allocation9 + $0x204] ss:$16 sps:$4 sm:$0xff]  }
0x10ae   :  { %3861 = vmatprep.subr.bf16.mxu0 %v6801_v44  ;;  %v6841_v44 = vld [vmem:[#allocation9 + $0x208] ss:$16 sps:$4 sm:$0xff]   ;;  %4378 = vmatprep.subr.bf16.mxu1 %v6840_v1 }
0x10af   :  { %v6907_v1 = vld [vmem:[#allocation9 + $0x368] ss:$16 sps:$4 sm:$0xff]  }
0x10b1   :  { %3862 = vmatpush1.bf16.msra.mxu0 %v6799_v2  ;;  %v6846_v2 = vld [vmem:[#allocation9 + $0x224] ss:$16 sps:$4 sm:$0xff]  }
0x1175   :  { %v8171_v19 = vpop.f32.mrb[40].mxu1 }
0x1176   :  { %v6210_v50 = vpop.f32.mrb[41].mxu1 }
0x1177   :  { %v8173_v49 = vpop.f32.mrb[42].mxu1 }
0x1178   :  { %v3647_v22 = vpack.c.bf16 %v8173_v49, %v8171_v19  ;;  %v6211_v24 = vpop.f32.mrb[43].mxu1 }
0x117d   :  { %v3569_v25 = vpop.f32.mrb[44].mxu1 }
0x117e   :  { %v3576_v31 = vmul.f32 0.088388346, %v3569_v25  ;;  %v6216_v55 = vpop.f32.mrb[45].mxu1 }
0x117f   :  { %v3572_v37 = vpop.f32.mrb[46].mxu1 }
0x1180   :  { %v3577_v33 = vmul.f32 0.088388346, %v3572_v37  ;;  %v6217_v28 = vpop.f32.mrb[47].mxu1  ;;  %v3578_v56 = vadd.f32 %v7186_v15, %v3576_v31  ;;  %v6804_v15 = vld [vmem:[%s8548_s6 + $0x144] ss:$8 sps:$4 sm:$0xff]  }
0x1181   :  { %3863 = vmatprep.subr.bf16.mxu0 %v6804_v15  ;;  %v6835_v28 = vld [vmem:[%s8548_s6 + $0x1f0] ss:$8 sps:$4 sm:$0xff]  }
0x1182   :  { %v3580_v35 = vsel %vm1059_vm1, %v3578_v56, -inf  ;;  %v3579_v32 = vadd.f32 %v7187_v43, %v3577_v33  ;;  %3864 = vmatpush1.bf16.msra.mxu0 %v6802_v57  ;;  %v6805_v43 = vld [vmem:[%s8548_s6 + $0x150] ss:$8 sps:$4 sm:$0xff]   ;;  %v6837_v33 = vld [vmem:[%s8548_s6 + $0x1f4] ss:$8 sps:$4 sm:$0xff]  }
0x1183   :  { %3581 = vmax.xlane.f32.xlu0 %v3580_v35  ;;  %3865 = vmatprep.subr.bf16.mxu0 %v6807_v58  ;;  %v6849_v15 = vld [vmem:[#allocation9 + $0x22c] ss:$16 sps:$4 sm:$0xff]   ;;  %v6852_v57 = vld [vmem:[#allocation9 + $0x244] ss:$16 sps:$4 sm:$0xff]  }
0x1184   :  { %v3583_v20 = vsel %vm1059_vm1, %v3579_v32, -inf  ;;  %v6855_v58 = vld [vmem:[#allocation9 + $0x24c] ss:$16 sps:$4 sm:$0xff]  }
0x1185   :  { %3584 = vmax.xlane.f32.xlu1 %v3583_v20 }
0x1186   :  { %3866 = vmatpush1.bf16.msra.mxu0 %v6805_v43  ;;  %v6850_v43 = vld [vmem:[#allocation9 + $0x240] ss:$16 sps:$4 sm:$0xff]  }
0x1187   :  { %3867 = vmatprep.subr.bf16.mxu0 %v6810_v47  ;;  %v6853_v47 = vld [vmem:[#allocation9 + $0x248] ss:$16 sps:$4 sm:$0xff]  }
0x118a   :  { %3868 = vmatpush1.bf16.msra.mxu0 %v6808_v52  ;;  %v6858_v52 = vld [vmem:[#allocation9 + $0x264] ss:$16 sps:$4 sm:$0xff]  }
0x118b   :  { %3869 = vmatprep.subr.bf16.mxu0 %v6813_v59  ;;  %v6861_v59 = vld [vmem:[#allocation9 + $0x26c] ss:$16 sps:$4 sm:$0xff]  }
0x118e   :  { %3870 = vmatpush1.bf16.msra.mxu0 %v6811_v60  ;;  %v6856_v60 = vld [vmem:[#allocation9 + $0x260] ss:$16 sps:$4 sm:$0xff]  }
0x118f   :  { %3871 = vmatprep.subr.bf16.mxu0 %v6816_v63  ;;  %v6859_v63 = vld [vmem:[#allocation9 + $0x268] ss:$16 sps:$4 sm:$0xff]  }
0x1192   :  { %3872 = vmatpush1.bf16.msra.mxu0 %v6814_v0  ;;  %v6864_v0 = vld [vmem:[#allocation9 + $0x284] ss:$16 sps:$4 sm:$0xff]  }
0x1193   :  { %3873 = vmatprep.subr.bf16.mxu0 %v6819_v3  ;;  %v6867_v3 = vld [vmem:[#allocation9 + $0x28c] ss:$16 sps:$4 sm:$0xff]  }
0x1196   :  { %3874 = vmatpush1.bf16.msra.mxu0 %v6817_v4  ;;  %v6862_v4 = vld [vmem:[#allocation9 + $0x280] ss:$16 sps:$4 sm:$0xff]  }
0x1197   :  { %3875 = vmatprep.subr.bf16.mxu0 %v6822_v5  ;;  %v6865_v5 = vld [vmem:[#allocation9 + $0x288] ss:$16 sps:$4 sm:$0xff]  }
0x119a   :  { %3876 = vmatpush1.bf16.msra.mxu0 %v6820_v8  ;;  %v6870_v8 = vld [vmem:[#allocation9 + $0x2a4] ss:$16 sps:$4 sm:$0xff]  }
0x119b   :  { %3877 = vmatprep.subr.bf16.mxu0 %v6825_v9  ;;  %v6873_v9 = vld [vmem:[#allocation9 + $0x2ac] ss:$16 sps:$4 sm:$0xff]  }
0x119e   :  { %3878 = vmatpush1.bf16.msra.mxu0 %v6823_v40  ;;  %v6868_v40 = vld [vmem:[#allocation9 + $0x2a0] ss:$16 sps:$4 sm:$0xff]  }
0x119f   :  { %3879 = vmatprep.subr.bf16.mxu0 %v6828_v11  ;;  %v6871_v11 = vld [vmem:[#allocation9 + $0x2a8] ss:$16 sps:$4 sm:$0xff]  }
0x11a2   :  { %3880 = vmatpush1.bf16.msra.mxu0 %v6826_v45  ;;  %v6876_v45 = vld [vmem:[#allocation9 + $0x2c4] ss:$16 sps:$4 sm:$0xff]  }
0x11a3   :  { %3881 = vmatprep.subr.bf16.mxu0 %v6831_v13  ;;  %v6879_v13 = vld [vmem:[#allocation9 + $0x2cc] ss:$16 sps:$4 sm:$0xff]  }
0x11a6   :  { %3882 = vmatpush1.bf16.msra.mxu0 %v6829_v16  ;;  %v6874_v16 = vld [vmem:[#allocation9 + $0x2c0] ss:$16 sps:$4 sm:$0xff]  }
0x11a7   :  { %3883 = vmatprep.subr.bf16.mxu0 %v6834_v17  ;;  %v6877_v17 = vld [vmem:[#allocation9 + $0x2c8] ss:$16 sps:$4 sm:$0xff]  }
0x11aa   :  { %3884 = vmatpush1.bf16.msra.mxu0 %v6832_v46  ;;  %v6882_v46 = vld [vmem:[#allocation9 + $0x2e4] ss:$16 sps:$4 sm:$0xff]  }
0x11ab   :  { %3885 = vmatprep.subr.bf16.mxu0 %v6837_v33  ;;  %v6894_v33 = vld [vmem:[#allocation9 + $0x324] ss:$16 sps:$4 sm:$0xff]  }
0x11ae   :  { %3886 = vmatpush1.bf16.msra.mxu0 %v6835_v28  ;;  %v6897_v28 = vld [vmem:[#allocation9 + $0x32c] ss:$16 sps:$4 sm:$0xff]  }
0x1210   :  { %v3582_v34 = vpop.xlane.xlu0 %3581 }
0x1211   :  { %v3586_v6 = vsub.f32 %v3578_v56, %v3582_v34 }
0x1212   :  { %v3585_v38 = vpop.xlane.xlu1 %3584 }
0x1213   :  { %v3588_v48 = vmul.f32 1.442695, %v3586_v6  ;;  %v3587_v39 = vsub.f32 %v3579_v32, %v3585_v38  ;;  %v5926_v6 = vld [vmem:[%s8549_s7 + $0x2] sm:$0x3] }
0x1214   :  { %v3688_v38 = vrot.slane %v5926_v6, %v7729_v30 }
0x1215   :  { %7146 = vpow2.f32 %v3588_v48  ;;  %v3590_v53 = vmul.f32 1.442695, %v3587_v39  ;;  %v3692_v48 = vrot.slane %v5926_v6, %v7726_v29 }
0x1217   :  { %7148 = vpow2.f32 %v3590_v53 }
0x121f   :  { %v8179_v61 = vpop.eup %7146 }
0x1220   :  { %v3592_v42 = vsel %vm1059_vm1, %v8179_v61, 0.0 }
0x1221   :  { %v8183_v12 = vpop.eup %7148  ;;  %3593 = vadd.xlane.f32.xlu0 %v3592_v42 }
0x1222   :  { %v3595_v54 = vsel %vm1059_vm1, %v8183_v12, 0.0 }
0x1223   :  { %3596 = vadd.xlane.f32.xlu1 %v3595_v54 }
0x12ae   :  { %v3594_v18 = vpop.xlane.xlu0 %3593 }
0x12af   :  { %7150 = vrcp.f32 %v3594_v18  ;;  %v6885_v18 = vld [vmem:[#allocation9 + $0x2ec] ss:$16 sps:$4 sm:$0xff]  }
0x12b0   :  { %v3597_v50 = vpop.xlane.xlu1 %3596 }
0x12b1   :  { %7152 = vrcp.f32 %v3597_v50  ;;  %v6880_v50 = vld [vmem:[#allocation9 + $0x2e0] ss:$16 sps:$4 sm:$0xff]  }
0x12b9   :  { %v7151_v24 = vpop.eup %7150 }
0x12ba   :  { %v3600_v31 = vmul.f32 %v7151_v24, %v8179_v61  ;;  %v6883_v24 = vld [vmem:[#allocation9 + $0x2e8] ss:$16 sps:$4 sm:$0xff]  }
0x12bb   :  { %v7153_v25 = vpop.eup %7152 }
0x12bc   :  { %v3601_v55 = vmul.f32 %v7153_v25, %v8183_v12  ;;  %v6888_v25 = vld [vmem:[#allocation9 + $0x304] ss:$16 sps:$4 sm:$0xff]  }
0x12be   :  { %v3602_v37 = vpack.c.bf16 %v3601_v55, %v3600_v31  ;;  %v6891_v31 = vld [vmem:[#allocation9 + $0x30c] ss:$16 sps:$4 sm:$0xff]   ;;  %v6886_v55 = vld [vmem:[#allocation9 + $0x300] ss:$16 sps:$4 sm:$0xff]  }
0x12c0   :  { %6221 = vmatmul.mubr.msk.bf16.vlgmr.msra.gmra.mrb[48].mxu1 %vm1059_vm1, %v3602_v37  ;;  %v6889_v37 = vld [vmem:[#allocation9 + $0x308] ss:$16 sps:$4 sm:$0xff]  }
0x12c1   :  { %4379 = vmatpush1.bf16.msra.mxu1 %v6838_v10  ;;  %v6904_v10 = vld [vmem:[#allocation9 + $0x360] ss:$16 sps:$4 sm:$0xff]  }
0x12c2   :  { %4380 = vmatprep.subr.bf16.mxu1 %v6846_v2  ;;  %v6910_v2 = vld [vmem:[#allocation9 + $0x380] ss:$16 sps:$4 sm:$0xff]  }
0x1393   :  { %v3640_v56 = vpop.f32.mrb[48].mxu1 }
0x1394   :  { %v6222_v35 = vpop.f32.mrb[49].mxu1 }
0x1395   :  { %v3643_v32 = vpop.f32.mrb[50].mxu1  ;;  %v6895_v35 = vld [vmem:[#allocation9 + $0x328] ss:$16 sps:$4 sm:$0xff]  }
0x1396   :  { %v3648_v20 = vpack.c.bf16 %v3643_v32, %v3640_v56  ;;  %v6223_v34 = vpop.f32.mrb[51].mxu1  ;;  %v6892_v56 = vld [vmem:[#allocation9 + $0x320] ss:$16 sps:$4 sm:$0xff]  }
0x1398   :  { %3887 = vmatprep.mubr.bf16.mxu0 %v3648_v20 }
0x1399   :  { %3888 = vmatmul.mubr.bf16.vlgmr.msra.gmra.mrb[20].mxu0 %v3647_v22 }
0x146c   :  { %v3889_v39 = vpop.f32.mrb[20].mxu0 }
0x146d   :  { %v3890_v53 = vadd.f32 %v3889_v39, %v3688_v38  ;;  %v3891_v61 = vpop.f32.mrb[21].mxu0 }
0x146e   :  { %v3892_v42 = vadd.f32 %v3891_v61, %v3692_v48  ;;  %v3893_v12 = vpop.f32.mrb[22].mxu0 }
0x146f   :  { %v8295_v54 = vadd.f32 %v3890_v53, %v8112_v26  ;;  %v3894_v7 = vadd.f32 %v3893_v12, %v3688_v38  ;;  %v3895_v14 = vpop.f32.mrb[23].mxu0 }
0x1470   :  { %v8298_v19 = vadd.f32 %v3892_v42, %v8108_v36  ;;  %v3896_v49 = vadd.f32 %v3895_v14, %v3692_v48  ;;  %v6843_v36 = vld [vmem:[#allocation9 + $0x20c] ss:$16 sps:$4 sm:$0xff]  }
0x1471   :  { %v8301_v22 = vadd.f32 %v3894_v7, %v8114_v27  ;;  %4421 = vmatprep.subr.bf16.mxu0 %v6843_v36  ;;  %v6844_v27 = vld [vmem:[#allocation9 + $0x220] ss:$16 sps:$4 sm:$0xff]   ;;  %v6915_v36 = vld [vmem:[#allocation9 + $0x38c] ss:$16 sps:$4 sm:$0xff]  }
0x1472   :  { %v8304_v62 = vadd.f32 %v3896_v49, %v8110_v41  ;;  %v3906_v51 = vadd.f32 %v8298_v19, %v8295_v54  ;;  %4422 = vmatpush1.bf16.msra.mxu0 %v6841_v44  ;;  %v6847_v41 = vld [vmem:[#allocation9 + $0x228] ss:$16 sps:$4 sm:$0xff]   ;;  %4381 = vmatpush1.bf16.msra.mxu1 %v6844_v27  ;;  %v6903_v49 = vld [vmem:[#allocation9 + $0x34c] ss:$16 sps:$4 sm:$0xff]   ;;  %v6912_v44 = vld [vmem:[#allocation9 + $0x384] ss:$16 sps:$4 sm:$0xff]  }
0x1473   :  { %4423 = vmatprep.subr.bf16.mxu0 %v6849_v15  ;;  %4382 = vmatprep.subr.bf16.mxu1 %v6852_v57  ;;  %v6913_v15 = vld [vmem:[#allocation9 + $0x388] ss:$16 sps:$4 sm:$0xff]   ;;  %v6918_v27 = vld [vmem:[#allocation9 + $0x3a4] ss:$16 sps:$4 sm:$0xff]   ;;  %v6916_v57 = vld [vmem:[#allocation9 + $0x3a0] ss:$16 sps:$4 sm:$0xff]  }
0x1474   :  { %3907 = vadd.xlane.f32.xlu0 %v3906_v51  ;;  %v3909_v26 = vadd.f32 %v8304_v62, %v8301_v22  ;;  %v6906_v51 = vld [vmem:[#allocation9 + $0x364] ss:$16 sps:$4 sm:$0xff]  }
0x1476   :  { %3910 = vadd.xlane.f32.xlu1 %v3909_v26  ;;  %4424 = vmatpush1.bf16.msra.mxu0 %v6847_v41  ;;  %v6909_v26 = vld [vmem:[#allocation9 + $0x36c] ss:$16 sps:$4 sm:$0xff]  }
0x1477   :  { %4425 = vmatprep.subr.bf16.mxu0 %v6855_v58  ;;  %4383 = vmatpush1.bf16.msra.mxu1 %v6850_v43  ;;  %v6921_v41 = vld [vmem:[#allocation9 + $0x3ac] ss:$16 sps:$4 sm:$0xff]   ;;  %v6919_v58 = vld [vmem:[#allocation9 + $0x3a8] ss:$16 sps:$4 sm:$0xff]   ;;  %v6922_v43 = vld [vmem:[#allocation9 + $0x3c0] ss:$16 sps:$4 sm:$0xff]  }
0x1478   :  { %4384 = vmatprep.subr.bf16.mxu1 %v6858_v52  ;;  %v6925_v52 = vld [vmem:[#allocation9 + $0x3c8] ss:$16 sps:$4 sm:$0xff]  }
0x147a   :  { %4426 = vmatpush1.bf16.msra.mxu0 %v6853_v47  ;;  %v6924_v47 = vld [vmem:[#allocation9 + $0x3c4] ss:$16 sps:$4 sm:$0xff]  }
0x147b   :  { %4427 = vmatprep.subr.bf16.mxu0 %v6861_v59  ;;  %4385 = vmatpush1.bf16.msra.mxu1 %v6856_v60  ;;  %v6927_v59 = vld [vmem:[#allocation9 + $0x3cc] ss:$16 sps:$4 sm:$0xff]   ;;  %v6930_v60 = vld [vmem:[#allocation9 + $0x3e4] ss:$16 sps:$4 sm:$0xff]  }
0x147c   :  { %4386 = vmatprep.subr.bf16.mxu1 %v6864_v0  ;;  %v6928_v0 = vld [vmem:[#allocation9 + $0x3e0] ss:$16 sps:$4 sm:$0xff]  }
0x147e   :  { %4428 = vmatpush1.bf16.msra.mxu0 %v6859_v63  ;;  %v6933_v63 = vld [vmem:[#allocation9 + $0x3ec] ss:$16 sps:$4 sm:$0xff]  }
0x147f   :  { %4429 = vmatprep.subr.bf16.mxu0 %v6867_v3  ;;  %4387 = vmatpush1.bf16.msra.mxu1 %v6862_v4  ;;  %v6931_v3 = vld [vmem:[#allocation9 + $0x3e8] ss:$16 sps:$4 sm:$0xff]   ;;  %v6936_v4 = vld [vmem:[#allocation10 + $0x204] ss:$8 sps:$4 sm:$0xff]  }
0x1480   :  { %4388 = vmatprep.subr.bf16.mxu1 %v6870_v8 }
0x1482   :  { %4430 = vmatpush1.bf16.msra.mxu0 %v6865_v5 }
0x1483   :  { %4431 = vmatprep.subr.bf16.mxu0 %v6873_v9  ;;  %4389 = vmatpush1.bf16.msra.mxu1 %v6868_v40 }
0x1484   :  { %4390 = vmatprep.subr.bf16.mxu1 %v6876_v45 }
0x1486   :  { %4432 = vmatpush1.bf16.msra.mxu0 %v6871_v11 }
0x1487   :  { %4433 = vmatprep.subr.bf16.mxu0 %v6879_v13  ;;  %4391 = vmatpush1.bf16.msra.mxu1 %v6874_v16  ;;  %v3903_v13 = vld [vmem:[#allocation6 + $0x2] sm:$0x3]  ;;  %v3905_v16 = vld [vmem:[#allocation7 + $0x2] sm:$0x3] }
0x1488   :  { %4392 = vmatprep.subr.bf16.mxu1 %v6882_v46  ;;  %v3946_v46 = vrot.slane %v3903_v13, %v7726_v29 }
0x148a   :  { %4434 = vmatpush1.bf16.msra.mxu0 %v6877_v17  ;;  %v3942_v17 = vrot.slane %v3903_v13, %v7729_v30 }
0x148b   :  { %4435 = vmatprep.subr.bf16.mxu0 %v6885_v18  ;;  %4393 = vmatpush1.bf16.msra.mxu1 %v6880_v50 }
0x148c   :  { %4394 = vmatprep.subr.bf16.mxu1 %v6888_v25 }
0x148e   :  { %4436 = vmatpush1.bf16.msra.mxu0 %v6883_v24 }
0x148f   :  { %4437 = vmatprep.subr.bf16.mxu0 %v6891_v31  ;;  %4395 = vmatpush1.bf16.msra.mxu1 %v6886_v55  ;;  %v3957_v31 = vrot.slane %v3905_v16, %v7729_v30  ;;  %v3961_v55 = vrot.slane %v3905_v16, %v7726_v29 }
0x1490   :  { %4396 = vmatprep.subr.bf16.mxu1 %v6894_v33 }
0x1492   :  { %4438 = vmatpush1.bf16.msra.mxu0 %v6889_v37 }
0x1493   :  { %4439 = vmatprep.subr.bf16.mxu0 %v6897_v28  ;;  %4397 = vmatpush1.bf16.msra.mxu1 %v6892_v56 }
0x1496   :  { %4440 = vmatpush1.bf16.msra.mxu0 %v6895_v35 }
0x1497   :  { %4441 = vmatprep.subr.bf16.mxu0 %v6903_v49  ;;  %v6946_v49 = vld [vmem:[#allocation10 + $0x240] ss:$8 sps:$4 sm:$0xff]  }
0x1501   :  { %v3908_v32 = vpop.xlane.xlu0 %3907 }
0x1502   :  { %v3912_v20 = vmul.f32 0.00390625, %v3908_v32 }
0x1503   :  { %v3911_v34 = vpop.xlane.xlu1 %3910 }
0x1504   :  { %v8311_v6 = vsub.f32 %v8295_v54, %v3912_v20  ;;  %v8314_v38 = vsub.f32 %v8298_v19, %v3912_v20  ;;  %v3913_v48 = vmul.f32 0.00390625, %v3911_v34  ;;  %v6900_v19 = vld [vmem:[#allocation9 + $0x344] ss:$16 sps:$4 sm:$0xff]  }
0x1505   :  { %4398 = vmatprep.subr.bf16.mxu1 %v6900_v19  ;;  %v6948_v19 = vld [vmem:[#allocation10 + $0x244] ss:$8 sps:$4 sm:$0xff]  }
0x1506   :  { %v8317_v39 = vsub.f32 %v8301_v22, %v3913_v48  ;;  %v8320_v53 = vsub.f32 %v8304_v62, %v3913_v48  ;;  %v3918_v61 = vmul.f32 %v8311_v6, %v8311_v6  ;;  %v3919_v42 = vmul.f32 %v8314_v38, %v8314_v38  ;;  %v6898_v22 = vld [vmem:[#allocation9 + $0x340] ss:$16 sps:$4 sm:$0xff]   ;;  %v6901_v62 = vld [vmem:[#allocation9 + $0x348] ss:$16 sps:$4 sm:$0xff]  }
0x1507   :  { %4399 = vmatpush1.bf16.msra.mxu1 %v6898_v22  ;;  %4442 = vmatpush1.bf16.msra.mxu0 %v6901_v62  ;;  %v6951_v22 = vld [vmem:[#allocation10 + $0x254] ss:$8 sps:$4 sm:$0xff]   ;;  %v6949_v62 = vld [vmem:[#allocation10 + $0x250] ss:$8 sps:$4 sm:$0xff]  }
0x1508   :  { %v3922_v12 = vadd.f32 %v3919_v42, %v3918_v61  ;;  %v3920_v54 = vmul.f32 %v8317_v39, %v8317_v39  ;;  %v3921_v7 = vmul.f32 %v8320_v53, %v8320_v53  ;;  %4400 = vmatprep.subr.bf16.mxu1 %v6906_v51  ;;  %4443 = vmatprep.subr.bf16.mxu0 %v6909_v26  ;;  %v6934_v61 = vld [vmem:[#allocation10 + $0x200] ss:$8 sps:$4 sm:$0xff]   ;;  %v6937_v42 = vld [vmem:[#allocation10 + $0x210] ss:$8 sps:$4 sm:$0xff]   ;;  %v6954_v51 = vld [vmem:[#allocation10 + $0x264] ss:$8 sps:$4 sm:$0xff]  }
0x1509   :  { %v6952_v26 = vld [vmem:[#allocation10 + $0x260] ss:$8 sps:$4 sm:$0xff]  }
0x150a   :  { %3923 = vadd.xlane.f32.xlu0 %v3922_v12  ;;  %v3925_v14 = vadd.f32 %v3921_v7, %v3920_v54  ;;  %v6942_v12 = vld [vmem:[#allocation10 + $0x224] ss:$8 sps:$4 sm:$0xff]   ;;  %v6940_v54 = vld [vmem:[#allocation10 + $0x220] ss:$8 sps:$4 sm:$0xff]   ;;  %v6945_v7 = vld [vmem:[#allocation10 + $0x234] ss:$8 sps:$4 sm:$0xff]  }
0x150b   :  { %4401 = vmatpush1.bf16.msra.mxu1 %v6904_v10  ;;  %4444 = vmatpush1.bf16.msra.mxu0 %v6907_v1  ;;  %v6957_v10 = vld [vmem:[#allocation10 + $0x274] ss:$8 sps:$4 sm:$0xff]   ;;  %v6955_v1 = vld [vmem:[#allocation10 + $0x270] ss:$8 sps:$4 sm:$0xff]  }
0x150c   :  { %3926 = vadd.xlane.f32.xlu1 %v3925_v14  ;;  %4402 = vmatprep.subr.bf16.mxu1 %v6912_v44  ;;  %v6943_v14 = vld [vmem:[#allocation10 + $0x230] ss:$8 sps:$4 sm:$0xff]   ;;  %v6960_v44 = vld [vmem:[#allocation10 + $0x284] ss:$8 sps:$4 sm:$0xff]  }
0x150d   :  { %4445 = vmatprep.subr.bf16.mxu0 %v6915_v36  ;;  %v6958_v36 = vld [vmem:[#allocation10 + $0x280] ss:$8 sps:$4 sm:$0xff]  }
0x150f   :  { %4403 = vmatpush1.bf16.msra.mxu1 %v6910_v2  ;;  %4446 = vmatpush1.bf16.msra.mxu0 %v6913_v15  ;;  %v6963_v2 = vld [vmem:[#allocation10 + $0x294] ss:$8 sps:$4 sm:$0xff]   ;;  %v6961_v15 = vld [vmem:[#allocation10 + $0x290] ss:$8 sps:$4 sm:$0xff]  }
0x1510   :  { %4404 = vmatprep.subr.bf16.mxu1 %v6918_v27  ;;  %4447 = vmatprep.subr.bf16.mxu0 %v6921_v41  ;;  %v6966_v27 = vld [vmem:[#allocation10 + $0x2a4] ss:$8 sps:$4 sm:$0xff]   ;;  %v6964_v41 = vld [vmem:[#allocation10 + $0x2a0] ss:$8 sps:$4 sm:$0xff]  }
0x1513   :  { %4405 = vmatpush1.bf16.msra.mxu1 %v6916_v57  ;;  %4448 = vmatpush1.bf16.msra.mxu0 %v6919_v58  ;;  %v6969_v57 = vld [vmem:[#allocation10 + $0x2b4] ss:$8 sps:$4 sm:$0xff]   ;;  %v6967_v58 = vld [vmem:[#allocation10 + $0x2b0] ss:$8 sps:$4 sm:$0xff]  }
0x1514   :  { %4406 = vmatprep.subr.bf16.mxu1 %v6924_v47  ;;  %4449 = vmatprep.subr.bf16.mxu0 %v6927_v59  ;;  %v6970_v47 = vld [vmem:[#allocation10 + $0x2c0] ss:$8 sps:$4 sm:$0xff]   ;;  %v6973_v59 = vld [vmem:[#allocation10 + $0x2d0] ss:$8 sps:$4 sm:$0xff]  }
0x1517   :  { %4407 = vmatpush1.bf16.msra.mxu1 %v6922_v43  ;;  %4450 = vmatpush1.bf16.msra.mxu0 %v6925_v52  ;;  %v6972_v43 = vld [vmem:[#allocation10 + $0x2c4] ss:$8 sps:$4 sm:$0xff]   ;;  %v6975_v52 = vld [vmem:[#allocation10 + $0x2d4] ss:$8 sps:$4 sm:$0xff]  }
0x1518   :  { %4408 = vmatprep.subr.bf16.mxu1 %v6930_v60  ;;  %4451 = vmatprep.subr.bf16.mxu0 %v6933_v63  ;;  %v6978_v60 = vld [vmem:[#allocation10 + $0x2e4] ss:$8 sps:$4 sm:$0xff]   ;;  %v6976_v63 = vld [vmem:[#allocation10 + $0x2e0] ss:$8 sps:$4 sm:$0xff]  }
0x151b   :  { %4409 = vmatpush1.bf16.msra.mxu1 %v6928_v0  ;;  %4452 = vmatpush1.bf16.msra.mxu0 %v6931_v3  ;;  %v6979_v0 = vld [vmem:[#allocation10 + $0x2f0] ss:$8 sps:$4 sm:$0xff]   ;;  %v6981_v3 = vld [vmem:[#allocation10 + $0x2f4] ss:$8 sps:$4 sm:$0xff]  }
0x151c   :  { %4938 = vmatprep.subr.bf16.mxu1 %v6936_v4  ;;  %v6984_v4 = vld [vmem:[#allocation10 + $0x304] ss:$8 sps:$4 sm:$0xff]  }
0x1597   :  { %v3924_v5 = vpop.xlane.xlu0 %3923 }
0x1598   :  { %v3928_v8 = vmul.f32 0.00390625, %v3924_v5  ;;  %v5959_v5 = vld [vmem:[%s8553_s11 + $0x4] sm:$0xf] }
0x1599   :  { %v3927_v9 = vpop.xlane.xlu1 %3926 }
0x159a   :  { %v3930_v40 = vadd.f32 1e-05, %v3928_v8  ;;  %v3929_v11 = vmul.f32 0.00390625, %v3927_v9  ;;  %v4041_v8 = vrot.slane %v5959_v5, %v7729_v30  ;;  %v4049_v9 = vrot.slane %v5959_v5, %v7763_v21 }
0x159c   :  { %7154 = vrsqrt.f32 %v3930_v40  ;;  %v3931_v45 = vadd.f32 1e-05, %v3929_v11  ;;  %v4045_v40 = vrot.slane %v5959_v5, %v7726_v29  ;;  %v4053_v11 = vrot.slane %v5959_v5, %v7769_v23 }
0x159e   :  { %7156 = vrsqrt.f32 %v3931_v45 }
0x15a6   :  { %v7155_v18 = vpop.eup %7154 }
0x15a7   :  { %v3934_v50 = vmul.f32 %v7155_v18, %v8311_v6  ;;  %v3935_v24 = vmul.f32 %v7155_v18, %v8314_v38 }
0x15a8   :  { %v7157_v25 = vpop.eup %7156 }
0x15a9   :  { %v3936_v37 = vmul.f32 %v7157_v25, %v8317_v39  ;;  %v3937_v33 = vmul.f32 %v7157_v25, %v8320_v53  ;;  %v3950_v28 = vmul.f32 %v3946_v46, %v3935_v24  ;;  %v3949_v56 = vmul.f32 %v3942_v17, %v3934_v50  ;;  %v6939_v53 = vld [vmem:[#allocation10 + $0x214] ss:$8 sps:$4 sm:$0xff]  }
0x15ab   :  { %v3952_v35 = vmul.f32 %v3946_v46, %v3937_v33  ;;  %v3951_v32 = vmul.f32 %v3942_v17, %v3936_v37  ;;  %v8338_v20 = vadd.f32 %v3961_v55, %v3950_v28  ;;  %v8342_v6 = vadd.f32 %v3957_v31, %v3949_v56 }
0x15ad   :  { %v8340_v34 = vadd.f32 %v3961_v55, %v3952_v35  ;;  %v8344_v38 = vadd.f32 %v3957_v31, %v3951_v32 }
0x15af   :  { %v3969_v48 = vpack.c.bf16 %v8340_v34, %v8338_v20  ;;  %v3968_v39 = vpack.c.bf16 %v8344_v38, %v8342_v6 }
0x15b1   :  { %4410 = vmatprep.mubr.bf16.mxu1 %v3969_v48  ;;  %4453 = vmatprep.mubr.bf16.mxu0 %v3969_v48 }
0x15b2   :  { %4411 = vmatmul.mubr.bf16.vlgmr.msra.gmra.mrb[52].mxu1 %v3968_v39  ;;  %4454 = vmatmul.mubr.bf16.vlgmr.msra.gmra.mrb[24].mxu0 %v3968_v39 }
0x15b3   :  { %4939 = vmatpush1.bf16.msra.mxu1 %v6934_v61 }
0x15b4   :  { %4940 = vmatprep.subr.bf16.mxu1 %v6939_v53 }
0x15b7   :  { %4941 = vmatpush1.bf16.msra.mxu1 %v6937_v42 }
0x15b8   :  { %4942 = vmatprep.subr.bf16.mxu1 %v6942_v12 }
0x15bb   :  { %4943 = vmatpush1.bf16.msra.mxu1 %v6940_v54 }
0x15bc   :  { %4944 = vmatprep.subr.bf16.mxu1 %v6945_v7 }
0x15bf   :  { %4945 = vmatpush1.bf16.msra.mxu1 %v6943_v14 }
0x15c0   :  { %4946 = vmatprep.subr.bf16.mxu1 %v6948_v19 }
0x15c3   :  { %4947 = vmatpush1.bf16.msra.mxu1 %v6946_v49 }
0x15c4   :  { %4948 = vmatprep.subr.bf16.mxu1 %v6951_v22 }
0x15c7   :  { %4949 = vmatpush1.bf16.msra.mxu1 %v6949_v62 }
0x15c8   :  { %4950 = vmatprep.subr.bf16.mxu1 %v6954_v51 }
0x15cb   :  { %4951 = vmatpush1.bf16.msra.mxu1 %v6952_v26 }
0x15cc   :  { %4952 = vmatprep.subr.bf16.mxu1 %v6957_v10 }
0x15cf   :  { %4953 = vmatpush1.bf16.msra.mxu1 %v6955_v1 }
0x15d0   :  { %4954 = vmatprep.subr.bf16.mxu1 %v6960_v44 }
0x15d3   :  { %4955 = vmatpush1.bf16.msra.mxu1 %v6958_v36 }
0x15d4   :  { %4956 = vmatprep.subr.bf16.mxu1 %v6963_v2 }
0x15d7   :  { %4957 = vmatpush1.bf16.msra.mxu1 %v6961_v15 }
0x15d8   :  { %4958 = vmatprep.subr.bf16.mxu1 %v6966_v27 }
0x15db   :  { %4959 = vmatpush1.bf16.msra.mxu1 %v6964_v41 }
0x15dc   :  { %4960 = vmatprep.subr.bf16.mxu1 %v6969_v57 }
0x15df   :  { %4961 = vmatpush1.bf16.msra.mxu1 %v6967_v58 }
0x15e0   :  { %4962 = vmatprep.subr.bf16.mxu1 %v6972_v43 }
0x15e3   :  { %4963 = vmatpush1.bf16.msra.mxu1 %v6970_v47 }
0x15e4   :  { %4964 = vmatprep.subr.bf16.mxu1 %v6975_v52 }
0x15e7   :  { %4965 = vmatpush1.bf16.msra.mxu1 %v6973_v59 }
0x15e8   :  { %4966 = vmatprep.subr.bf16.mxu1 %v6978_v60 }
0x15eb   :  { %4967 = vmatpush1.bf16.msra.mxu1 %v6976_v63 }
0x15ec   :  { %4968 = vmatprep.subr.bf16.mxu1 %v6981_v3 }
0x15ef   :  { %4969 = vmatpush1.bf16.msra.mxu1 %v6979_v0 }
0x15f0   :  { %4981 = vmatprep.subr.bf16.mxu1 %v6984_v4 }
0x1685   :  { %v4412_v45 = vpop.f32.mrb[52].mxu1  ;;  %v4455_v13 = vpop.f32.mrb[24].mxu0 }
0x1686   :  { %v8357_v16 = vadd.f32 %v4412_v45, %v4041_v8  ;;  %v8359_v17 = vadd.f32 %v4455_v13, %v4049_v9  ;;  %v4414_v46 = vpop.f32.mrb[53].mxu1  ;;  %v4457_v18 = vpop.f32.mrb[25].mxu0 }
0x1687   :  { %v8361_v50 = vadd.f32 %v4414_v46, %v4045_v40  ;;  %v8363_v24 = vadd.f32 %v4457_v18, %v4053_v11  ;;  %v4416_v25 = vpop.f32.mrb[54].mxu1  ;;  %v4459_v31 = vpop.f32.mrb[26].mxu0 }
0x1688   :  { %v4464_v21 = vmul.f32 %v8357_v16, %v8357_v16  ;;  %v4466_v23 = vmul.f32 %v8359_v17, %v8359_v17  ;;  %v8369_v55 = vadd.f32 %v4416_v25, %v4041_v8  ;;  %v8371_v37 = vadd.f32 %v4459_v31, %v4049_v9  ;;  %v4418_v33 = vpop.f32.mrb[55].mxu1  ;;  %v4461_v28 = vpop.f32.mrb[27].mxu0 }
0x1689   :  { %v4465_v56 = vmul.f32 %v8361_v50, %v8361_v50  ;;  %v4467_v35 = vmul.f32 %v8363_v24, %v8363_v24  ;;  %v8377_v32 = vadd.f32 %v4418_v33, %v4045_v40  ;;  %v8379_v48 = vadd.f32 %v4461_v28, %v4053_v11 }
0x168a   :  { %v4472_v39 = vmul.f32 %v4464_v21, %v8357_v16  ;;  %v4474_v61 = vmul.f32 %v4466_v23, %v8359_v17  ;;  %v4468_v53 = vmul.f32 %v8369_v55, %v8369_v55  ;;  %v4470_v42 = vmul.f32 %v8371_v37, %v8371_v37 }
0x168b   :  { %v4473_v12 = vmul.f32 %v4465_v56, %v8361_v50  ;;  %v4475_v54 = vmul.f32 %v4467_v35, %v8363_v24  ;;  %v4469_v7 = vmul.f32 %v8377_v32, %v8377_v32  ;;  %v4471_v14 = vmul.f32 %v8379_v48, %v8379_v48 }
0x168c   :  { %v4480_v19 = vmul.f32 0.044715, %v4472_v39  ;;  %v4482_v49 = vmul.f32 0.044715, %v4474_v61  ;;  %v4476_v22 = vmul.f32 %v4468_v53, %v8369_v55  ;;  %v4478_v62 = vmul.f32 %v4470_v42, %v8371_v37 }
0x168d   :  { %v4481_v51 = vmul.f32 0.044715, %v4473_v12  ;;  %v4483_v26 = vmul.f32 0.044715, %v4475_v54  ;;  %v4477_v10 = vmul.f32 %v4469_v7, %v8377_v32  ;;  %v4479_v1 = vmul.f32 %v4471_v14, %v8379_v48 }
0x168e   :  { %v4488_v44 = vadd.f32 %v4480_v19, %v8357_v16  ;;  %v4490_v36 = vadd.f32 %v4482_v49, %v8359_v17  ;;  %v4484_v2 = vmul.f32 0.044715, %v4476_v22  ;;  %v4486_v15 = vmul.f32 0.044715, %v4478_v62 }
0x168f   :  { %v4489_v27 = vadd.f32 %v4481_v51, %v8361_v50  ;;  %v4491_v41 = vadd.f32 %v4483_v26, %v8363_v24  ;;  %v4485_v57 = vmul.f32 0.044715, %v4477_v10  ;;  %v4487_v58 = vmul.f32 0.044715, %v4479_v1 }
0x1690   :  { %v4496_v43 = vmul.f32 0.7978846, %v4488_v44  ;;  %v4498_v47 = vmul.f32 0.7978846, %v4490_v36  ;;  %v4492_v52 = vadd.f32 %v4484_v2, %v8369_v55  ;;  %v4494_v59 = vadd.f32 %v4486_v15, %v8371_v37  ;;  %v6982_v15 = vld [vmem:[#allocation10 + $0x300] ss:$8 sps:$4 sm:$0xff]  }
0x1691   :  { %v4497_v60 = vmul.f32 0.7978846, %v4489_v27  ;;  %v4499_v63 = vmul.f32 0.7978846, %v4491_v41  ;;  %v4493_v0 = vadd.f32 %v4485_v57, %v8377_v32  ;;  %v4495_v3 = vadd.f32 %v4487_v58, %v8379_v48  ;;  %v6987_v27 = vld [vmem:[#allocation10 + $0x314] ss:$8 sps:$4 sm:$0xff]  }
0x1692   :  { %7158 = vtanh.f32 %v4496_v43  ;;  %v4500_v4 = vmul.f32 0.7978846, %v4492_v52  ;;  %v4502_v5 = vmul.f32 0.7978846, %v4494_v59  ;;  %v6996_v41 = vld [vmem:[#allocation10 + $0x344] ss:$8 sps:$4 sm:$0xff]  }
0x1693   :  { %7160 = vtanh.f32 %v4498_v47  ;;  %v4501_v8 = vmul.f32 0.7978846, %v4493_v0  ;;  %v4503_v9 = vmul.f32 0.7978846, %v4495_v3  ;;  %v6994_v57 = vld [vmem:[#allocation10 + $0x340] ss:$8 sps:$4 sm:$0xff]  }
0x1694   :  { %7162 = vtanh.f32 %v4497_v60  ;;  %v6999_v58 = vld [vmem:[#allocation10 + $0x354] ss:$8 sps:$4 sm:$0xff]   ;;  %v6997_v43 = vld [vmem:[#allocation10 + $0x350] ss:$8 sps:$4 sm:$0xff]   ;;  %v7002_v47 = vld [vmem:[#allocation10 + $0x364] ss:$8 sps:$4 sm:$0xff]  }
0x1695   :  { %7164 = vtanh.f32 %v4499_v63  ;;  %v7000_v52 = vld [vmem:[#allocation10 + $0x360] ss:$8 sps:$4 sm:$0xff]   ;;  %v7005_v59 = vld [vmem:[#allocation10 + $0x374] ss:$8 sps:$4 sm:$0xff]   ;;  %v7003_v60 = vld [vmem:[#allocation10 + $0x370] ss:$8 sps:$4 sm:$0xff]  }
0x1696   :  { %7166 = vtanh.f32 %v4500_v4  ;;  %v7008_v63 = vld [vmem:[#allocation10 + $0x384] ss:$8 sps:$4 sm:$0xff]   ;;  %v7006_v0 = vld [vmem:[#allocation10 + $0x380] ss:$8 sps:$4 sm:$0xff]   ;;  %v7011_v3 = vld [vmem:[#allocation10 + $0x394] ss:$8 sps:$4 sm:$0xff]  }
0x1697   :  { %7168 = vtanh.f32 %v4502_v5  ;;  %v7009_v4 = vld [vmem:[#allocation10 + $0x390] ss:$8 sps:$4 sm:$0xff]   ;;  %v7014_v5 = vld [vmem:[#allocation10 + $0x3a4] ss:$8 sps:$4 sm:$0xff]  }
0x1698   :  { %7170 = vtanh.f32 %v4501_v8  ;;  %v7012_v8 = vld [vmem:[#allocation10 + $0x3a0] ss:$8 sps:$4 sm:$0xff]  }
0x1699   :  { %7172 = vtanh.f32 %v4503_v9  ;;  %v7017_v9 = vld [vmem:[#allocation10 + $0x3b4] ss:$8 sps:$4 sm:$0xff]  }
0x169c   :  { %v7159_v40 = vpop.eup %7158 }
0x169d   :  { %v7161_v11 = vpop.eup %7160  ;;  %v4512_v45 = vadd.f32 1.0, %v7159_v40  ;;  %v7015_v40 = vld [vmem:[#allocation10 + $0x3b0] ss:$8 sps:$4 sm:$0xff]  }
0x169e   :  { %v7163_v13 = vpop.eup %7162  ;;  %v4514_v46 = vadd.f32 1.0, %v7161_v11  ;;  %v7020_v11 = vld [vmem:[#allocation10 + $0x3c4] ss:$8 sps:$4 sm:$0xff]  }
0x169f   :  { %v7165_v18 = vpop.eup %7164  ;;  %v4513_v25 = vadd.f32 1.0, %v7163_v13  ;;  %v4520_v33 = vmul.f32 0.5, %v4512_v45  ;;  %v7018_v45 = vld [vmem:[#allocation10 + $0x3c0] ss:$8 sps:$4 sm:$0xff]   ;;  %v7023_v13 = vld [vmem:[#allocation10 + $0x3d4] ss:$8 sps:$4 sm:$0xff]  }
0x16a0   :  { %v7167_v31 = vpop.eup %7166  ;;  %v4515_v21 = vadd.f32 1.0, %v7165_v18  ;;  %v4522_v35 = vmul.f32 0.5, %v4514_v46  ;;  %v7021_v46 = vld [vmem:[#allocation10 + $0x3d0] ss:$8 sps:$4 sm:$0xff]   ;;  %v7026_v18 = vld [vmem:[#allocation10 + $0x3e4] ss:$8 sps:$4 sm:$0xff]  }
0x16a1   :  { %v7169_v23 = vpop.eup %7168  ;;  %v4516_v28 = vadd.f32 1.0, %v7167_v31  ;;  %v4521_v12 = vmul.f32 0.5, %v4513_v25  ;;  %v4528_v19 = vmul.f32 %v4520_v33, %v8357_v16  ;;  %v7024_v25 = vld [vmem:[#allocation10 + $0x3e0] ss:$8 sps:$4 sm:$0xff]   ;;  %v7029_v31 = vld [vmem:[#allocation10 + $0x3f4] ss:$8 sps:$4 sm:$0xff]  }
0x16a2   :  { %v7171_v56 = vpop.eup %7170  ;;  %v4518_v39 = vadd.f32 1.0, %v7169_v23  ;;  %v4523_v14 = vmul.f32 0.5, %v4515_v21  ;;  %v8408_v62 = vmul.f32 %v4522_v35, %v8359_v17  ;;  %v7027_v21 = vld [vmem:[#allocation10 + $0x3f0] ss:$8 sps:$4 sm:$0xff]  }
0x16a3   :  { %v7173_v61 = vpop.eup %7172  ;;  %v4524_v53 = vmul.f32 0.5, %v4516_v28  ;;  %v4517_v42 = vadd.f32 1.0, %v7171_v56  ;;  %v4529_v10 = vmul.f32 %v4521_v12, %v8361_v50  ;;  %v6990_v50 = vld [vmem:[#allocation10 + $0x324] ss:$8 sps:$4 sm:$0xff]   ;;  %v6024_v23 = vld [vmem:[%s8555_s13 + $0x2] sm:$0x3] }
0x16a4   :  { %v4526_v54 = vmul.f32 0.5, %v4518_v39  ;;  %v4519_v7 = vadd.f32 1.0, %v7173_v61  ;;  %v4531_v36 = vmul.f32 %v4523_v14, %v8363_v24  ;;  %v6993_v24 = vld [vmem:[#allocation10 + $0x334] ss:$8 sps:$4 sm:$0xff]   ;;  %v4611_v33 = vrot.slane %v6024_v23, %v7729_v30 }
0x16a5   :  { %v4532_v49 = vmul.f32 %v4524_v53, %v8369_v55  ;;  %v4525_v22 = vmul.f32 0.5, %v4517_v42  ;;  %v4615_v28 = vrot.slane %v6024_v23, %v7726_v29  ;;  %v7075_v23 = vld [vmem:[%s8558_s16 + $0xf0] ss:$8 sps:$4 sm:$0xff]  }
0x16a6   :  { %v8411_v51 = vmul.f32 %v4526_v54, %v8371_v37  ;;  %v4527_v26 = vmul.f32 0.5, %v4519_v7  ;;  %v6985_v37 = vld [vmem:[#allocation10 + $0x310] ss:$8 sps:$4 sm:$0xff]  }
0x16a7   :  { %v4533_v1 = vmul.f32 %v4525_v22, %v8377_v32  ;;  %v4536_v44 = vpack.c.bf16 %v4532_v49, %v4528_v19  ;;  %v6988_v32 = vld [vmem:[#allocation10 + $0x320] ss:$8 sps:$4 sm:$0xff]  }
0x16a8   :  { %v4535_v2 = vmul.f32 %v4527_v26, %v8379_v48  ;;  %v4538_v16 = vpack.c.bf16 %v8411_v51, %v8408_v62  ;;  %v6991_v48 = vld [vmem:[#allocation10 + $0x330] ss:$8 sps:$4 sm:$0xff]  }
0x16a9   :  { %v4537_v55 = vpack.c.bf16 %v4533_v1, %v4529_v10  ;;  %v7030_v51 = vld [vmem:[%s8558_s16] ss:$8 sps:$4 sm:$0xff]   ;;  %v7041_v10 = vld [vmem:[%s8558_s16 + $0x34] ss:$8 sps:$4 sm:$0xff]   ;;  %v7039_v1 = vld [vmem:[%s8558_s16 + $0x30] ss:$8 sps:$4 sm:$0xff]  }
0x16aa   :  { %v4539_v17 = vpack.c.bf16 %v4535_v2, %v4531_v36  ;;  %v7036_v26 = vld [vmem:[%s8558_s16 + $0x20] ss:$8 sps:$4 sm:$0xff]   ;;  %v7047_v2 = vld [vmem:[%s8558_s16 + $0x54] ss:$8 sps:$4 sm:$0xff]  }
0x16ab   :  { %4970 = vmatprep.mubr.bf16.mxu1 %v4537_v55  ;;  %v7042_v36 = vld [vmem:[%s8558_s16 + $0x40] ss:$8 sps:$4 sm:$0xff]   ;;  %v7050_v55 = vld [vmem:[%s8558_s16 + $0x64] ss:$8 sps:$4 sm:$0xff]  }
0x16ac   :  { %4971 = vmatmul.mubr.bf16.vlgmr.msra.gmra.mrb[56].mxu1 %v4536_v44  ;;  %v7044_v44 = vld [vmem:[%s8558_s16 + $0x44] ss:$8 sps:$4 sm:$0xff]  }
0x16ad   :  { %4982 = vmatpush1.bf16.msra.mxu1 %v6982_v15  ;;  %5013 = vmatprep.mubr.bf16.mxu1 %v4539_v17  ;;  %v7048_v15 = vld [vmem:[%s8558_s16 + $0x60] ss:$8 sps:$4 sm:$0xff]   ;;  %v7053_v17 = vld [vmem:[%s8558_s16 + $0x74] ss:$8 sps:$4 sm:$0xff]  }
0x16ae   :  { %4983 = vmatprep.subr.bf16.mxu1 %v6987_v27  ;;  %v7051_v27 = vld [vmem:[%s8558_s16 + $0x70] ss:$8 sps:$4 sm:$0xff]  }
0x16b1   :  { %4984 = vmatpush1.bf16.msra.mxu1 %v6985_v37  ;;  %v7056_v37 = vld [vmem:[%s8558_s16 + $0x84] ss:$8 sps:$4 sm:$0xff]  }
0x16b2   :  { %4985 = vmatprep.subr.bf16.mxu1 %v6990_v50  ;;  %v7054_v50 = vld [vmem:[%s8558_s16 + $0x80] ss:$8 sps:$4 sm:$0xff]  }
0x16b5   :  { %4986 = vmatpush1.bf16.msra.mxu1 %v6988_v32  ;;  %v7059_v32 = vld [vmem:[%s8558_s16 + $0x94] ss:$8 sps:$4 sm:$0xff]  }
0x16b6   :  { %4987 = vmatprep.subr.bf16.mxu1 %v6993_v24  ;;  %v7057_v24 = vld [vmem:[%s8558_s16 + $0x90] ss:$8 sps:$4 sm:$0xff]  }
0x16b9   :  { %4988 = vmatpush1.bf16.msra.mxu1 %v6991_v48 }
0x16ba   :  { %4989 = vmatprep.subr.bf16.mxu1 %v6996_v41 }
0x16bd   :  { %4990 = vmatpush1.bf16.msra.mxu1 %v6994_v57 }
0x16be   :  { %4991 = vmatprep.subr.bf16.mxu1 %v6999_v58 }
0x16c1   :  { %4992 = vmatpush1.bf16.msra.mxu1 %v6997_v43 }
0x16c2   :  { %4993 = vmatprep.subr.bf16.mxu1 %v7002_v47 }
0x16c5   :  { %4994 = vmatpush1.bf16.msra.mxu1 %v7000_v52 }
0x16c6   :  { %4995 = vmatprep.subr.bf16.mxu1 %v7005_v59 }
0x16c9   :  { %4996 = vmatpush1.bf16.msra.mxu1 %v7003_v60 }
0x16ca   :  { %4997 = vmatprep.subr.bf16.mxu1 %v7008_v63 }
0x16cd   :  { %4998 = vmatpush1.bf16.msra.mxu1 %v7006_v0 }
0x16ce   :  { %4999 = vmatprep.subr.bf16.mxu1 %v7011_v3 }
0x16d1   :  { %5000 = vmatpush1.bf16.msra.mxu1 %v7009_v4 }
0x16d2   :  { %5001 = vmatprep.subr.bf16.mxu1 %v7014_v5 }
0x16d5   :  { %5002 = vmatpush1.bf16.msra.mxu1 %v7012_v8  ;;  %v7062_v8 = vld [vmem:[%s8558_s16 + $0xa4] ss:$8 sps:$4 sm:$0xff]  }
0x16d6   :  { %5003 = vmatprep.subr.bf16.mxu1 %v7017_v9  ;;  %v7060_v9 = vld [vmem:[%s8558_s16 + $0xa0] ss:$8 sps:$4 sm:$0xff]  }
0x16d9   :  { %5004 = vmatpush1.bf16.msra.mxu1 %v7015_v40  ;;  %v7065_v40 = vld [vmem:[%s8558_s16 + $0xb4] ss:$8 sps:$4 sm:$0xff]  }
0x16da   :  { %5005 = vmatprep.subr.bf16.mxu1 %v7020_v11  ;;  %v7063_v11 = vld [vmem:[%s8558_s16 + $0xb0] ss:$8 sps:$4 sm:$0xff]  }
0x16dd   :  { %5006 = vmatpush1.bf16.msra.mxu1 %v7018_v45  ;;  %v7068_v45 = vld [vmem:[%s8558_s16 + $0xc4] ss:$8 sps:$4 sm:$0xff]  }
0x16de   :  { %5007 = vmatprep.subr.bf16.mxu1 %v7023_v13  ;;  %v7066_v13 = vld [vmem:[%s8558_s16 + $0xc0] ss:$8 sps:$4 sm:$0xff]  }
0x16e1   :  { %5008 = vmatpush1.bf16.msra.mxu1 %v7021_v46  ;;  %v7071_v46 = vld [vmem:[%s8558_s16 + $0xd4] ss:$8 sps:$4 sm:$0xff]  }
0x16e2   :  { %5009 = vmatprep.subr.bf16.mxu1 %v7026_v18  ;;  %v7069_v18 = vld [vmem:[%s8558_s16 + $0xd0] ss:$8 sps:$4 sm:$0xff]  }
0x16e5   :  { %5010 = vmatpush1.bf16.msra.mxu1 %v7024_v25  ;;  %v7074_v25 = vld [vmem:[%s8558_s16 + $0xe4] ss:$8 sps:$4 sm:$0xff]  }
0x16e6   :  { %5011 = vmatprep.subr.bf16.mxu1 %v7029_v31  ;;  %v7072_v31 = vld [vmem:[%s8558_s16 + $0xe0] ss:$8 sps:$4 sm:$0xff]  }
0x16e9   :  { %5012 = vmatpush1.bf16.msra.mxu1 %v7027_v21  ;;  %v7077_v21 = vld [vmem:[%s8558_s16 + $0xf4] ss:$8 sps:$4 sm:$0xff]  }
0x16ec   :  { %5014 = vmatmul.mubr.bf16.vlgmr.msra.gmra.mrb[56].mxu1 %v4538_v16  ;;  %v7045_v16 = vld [vmem:[%s8558_s16 + $0x50] ss:$8 sps:$4 sm:$0xff]  }
0x17bf   :  { %v5015_v56 = vpop.f32.mrb[56].mxu1 }
0x17c0   :  { %v6228_v35 = vadd.f32 %v5015_v56, %v4611_v33  ;;  %v5017_v39 = vpop.f32.mrb[57].mxu1 }
0x17c1   :  { %v6229_v61 = vadd.f32 %v5017_v39, %v4615_v28  ;;  %v5019_v53 = vpop.f32.mrb[58].mxu1 }
0x17c2   :  { %v5024_v42 = vadd.f32 %v6228_v35, %v8342_v6  ;;  %v6230_v12 = vadd.f32 %v5019_v53, %v4611_v33  ;;  %v5021_v54 = vpop.f32.mrb[59].mxu1  ;;  %v7032_v6 = vld [vmem:[%s8558_s16 + $0x4] ss:$8 sps:$4 sm:$0xff]   ;;  %v7078_v33 = vld [vmem:[#allocation16 + $0x40] sm:$0xff]  }
0x17c3   :  { %v5025_v7 = vadd.f32 %v6229_v61, %v8338_v20  ;;  %v6231_v14 = vadd.f32 %v5021_v54, %v4615_v28  ;;  %v7035_v20 = vld [vmem:[%s8558_s16 + $0x14] ss:$8 sps:$4 sm:$0xff]   ;;  %5300 = vmatprep.subr.bf16.mxu0 %v7032_v6 }
0x17c4   :  { %v5026_v19 = vadd.f32 %v6230_v12, %v8344_v38  ;;  %5301 = vmatpush1.bf16.msra.mxu0 %v7030_v51  ;;  %v7038_v38 = vld [vmem:[%s8558_s16 + $0x24] ss:$8 sps:$4 sm:$0xff]   ;;  %v5031_v12 = vld [vmem:[#allocation13 + $0x2] sm:$0x3] }
0x17c5   :  { %v5027_v49 = vadd.f32 %v6231_v14, %v8340_v34  ;;  %v5032_v22 = vadd.f32 %v5025_v7, %v5024_v42  ;;  %v7033_v34 = vld [vmem:[%s8558_s16 + $0x10] ss:$8 sps:$4 sm:$0xff]   ;;  %5302 = vmatprep.subr.bf16.mxu0 %v7035_v20  ;;  %v5087_v51 = vrot.slane %v5031_v12, %v7726_v29 }
0x17c7   :  { %5033 = vadd.xlane.f32.xlu0 %v5032_v22  ;;  %v5035_v62 = vadd.f32 %v5027_v49, %v5026_v19 }
0x17c8   :  { %5303 = vmatpush1.bf16.msra.mxu0 %v7033_v34 }
0x17c9   :  { %5036 = vadd.xlane.f32.xlu1 %v5035_v62  ;;  %5304 = vmatprep.subr.bf16.mxu0 %v7038_v38  ;;  %v5083_v62 = vrot.slane %v5031_v12, %v7729_v30 }
0x17cc   :  { %5305 = vmatpush1.bf16.msra.mxu0 %v7036_v26 }
0x17cd   :  { %5306 = vmatprep.subr.bf16.mxu0 %v7041_v10 }
0x17d0   :  { %5307 = vmatpush1.bf16.msra.mxu0 %v7039_v1 }
0x17d1   :  { %5308 = vmatprep.subr.bf16.mxu0 %v7044_v44 }
0x17d4   :  { %5309 = vmatpush1.bf16.msra.mxu0 %v7042_v36 }
0x17d5   :  { %5310 = vmatprep.subr.bf16.mxu0 %v7047_v2 }
0x17d8   :  { %5311 = vmatpush1.bf16.msra.mxu0 %v7045_v16 }
0x17d9   :  { %5312 = vmatprep.subr.bf16.mxu0 %v7050_v55 }
0x17dc   :  { %5313 = vmatpush1.bf16.msra.mxu0 %v7048_v15  ;;  %v7079_v15 = vld [vmem:[#allocation16] sm:$0xff]  }
0x17dd   :  { %5314 = vmatprep.subr.bf16.mxu0 %v7053_v17  ;;  %v7080_v17 = vld [vmem:[#allocation16 + $0x48] sm:$0xff]  }
0x17e0   :  { %5315 = vmatpush1.bf16.msra.mxu0 %v7051_v27  ;;  %v7081_v27 = vld [vmem:[#allocation16 + $0x8] sm:$0xff]  }
0x17e1   :  { %5316 = vmatprep.subr.bf16.mxu0 %v7056_v37  ;;  %v7082_v37 = vld [vmem:[#allocation16 + $0x50] sm:$0xff]  }
0x17e4   :  { %5317 = vmatpush1.bf16.msra.mxu0 %v7054_v50  ;;  %v7083_v50 = vld [vmem:[#allocation16 + $0x10] sm:$0xff]  }
0x17e5   :  { %5318 = vmatprep.subr.bf16.mxu0 %v7059_v32  ;;  %v7084_v32 = vld [vmem:[#allocation16 + $0x58] sm:$0xff]  }
0x17e8   :  { %5319 = vmatpush1.bf16.msra.mxu0 %v7057_v24  ;;  %v7085_v24 = vld [vmem:[#allocation16 + $0x18] sm:$0xff]  }
0x17e9   :  { %5320 = vmatprep.subr.bf16.mxu0 %v7062_v8 }
0x17ec   :  { %5321 = vmatpush1.bf16.msra.mxu0 %v7060_v9 }
0x17ed   :  { %5322 = vmatprep.subr.bf16.mxu0 %v7065_v40 }
0x17f0   :  { %5323 = vmatpush1.bf16.msra.mxu0 %v7063_v11 }
0x17f1   :  { %5324 = vmatprep.subr.bf16.mxu0 %v7068_v45 }
0x17f4   :  { %5325 = vmatpush1.bf16.msra.mxu0 %v7066_v13 }
0x17f5   :  { %5326 = vmatprep.subr.bf16.mxu0 %v7071_v46 }
0x17f8   :  { %5327 = vmatpush1.bf16.msra.mxu0 %v7069_v18 }
0x17f9   :  { %5328 = vmatprep.subr.bf16.mxu0 %v7074_v25 }
0x17fc   :  { %5329 = vmatpush1.bf16.msra.mxu0 %v7072_v31 }
0x17fd   :  { %5330 = vmatprep.subr.bf16.mxu0 %v7077_v21  ;;  %v6121_v21 = vld [vmem:[%s8580_s1] ss:$0 sm:$0xff] }
0x1800   :  { %5331 = vmatpush1.bf16.msra.mxu0 %v7075_v23 }
0x1801   :  { %6154 = vmatprep.subr.bf16.mxu0 %v7078_v33 }
0x1854   :  { %v5034_v48 = vpop.xlane.xlu0 %5033 }
0x1855   :  { %v5038_v41 = vmul.f32 0.00390625, %v5034_v48  ;;  %v7086_v48 = vld [vmem:[#allocation16 + $0x60] sm:$0xff]  }
0x1856   :  { %v5037_v57 = vpop.xlane.xlu1 %5036 }
0x1857   :  { %v5040_v58 = vsub.f32 %v5024_v42, %v5038_v41  ;;  %v5041_v43 = vsub.f32 %v5025_v7, %v5038_v41  ;;  %v5039_v47 = vmul.f32 0.00390625, %v5037_v57  ;;  %v5029_v42 = vld [vmem:[#allocation12 + $0x2] sm:$0x3]  ;;  %v7087_v41 = vld [vmem:[#allocation16 + $0x20] sm:$0xff]   ;;  %v7088_v57 = vld [vmem:[#allocation16 + $0x68] sm:$0xff]  }
0x1858   :  { %v5068_v54 = vrot.slane %v5029_v42, %v7729_v30  ;;  %v5072_v7 = vrot.slane %v5029_v42, %v7726_v29 }
0x1859   :  { %v5042_v52 = vsub.f32 %v5026_v19, %v5039_v47  ;;  %v5043_v59 = vsub.f32 %v5027_v49, %v5039_v47  ;;  %v5044_v60 = vmul.f32 %v5040_v58, %v5040_v58  ;;  %v5045_v63 = vmul.f32 %v5041_v43, %v5041_v43  ;;  %v7091_v47 = vld [vmem:[#allocation16 + $0x30] sm:$0xff]  }
0x185b   :  { %v5048_v0 = vadd.f32 %v5045_v63, %v5044_v60  ;;  %v5046_v3 = vmul.f32 %v5042_v52, %v5042_v52  ;;  %v5047_v4 = vmul.f32 %v5043_v59, %v5043_v59  ;;  %v5128_v60 = vld [vmem:[#allocation15] sm:$0x3] }
0x185c   :  { %v5133_v63 = vrot.slane %v5128_v60, %v7729_v30 }
0x185d   :  { %5049 = vadd.xlane.f32.xlu0 %v5048_v0  ;;  %v5051_v5 = vadd.f32 %v5047_v4, %v5046_v3  ;;  %v5137_v0 = vrot.slane %v5128_v60, %v7726_v29 }
0x185f   :  { %5052 = vadd.xlane.f32.xlu1 %v5051_v5 }
0x18ea   :  { %v5050_v28 = vpop.xlane.xlu0 %5049 }
0x18eb   :  { %v5054_v56 = vmul.f32 0.00390625, %v5050_v28 }
0x18ec   :  { %v5053_v35 = vpop.xlane.xlu1 %5052 }
0x18ed   :  { %v5056_v39 = vadd.f32 1e-05, %v5054_v56  ;;  %v5055_v61 = vmul.f32 0.00390625, %v5053_v35 }
0x18ef   :  { %7174 = vrsqrt.f32 %v5056_v39  ;;  %v5057_v53 = vadd.f32 1e-05, %v5055_v61 }
0x18f1   :  { %7176 = vrsqrt.f32 %v5057_v53 }
0x18f9   :  { %v7175_v14 = vpop.eup %7174 }
0x18fa   :  { %v5060_v19 = vmul.f32 %v7175_v14, %v5040_v58  ;;  %v5061_v49 = vmul.f32 %v7175_v14, %v5041_v43  ;;  %v7089_v58 = vld [vmem:[#allocation16 + $0x28] sm:$0xff]   ;;  %v7090_v43 = vld [vmem:[#allocation16 + $0x70] sm:$0xff]  }
0x18fb   :  { %v7177_v22 = vpop.eup %7176 }
0x18fc   :  { %v5062_v6 = vmul.f32 %v7177_v22, %v5042_v52  ;;  %v5063_v20 = vmul.f32 %v7177_v22, %v5043_v59  ;;  %v5076_v34 = vmul.f32 %v5072_v7, %v5061_v49  ;;  %v5075_v38 = vmul.f32 %v5068_v54, %v5060_v19  ;;  %v7092_v52 = vld [vmem:[#allocation16 + $0x78] sm:$0xff]  }
0x18fd   :  { %v7093_v59 = vld [vmem:[#allocation16 + $0x38] sm:$0xff]  }
0x18fe   :  { %v5078_v26 = vmul.f32 %v5072_v7, %v5063_v20  ;;  %v5077_v10 = vmul.f32 %v5068_v54, %v5062_v6  ;;  %v5091_v1 = vadd.f32 %v5087_v51, %v5076_v34  ;;  %v5090_v36 = vadd.f32 %v5083_v62, %v5075_v38 }
0x1900   :  { %v5093_v44 = vadd.f32 %v5087_v51, %v5078_v26  ;;  %v5092_v2 = vadd.f32 %v5083_v62, %v5077_v10 }
0x1902   :  { %v5095_v16 = vpack.c.bf16 %v5093_v44, %v5091_v1  ;;  %v5094_v55 = vpack.c.bf16 %v5092_v2, %v5090_v36 }
0x1904   :  { %5332 = vmatprep.mubr.bf16.mxu0 %v5095_v16 }
0x1905   :  { %5333 = vmatmul.mubr.bf16.vlgmr.msra.gmra.mrb[28].mxu0 %v5094_v55 }
0x1906   :  { %6155 = vmatpush3.bf16.msra.mxu0 %v7079_v15 }
0x1907   :  { %6156 = vmatprep.subr.bf16.mxu0 %v7080_v17 }
0x190a   :  { %6157 = vmatpush3.bf16.msra.mxu0 %v7081_v27 }
0x190b   :  { %6158 = vmatprep.subr.bf16.mxu0 %v7082_v37 }
0x190e   :  { %6159 = vmatpush3.bf16.msra.mxu0 %v7083_v50 }
0x190f   :  { %6160 = vmatprep.subr.bf16.mxu0 %v7084_v32 }
0x1912   :  { %6161 = vmatpush3.bf16.msra.mxu0 %v7085_v24 }
0x1913   :  { %6162 = vmatprep.subr.bf16.mxu0 %v7086_v48 }
0x1916   :  { %6163 = vmatpush3.bf16.msra.mxu0 %v7087_v41 }
0x1917   :  { %6164 = vmatprep.subr.bf16.mxu0 %v7088_v57 }
0x191a   :  { %6165 = vmatpush3.bf16.msra.mxu0 %v7089_v58 }
0x191b   :  { %6166 = vmatprep.subr.bf16.mxu0 %v7090_v43 }
0x191e   :  { %6167 = vmatpush3.bf16.msra.mxu0 %v7091_v47 }
0x191f   :  { %6168 = vmatprep.subr.bf16.mxu0 %v7092_v52 }
0x1922   :  { %6169 = vmatpush3.bf16.msra.mxu0 %v7093_v59 }
0x19d8   :  { %v5334_v3 = vpop.f32.mrb[28].mxu0 }
0x19d9   :  { %v5335_v4 = vadd.f32 %v5334_v3, %v5133_v63  ;;  %v5336_v5 = vpop.f32.mrb[29].mxu0 }
0x19da   :  { %v5337_v8 = vadd.f32 %v5336_v5, %v5137_v0  ;;  %v5338_v9 = vpop.f32.mrb[30].mxu0 }
0x19db   :  { %7178 = vtanh.f32 %v5335_v4  ;;  %v5339_v40 = vadd.f32 %v5338_v9, %v5133_v63  ;;  %v5340_v11 = vpop.f32.mrb[31].mxu0 }
0x19dc   :  { %7180 = vtanh.f32 %v5337_v8  ;;  %v5341_v45 = vadd.f32 %v5340_v11, %v5137_v0 }
0x19dd   :  { %7182 = vtanh.f32 %v5339_v40 }
0x19de   :  { %7184 = vtanh.f32 %v5341_v45 }
0x19e5   :  { %v7179_v13 = vpop.eup %7178 }
0x19e6   :  { %v7181_v46 = vpop.eup %7180 }
0x19e7   :  { %v7183_v18 = vpop.eup %7182 }
0x19e8   :  { %v7185_v25 = vpop.eup %7184  ;;  %v5347_v31 = vpack.c.bf16 %v7183_v18, %v7179_v13 }
0x19e9   :  { %v5348_v30 = vpack.c.bf16 %v7185_v25, %v7181_v46 }
0x19eb   :  { %5516 = vmatprep.mubr.bf16.mxu0 %v5348_v30 }
0x19ec   :  { %5517 = vmatmul.mubr.bf16.vlgmr.msra.gmra.mrb[32].mxu0 %v5347_v31 }
0x1abf   :  { %v6170_v29 = vpop.f32.mrb[32].mxu0 }
0x1ac0   :  { %v6171_v23 = vpop.f32.mrb[33].mxu0 }
0x1ac1   :  { %v6172_v33 = vadd.f32 %v6171_v23, %v6170_v29  ;;  %v6173_v28 = vpop.f32.mrb[34].mxu0 }
0x1ac2   :  { %v6174_v56 = vpop.f32.mrb[35].mxu0 }
0x1ac3   :  { %v5519_v35 = vadd.f32 %v6172_v33, %v6121_v21  ;;  %v6175_v39 = vadd.f32 %v6174_v56, %v6173_v28 }
0x1ac5   :  { %5525 = vst [vmem:[%s8581_s5] sm:$0xff] %v5519_v35  ;;  %v5522_v61 = vadd.f32 %v6175_v39, %v6121_v21 }
0x1ac7   :  { %5526 = vst [vmem:[%s8581_s5 + $0x8] sm:$0xff] %v5522_v61 }
0x1ac8   :  { %5531 = vsyncpa [#allocation3], 1 }
0x1ac9   :  { %5532 = vsyncpa [#allocation5], 1 }
0x1aca   :  { %5533 = vsyncpa [#allocation8], 1 }
0x1acb   :  { %5534 = vsyncpa [#allocation11], 1 }
0x1acc   :  { %5535 = vsyncpa [#allocation14], 1 }
0x1acd   :  { %5536 = vsyncpa [#allocation17], 1 }

</bundles_post_ra>
